<compile_context>
chip_gen: v7x
topology: tpu7x:2x2x1
jax: 0.10.0
libtpu: 0.0.40
codegen_flags: <defaults>
</compile_context>

<pallas_src>
import jax
import jax.numpy as jnp
from jax import lax
from jax.experimental import pallas as pl
from jax.experimental.pallas import tpu as pltpu

# Fixed InceptionA branch widths (from the PyTorch module definition).
C_B1 = 64      # branch1x1 out
C_B5R = 48     # branch5x5_1 out (reduce)
C_B5 = 64      # branch5x5_2 out
C_B3R = 64     # branch3x3dbl_1 out (reduce)
C_B3M = 96     # branch3x3dbl_2 out
C_B3 = 96      # branch3x3dbl_3 out
C_CAT = C_B1 + C_B5R + C_B3R   # fused 1x1 output width = 176


# ----------------------------- Pallas kernel ------------------------------

def _conv_same(xpad, w_k, scale, shift, k, h, w):
    """KxK 'same' conv on a pre-padded f32 tile via per-dh im2col matmuls.

    xpad : (h+2p, w+2p, cin) f32, zero halo already in place (p = (k-1)//2)
    w_k  : (k, k*cin, cout) bf16   (HWIO reshaped so w_k[dh] is the dh-slab)
    scale/shift : (1, cout) f32 folded BN
    returns (h*w, cout) f32 post-ReLU.
    """
    cin = xpad.shape[-1]
    cout = w_k.shape[-1]
    acc = jnp.zeros((h * w, cout), jnp.float32)
    for dh in range(k):
        taps = [xpad[dh:dh + h, dw:dw + w, :] for dw in range(k)]
        row = jnp.concatenate(taps, axis=-1).reshape(h * w, k * cin)
        acc = acc + jnp.dot(row.astype(jnp.bfloat16), w_k[dh],
                            preferred_element_type=jnp.float32)
    return jnp.maximum(acc * scale + shift, 0.0)


def _inception_a_kernel(x_ref,
                        wcat_ref, sccat_ref, shcat_ref,
                        w5_ref, sc5_ref, sh5_ref,
                        w3a_ref, sc3a_ref, sh3a_ref,
                        w3b_ref, sc3b_ref, sh3b_ref,
                        wp_ref, scp_ref, shp_ref,
                        out_ref,
                        xp_scr, b5p_scr, b3p_scr, b3mp_scr):
    _, h, w, cin = x_ref.shape
    hw = h * w
    x = x_ref[0]                                            # (h, w, cin) f32

    # --- three 1x1 convs fused into one MXU matmul (Cout = 64+48+64 = 176) ---
    y = jnp.dot(x.reshape(hw, cin).astype(jnp.bfloat16), wcat_ref[...],
                preferred_element_type=jnp.float32)
    y = jnp.maximum(y * sccat_ref[...] + shcat_ref[...], 0.0)
    b1 = y[:, :C_B1]                                        # (hw, 64)
    b5r = y[:, C_B1:C_B1 + C_B5R]                           # (hw, 48)
    b3r = y[:, C_B1 + C_B5R:C_CAT]                          # (hw, 64)

    # --- branch5x5_2: 5x5 conv, 2-pixel zero halo held in VMEM scratch ---
    b5p_scr[...] = jnp.zeros_like(b5p_scr)
    b5p_scr[2:2 + h, 2:2 + w, :] = b5r.reshape(h, w, C_B5R)
    b5 = _conv_same(b5p_scr[...], w5_ref[...], sc5_ref[...], sh5_ref[...],
                    5, h, w)                                # (hw, 64)

    # --- branch3x3dbl_2 / _3: two chained 3x3 convs, halos in VMEM scratch ---
    b3p_scr[...] = jnp.zeros_like(b3p_scr)
    b3p_scr[1:1 + h, 1:1 + w, :] = b3r.reshape(h, w, C_B3R)
    b3m = _conv_same(b3p_scr[...], w3a_ref[...], sc3a_ref[...], sh3a_ref[...],
                     3, h, w)                               # (hw, 96)
    b3mp_scr[...] = jnp.zeros_like(b3mp_scr)
    b3mp_scr[1:1 + h, 1:1 + w, :] = b3m.reshape(h, w, C_B3M)
    b3 = _conv_same(b3mp_scr[...], w3b_ref[...], sc3b_ref[...], sh3b_ref[...],
                    3, h, w)                                # (hw, 96)

    # --- branch_pool: separable 3x3 avg pool (count_include_pad) + 1x1 conv ---
    xp_scr[...] = jnp.zeros_like(xp_scr)
    xp_scr[1:1 + h, 1:1 + w, :] = x
    xp = xp_scr[...]                                        # (h+2, w+2, cin)
    rowsum = xp[:, 0:w, :] + xp[:, 1:1 + w, :] + xp[:, 2:2 + w, :]
    pooled = (rowsum[0:h] + rowsum[1:1 + h] + rowsum[2:2 + h]) * (1.0 / 9.0)
    yp = jnp.dot(pooled.reshape(hw, cin).astype(jnp.bfloat16), wp_ref[...],
                 preferred_element_type=jnp.float32)
    bp = jnp.maximum(yp * scp_ref[...] + shp_ref[...], 0.0)  # (hw, pf)

    # --- single lane-dense concatenated store: [b1 | b5 | b3 | bp] ---
    out = jnp.concatenate([b1, b5, b3, bp], axis=-1)
    out_ref[0] = out.reshape(h, w, out.shape[-1]).astype(out_ref.dtype)


# ----------------------------- wrapper (glue) ------------------------------

def _full_spec(a):
    nd = a.ndim
    return pl.BlockSpec(a.shape, lambda i, _nd=nd: (0,) * _nd)


def inception_a_forward(params, x_nchw):
    x = jnp.transpose(x_nchw, (0, 2, 3, 1)).astype(jnp.float32)  # NCHW -> NHWC
    n, h, w, cin = x.shape
    pf = params["w_pool"].shape[-1]
    ctot = C_B1 + C_B5 + C_B3 + pf

    bf = lambda a: a.astype(jnp.bfloat16)
    args = (
        x,
        bf(params["w_cat"]), params["s_cat"], params["b_cat"],
        bf(params["w_5x5"]), params["s_5x5"], params["b_5x5"],
        bf(params["w_3x3a"]), params["s_3x3a"], params["b_3x3a"],
        bf(params["w_3x3b"]), params["s_3x3b"], params["b_3x3b"],
        bf(params["w_pool"]), params["s_pool"], params["b_pool"],
    )
    in_specs = [pl.BlockSpec((1, h, w, cin), lambda i: (i, 0, 0, 0))]
    in_specs += [_full_spec(a) for a in args[1:]]

    out = pl.pallas_call(
        _inception_a_kernel,
        out_shape=jax.ShapeDtypeStruct((n, h, w, ctot), jnp.float32),
        grid=(n,),
        in_specs=in_specs,
        out_specs=pl.BlockSpec((1, h, w, ctot), lambda i: (i, 0, 0, 0)),
        scratch_shapes=[
            pltpu.VMEM((h + 2, w + 2, cin), jnp.float32),    # padded x (pool)
            pltpu.VMEM((h + 4, w + 4, C_B5R), jnp.float32),  # padded b5 reduce
            pltpu.VMEM((h + 2, w + 2, C_B3R), jnp.float32),  # padded b3 reduce
            pltpu.VMEM((h + 2, w + 2, C_B3M), jnp.float32),  # padded b3 mid
        ],
        compiler_params=pltpu.CompilerParams(
            dimension_semantics=("parallel",),
            vmem_limit_bytes=32 * 1024 * 1024),
    )(*args)
    return jnp.transpose(out, (0, 3, 1, 2))                  # NHWC -> NCHW


# ----------------------------- parameters ------------------------------

def _fold_bn(key, cout):
    kg, kb, km, kv = jax.random.split(key, 4)
    eps = 1e-3
    gamma = jax.random.uniform(kg, (cout,), jnp.float32, 0.5, 1.5)
    beta = jax.random.normal(kb, (cout,), jnp.float32) * 0.1
    mean = jax.random.normal(km, (cout,), jnp.float32) * 0.1
    var = jax.random.uniform(kv, (cout,), jnp.float32, 0.5, 1.5)
    scale = gamma / jnp.sqrt(var + eps)
    shift = beta - mean * scale
    return scale, shift


def _basic_conv(key, w_shape, cout):
    kw, kbn = jax.random.split(key)
    w = jax.random.normal(kw, w_shape, jnp.float32) * 0.1
    scale, shift = _fold_bn(kbn, cout)
    return w, scale, shift


def init_inception_a_params(key, in_channels, pool_features):
    cin = in_channels
    k1, k5a, k5b, k3a, k3b, k3c, kpl = jax.random.split(key, 7)
    w1, s1, h1 = _basic_conv(k1, (cin, C_B1), C_B1)
    w5a, s5a, h5a = _basic_conv(k5a, (cin, C_B5R), C_B5R)
    w5b, s5b, h5b = _basic_conv(k5b, (5, 5, C_B5R, C_B5), C_B5)        # HWIO
    w3a, s3a, h3a = _basic_conv(k3a, (cin, C_B3R), C_B3R)
    w3b, s3b, h3b = _basic_conv(k3b, (3, 3, C_B3R, C_B3M), C_B3M)      # HWIO
    w3c, s3c, h3c = _basic_conv(k3c, (3, 3, C_B3M, C_B3), C_B3)        # HWIO
    wp, sp, hp = _basic_conv(kpl, (cin, pool_features), pool_features)
    row = lambda v: v.reshape(1, -1)
    return dict(
        # the three 1x1 convs on x, concatenated along Cout (fused matmul)
        w_cat=jnp.concatenate([w1, w5a, w3a], axis=1),
        s_cat=row(jnp.concatenate([s1, s5a, s3a])),
        b_cat=row(jnp.concatenate([h1, h5a, h3a])),
        # KxK convs stored as (k, k*cin, cout) for per-dh im2col accumulation
        w_5x5=w5b.reshape(5, 5 * C_B5R, C_B5), s_5x5=row(s5b), b_5x5=row(h5b),
        w_3x3a=w3b.reshape(3, 3 * C_B3R, C_B3M), s_3x3a=row(s3b), b_3x3a=row(h3b),
        w_3x3b=w3c.reshape(3, 3 * C_B3M, C_B3), s_3x3b=row(s3c), b_3x3b=row(h3c),
        w_pool=wp, s_pool=row(sp), b_pool=row(hp),
    )


# ----------------------------- pure-JAX reference ------------------------------
# Matches the kernel's numerics: bf16 matmul operands, f32 accumulate,
# f32 BN/ReLU epilogue (PyTorch-equivalent math modulo bf16 operand rounding).

def _ref_conv_bn_relu(x, w_hwio, scale, shift, pad):
    y = lax.conv_general_dilated(
        x.astype(jnp.bfloat16), w_hwio.astype(jnp.bfloat16), (1, 1),
        ((pad, pad), (pad, pad)),
        dimension_numbers=("NHWC", "HWIO", "NHWC"),
        preferred_element_type=jnp.float32)
    y = y * scale.reshape(1, 1, 1, -1) + shift.reshape(1, 1, 1, -1)
    return jnp.maximum(y, 0.0)


def ref_forward(params, x_nchw):
    x = jnp.transpose(x_nchw, (0, 2, 3, 1)).astype(jnp.float32)
    cin = x.shape[-1]
    pf = params["w_pool"].shape[-1]
    wcat, scat, bcat = params["w_cat"], params["s_cat"][0], params["b_cat"][0]
    sl1 = slice(0, C_B1)
    sl5 = slice(C_B1, C_B1 + C_B5R)
    sl3 = slice(C_B1 + C_B5R, C_CAT)

    b1 = _ref_conv_bn_relu(x, wcat[:, sl1].reshape(1, 1, cin, C_B1),
                           scat[sl1], bcat[sl1], 0)
    b5 = _ref_conv_bn_relu(x, wcat[:, sl5].reshape(1, 1, cin, C_B5R),
                           scat[sl5], bcat[sl5], 0)
    b5 = _ref_conv_bn_relu(b5, params["w_5x5"].reshape(5, 5, C_B5R, C_B5),
                           params["s_5x5"][0], params["b_5x5"][0], 2)
    b3 = _ref_conv_bn_relu(x, wcat[:, sl3].reshape(1, 1, cin, C_B3R),
                           scat[sl3], bcat[sl3], 0)
    b3 = _ref_conv_bn_relu(b3, params["w_3x3a"].reshape(3, 3, C_B3R, C_B3M),
                           params["s_3x3a"][0], params["b_3x3a"][0], 1)
    b3 = _ref_conv_bn_relu(b3, params["w_3x3b"].reshape(3, 3, C_B3M, C_B3),
                           params["s_3x3b"][0], params["b_3x3b"][0], 1)
    pooled = lax.reduce_window(x, 0.0, lax.add, (1, 3, 3, 1), (1, 1, 1, 1),
                               ((0, 0), (1, 1), (1, 1), (0, 0))) * (1.0 / 9.0)
    bp = _ref_conv_bn_relu(pooled, params["w_pool"].reshape(1, 1, cin, pf),
                           params["s_pool"][0], params["b_pool"][0], 0)
    out = jnp.concatenate([b1, b5, b3, bp], axis=-1)
    return jnp.transpose(out, (0, 3, 1, 2))


# ----------------------------- main ------------------------------

if __name__ == "__main__":
    key = jax.random.PRNGKey(0)
    kx, kparams = jax.random.split(key)

    N, Cin, H, W = 2, 32, 8, 8
    pool_features = 32

    x = jax.random.normal(kx, (N, Cin, H, W), jnp.float32)   # NCHW like PyTorch
    params = init_inception_a_params(kparams, Cin, pool_features)

    fwd = jax.jit(inception_a_forward)
    out = jax.block_until_ready(fwd(params, x))
    assert out.shape == (N, C_B1 + C_B5 + C_B3 + pool_features, H, W), out.shape

    ref = ref_forward(params, x)
    max_err = float(jnp.max(jnp.abs(out - ref)))
    assert max_err < 5e-2, f"max abs error vs reference: {max_err}"

    print("KERNEL_OK")
</pallas_src>

<mosaic_0001>
module attributes {stable_mosaic.version = 11 : i64} {
  func.func @_inception_a_kernel(%arg0: i32, %arg1: memref<1x8x8x32xf32, #tpu.memory_space<vmem>>, %arg2: memref<32x176xbf16, #tpu.memory_space<vmem>>, %arg3: memref<1x176xf32, #tpu.memory_space<vmem>>, %arg4: memref<1x176xf32, #tpu.memory_space<vmem>>, %arg5: memref<5x240x64xbf16, #tpu.memory_space<vmem>>, %arg6: memref<1x64xf32, #tpu.memory_space<vmem>>, %arg7: memref<1x64xf32, #tpu.memory_space<vmem>>, %arg8: memref<3x192x96xbf16, #tpu.memory_space<vmem>>, %arg9: memref<1x96xf32, #tpu.memory_space<vmem>>, %arg10: memref<1x96xf32, #tpu.memory_space<vmem>>, %arg11: memref<3x288x96xbf16, #tpu.memory_space<vmem>>, %arg12: memref<1x96xf32, #tpu.memory_space<vmem>>, %arg13: memref<1x96xf32, #tpu.memory_space<vmem>>, %arg14: memref<32x32xbf16, #tpu.memory_space<vmem>>, %arg15: memref<1x32xf32, #tpu.memory_space<vmem>>, %arg16: memref<1x32xf32, #tpu.memory_space<vmem>>, %arg17: memref<1x8x8x256xf32, #tpu.memory_space<vmem>>, %arg18: memref<10x10x32xf32, #tpu.memory_space<vmem>>, %arg19: memref<12x12x48xf32, #tpu.memory_space<vmem>>, %arg20: memref<10x10x64xf32, #tpu.memory_space<vmem>>, %arg21: memref<10x10x96xf32, #tpu.memory_space<vmem>>) attributes {dimension_semantics = [#tpu.dimension_semantics<parallel>], iteration_bounds = array<i64: 2>, scalar_prefetch = 0 : i64, scratch_operands = 4 : i64, tpu.core_type = #tpu.core_type<tc>, window_params = [{transform_indices = @transform_0, window_bounds = array<i64: 1, 8, 8, 32>}, {pipeline_mode = #tpu.pipeline_mode<synchronous>, transform_indices = @transform_1, window_bounds = array<i64: 32, 176>}, {pipeline_mode = #tpu.pipeline_mode<synchronous>, transform_indices = @transform_2, window_bounds = array<i64: 1, 176>}, {pipeline_mode = #tpu.pipeline_mode<synchronous>, transform_indices = @transform_3, window_bounds = array<i64: 1, 176>}, {pipeline_mode = #tpu.pipeline_mode<synchronous>, transform_indices = @transform_4, window_bounds = array<i64: 5, 240, 64>}, {pipeline_mode = #tpu.pipeline_mode<synchronous>, transform_indices = @transform_5, window_bounds = array<i64: 1, 64>}, {pipeline_mode = #tpu.pipeline_mode<synchronous>, transform_indices = @transform_6, window_bounds = array<i64: 1, 64>}, {pipeline_mode = #tpu.pipeline_mode<synchronous>, transform_indices = @transform_7, window_bounds = array<i64: 3, 192, 96>}, {pipeline_mode = #tpu.pipeline_mode<synchronous>, transform_indices = @transform_8, window_bounds = array<i64: 1, 96>}, {pipeline_mode = #tpu.pipeline_mode<synchronous>, transform_indices = @transform_9, window_bounds = array<i64: 1, 96>}, {pipeline_mode = #tpu.pipeline_mode<synchronous>, transform_indices = @transform_10, window_bounds = array<i64: 3, 288, 96>}, {pipeline_mode = #tpu.pipeline_mode<synchronous>, transform_indices = @transform_11, window_bounds = array<i64: 1, 96>}, {pipeline_mode = #tpu.pipeline_mode<synchronous>, transform_indices = @transform_12, window_bounds = array<i64: 1, 96>}, {pipeline_mode = #tpu.pipeline_mode<synchronous>, transform_indices = @transform_13, window_bounds = array<i64: 32, 32>}, {pipeline_mode = #tpu.pipeline_mode<synchronous>, transform_indices = @transform_14, window_bounds = array<i64: 1, 32>}, {pipeline_mode = #tpu.pipeline_mode<synchronous>, transform_indices = @transform_15, window_bounds = array<i64: 1, 32>}, {transform_indices = @transform_16, window_bounds = array<i64: 1, 8, 8, 256>}]} {
    %c0 = arith.constant 0 : index
    %c0_0 = arith.constant 0 : index
    %c0_1 = arith.constant 0 : index
    %c0_2 = arith.constant 0 : index
    %0 = vector.load %arg1[%c0, %c0_0, %c0_1, %c0_2] : memref<1x8x8x32xf32, #tpu.memory_space<vmem>>, vector<1x8x8x32xf32>
    %1 = vector.shape_cast %0 : vector<1x8x8x32xf32> to vector<8x8x32xf32>
    %2 = vector.shape_cast %1 : vector<8x8x32xf32> to vector<64x32xf32>
    %3 = arith.truncf %2 : vector<64x32xf32> to vector<64x32xbf16>
    %c0_3 = arith.constant 0 : index
    %c0_4 = arith.constant 0 : index
    %4 = vector.load %arg2[%c0_3, %c0_4] : memref<32x176xbf16, #tpu.memory_space<vmem>>, vector<32x176xbf16>
    %cst = arith.constant dense<0.000000e+00> : vector<64x176xf32>
    %5 = tpu.matmul %3, %4, %cst {dimension_numbers = #tpu.dot_dimension_numbers<[1], [0], [0], [1], [0, 0, 1, 1], [], []>} : vector<64x32xbf16>, vector<32x176xbf16>, vector<64x176xf32> -> vector<64x176xf32>
    %c0_5 = arith.constant 0 : index
    %c0_6 = arith.constant 0 : index
    %6 = vector.load %arg3[%c0_5, %c0_6] : memref<1x176xf32, #tpu.memory_space<vmem>>, vector<1x176xf32>
    %7 = vector.broadcast %6 : vector<1x176xf32> to vector<64x176xf32>
    %8 = arith.mulf %5, %7 : vector<64x176xf32>
    %c0_7 = arith.constant 0 : index
    %c0_8 = arith.constant 0 : index
    %9 = vector.load %arg4[%c0_7, %c0_8] : memref<1x176xf32, #tpu.memory_space<vmem>>, vector<1x176xf32>
    %10 = vector.broadcast %9 : vector<1x176xf32> to vector<64x176xf32>
    %11 = arith.addf %8, %10 : vector<64x176xf32>
    %cst_9 = arith.constant 0.000000e+00 : f32
    %12 = vector.broadcast %cst_9 : f32 to vector<64x176xf32>
    %13 = arith.maximumf %11, %12 : vector<64x176xf32>
    %14 = vector.extract_strided_slice %13 {offsets = [0, 0], sizes = [64, 64], strides = [1, 1]} : vector<64x176xf32> to vector<64x64xf32>
    %15 = vector.extract_strided_slice %13 {offsets = [0, 64], sizes = [64, 48], strides = [1, 1]} : vector<64x176xf32> to vector<64x48xf32>
    %16 = vector.extract_strided_slice %13 {offsets = [0, 112], sizes = [64, 64], strides = [1, 1]} : vector<64x176xf32> to vector<64x64xf32>
    %cst_10 = arith.constant 0.000000e+00 : f32
    %17 = vector.broadcast %cst_10 : f32 to vector<12x12x48xf32>
    %c0_11 = arith.constant 0 : index
    %c0_12 = arith.constant 0 : index
    %c0_13 = arith.constant 0 : index
    %18 = vector.load %arg19[%c0_11, %c0_12, %c0_13] : memref<12x12x48xf32, #tpu.memory_space<vmem>>, vector<12x12x48xf32>
    tpu.vector_store %arg19[%c0_11, %c0_12, %c0_13], %17 {strides = array<i32>} : memref<12x12x48xf32, #tpu.memory_space<vmem>>, vector<12x12x48xf32>,
    %19 = vector.shape_cast %15 : vector<64x48xf32> to vector<8x8x48xf32>
    %c2 = arith.constant 2 : index
    %c2_14 = arith.constant 2 : index
    %c0_15 = arith.constant 0 : index
    %20 = vector.load %arg19[%c2, %c2_14, %c0_15] : memref<12x12x48xf32, #tpu.memory_space<vmem>>, vector<8x8x48xf32>
    tpu.vector_store %arg19[%c2, %c2_14, %c0_15], %19 {strides = array<i32>} : memref<12x12x48xf32, #tpu.memory_space<vmem>>, vector<8x8x48xf32>,
    %c0_16 = arith.constant 0 : index
    %c0_17 = arith.constant 0 : index
    %c0_18 = arith.constant 0 : index
    %21 = vector.load %arg19[%c0_16, %c0_17, %c0_18] : memref<12x12x48xf32, #tpu.memory_space<vmem>>, vector<12x12x48xf32>
    %c0_19 = arith.constant 0 : index
    %c0_20 = arith.constant 0 : index
    %c0_21 = arith.constant 0 : index
    %22 = vector.load %arg5[%c0_19, %c0_20, %c0_21] : memref<5x240x64xbf16, #tpu.memory_space<vmem>>, vector<5x240x64xbf16>
    %c0_22 = arith.constant 0 : index
    %c0_23 = arith.constant 0 : index
    %23 = vector.load %arg6[%c0_22, %c0_23] : memref<1x64xf32, #tpu.memory_space<vmem>>, vector<1x64xf32>
    %c0_24 = arith.constant 0 : index
    %c0_25 = arith.constant 0 : index
    %24 = vector.load %arg7[%c0_24, %c0_25] : memref<1x64xf32, #tpu.memory_space<vmem>>, vector<1x64xf32>
    %cst_26 = arith.constant 0.000000e+00 : f32
    %25 = vector.broadcast %cst_26 : f32 to vector<64x64xf32>
    %26 = vector.extract_strided_slice %21 {offsets = [0, 0, 0], sizes = [8, 8, 48], strides = [1, 1, 1]} : vector<12x12x48xf32> to vector<8x8x48xf32>
    %27 = vector.extract_strided_slice %21 {offsets = [0, 1, 0], sizes = [8, 8, 48], strides = [1, 1, 1]} : vector<12x12x48xf32> to vector<8x8x48xf32>
    %28 = vector.extract_strided_slice %21 {offsets = [0, 2, 0], sizes = [8, 8, 48], strides = [1, 1, 1]} : vector<12x12x48xf32> to vector<8x8x48xf32>
    %29 = vector.extract_strided_slice %21 {offsets = [0, 3, 0], sizes = [8, 8, 48], strides = [1, 1, 1]} : vector<12x12x48xf32> to vector<8x8x48xf32>
    %30 = vector.extract_strided_slice %21 {offsets = [0, 4, 0], sizes = [8, 8, 48], strides = [1, 1, 1]} : vector<12x12x48xf32> to vector<8x8x48xf32>
    %31 = tpu.concatenate %26, %27, %28, %29, %30 in 2 : vector<8x8x48xf32>, vector<8x8x48xf32>, vector<8x8x48xf32>, vector<8x8x48xf32>, vector<8x8x48xf32> -> vector<8x8x240xf32>
    %32 = vector.shape_cast %31 : vector<8x8x240xf32> to vector<64x240xf32>
    %33 = arith.truncf %32 : vector<64x240xf32> to vector<64x240xbf16>
    %34 = vector.extract_strided_slice %22 {offsets = [0, 0, 0], sizes = [1, 240, 64], strides = [1, 1, 1]} : vector<5x240x64xbf16> to vector<1x240x64xbf16>
    %35 = vector.shape_cast %34 : vector<1x240x64xbf16> to vector<240x64xbf16>
    %cst_27 = arith.constant dense<0.000000e+00> : vector<64x64xf32>
    %36 = tpu.matmul %33, %35, %cst_27 {dimension_numbers = #tpu.dot_dimension_numbers<[1], [0], [0], [1], [0, 0, 1, 1], [], []>} : vector<64x240xbf16>, vector<240x64xbf16>, vector<64x64xf32> -> vector<64x64xf32>
    %37 = arith.addf %25, %36 : vector<64x64xf32>
    %38 = vector.extract_strided_slice %21 {offsets = [1, 0, 0], sizes = [8, 8, 48], strides = [1, 1, 1]} : vector<12x12x48xf32> to vector<8x8x48xf32>
    %39 = vector.extract_strided_slice %21 {offsets = [1, 1, 0], sizes = [8, 8, 48], strides = [1, 1, 1]} : vector<12x12x48xf32> to vector<8x8x48xf32>
    %40 = vector.extract_strided_slice %21 {offsets = [1, 2, 0], sizes = [8, 8, 48], strides = [1, 1, 1]} : vector<12x12x48xf32> to vector<8x8x48xf32>
    %41 = vector.extract_strided_slice %21 {offsets = [1, 3, 0], sizes = [8, 8, 48], strides = [1, 1, 1]} : vector<12x12x48xf32> to vector<8x8x48xf32>
    %42 = vector.extract_strided_slice %21 {offsets = [1, 4, 0], sizes = [8, 8, 48], strides = [1, 1, 1]} : vector<12x12x48xf32> to vector<8x8x48xf32>
    %43 = tpu.concatenate %38, %39, %40, %41, %42 in 2 : vector<8x8x48xf32>, vector<8x8x48xf32>, vector<8x8x48xf32>, vector<8x8x48xf32>, vector<8x8x48xf32> -> vector<8x8x240xf32>
    %44 = vector.shape_cast %43 : vector<8x8x240xf32> to vector<64x240xf32>
    %45 = arith.truncf %44 : vector<64x240xf32> to vector<64x240xbf16>
    %46 = vector.extract_strided_slice %22 {offsets = [1, 0, 0], sizes = [1, 240, 64], strides = [1, 1, 1]} : vector<5x240x64xbf16> to vector<1x240x64xbf16>
    %47 = vector.shape_cast %46 : vector<1x240x64xbf16> to vector<240x64xbf16>
    %cst_28 = arith.constant dense<0.000000e+00> : vector<64x64xf32>
    %48 = tpu.matmul %45, %47, %cst_28 {dimension_numbers = #tpu.dot_dimension_numbers<[1], [0], [0], [1], [0, 0, 1, 1], [], []>} : vector<64x240xbf16>, vector<240x64xbf16>, vector<64x64xf32> -> vector<64x64xf32>
    %49 = arith.addf %37, %48 : vector<64x64xf32>
    %50 = vector.extract_strided_slice %21 {offsets = [2, 0, 0], sizes = [8, 8, 48], strides = [1, 1, 1]} : vector<12x12x48xf32> to vector<8x8x48xf32>
    %51 = vector.extract_strided_slice %21 {offsets = [2, 1, 0], sizes = [8, 8, 48], strides = [1, 1, 1]} : vector<12x12x48xf32> to vector<8x8x48xf32>
    %52 = vector.extract_strided_slice %21 {offsets = [2, 2, 0], sizes = [8, 8, 48], strides = [1, 1, 1]} : vector<12x12x48xf32> to vector<8x8x48xf32>
    %53 = vector.extract_strided_slice %21 {offsets = [2, 3, 0], sizes = [8, 8, 48], strides = [1, 1, 1]} : vector<12x12x48xf32> to vector<8x8x48xf32>
    %54 = vector.extract_strided_slice %21 {offsets = [2, 4, 0], sizes = [8, 8, 48], strides = [1, 1, 1]} : vector<12x12x48xf32> to vector<8x8x48xf32>
    %55 = tpu.concatenate %50, %51, %52, %53, %54 in 2 : vector<8x8x48xf32>, vector<8x8x48xf32>, vector<8x8x48xf32>, vector<8x8x48xf32>, vector<8x8x48xf32> -> vector<8x8x240xf32>
    %56 = vector.shape_cast %55 : vector<8x8x240xf32> to vector<64x240xf32>
    %57 = arith.truncf %56 : vector<64x240xf32> to vector<64x240xbf16>
    %58 = vector.extract_strided_slice %22 {offsets = [2, 0, 0], sizes = [1, 240, 64], strides = [1, 1, 1]} : vector<5x240x64xbf16> to vector<1x240x64xbf16>
    %59 = vector.shape_cast %58 : vector<1x240x64xbf16> to vector<240x64xbf16>
    %cst_29 = arith.constant dense<0.000000e+00> : vector<64x64xf32>
    %60 = tpu.matmul %57, %59, %cst_29 {dimension_numbers = #tpu.dot_dimension_numbers<[1], [0], [0], [1], [0, 0, 1, 1], [], []>} : vector<64x240xbf16>, vector<240x64xbf16>, vector<64x64xf32> -> vector<64x64xf32>
    %61 = arith.addf %49, %60 : vector<64x64xf32>
    %62 = vector.extract_strided_slice %21 {offsets = [3, 0, 0], sizes = [8, 8, 48], strides = [1, 1, 1]} : vector<12x12x48xf32> to vector<8x8x48xf32>
    %63 = vector.extract_strided_slice %21 {offsets = [3, 1, 0], sizes = [8, 8, 48], strides = [1, 1, 1]} : vector<12x12x48xf32> to vector<8x8x48xf32>
    %64 = vector.extract_strided_slice %21 {offsets = [3, 2, 0], sizes = [8, 8, 48], strides = [1, 1, 1]} : vector<12x12x48xf32> to vector<8x8x48xf32>
    %65 = vector.extract_strided_slice %21 {offsets = [3, 3, 0], sizes = [8, 8, 48], strides = [1, 1, 1]} : vector<12x12x48xf32> to vector<8x8x48xf32>
    %66 = vector.extract_strided_slice %21 {offsets = [3, 4, 0], sizes = [8, 8, 48], strides = [1, 1, 1]} : vector<12x12x48xf32> to vector<8x8x48xf32>
    %67 = tpu.concatenate %62, %63, %64, %65, %66 in 2 : vector<8x8x48xf32>, vector<8x8x48xf32>, vector<8x8x48xf32>, vector<8x8x48xf32>, vector<8x8x48xf32> -> vector<8x8x240xf32>
    %68 = vector.shape_cast %67 : vector<8x8x240xf32> to vector<64x240xf32>
    %69 = arith.truncf %68 : vector<64x240xf32> to vector<64x240xbf16>
    %70 = vector.extract_strided_slice %22 {offsets = [3, 0, 0], sizes = [1, 240, 64], strides = [1, 1, 1]} : vector<5x240x64xbf16> to vector<1x240x64xbf16>
    %71 = vector.shape_cast %70 : vector<1x240x64xbf16> to vector<240x64xbf16>
    %cst_30 = arith.constant dense<0.000000e+00> : vector<64x64xf32>
    %72 = tpu.matmul %69, %71, %cst_30 {dimension_numbers = #tpu.dot_dimension_numbers<[1], [0], [0], [1], [0, 0, 1, 1], [], []>} : vector<64x240xbf16>, vector<240x64xbf16>, vector<64x64xf32> -> vector<64x64xf32>
    %73 = arith.addf %61, %72 : vector<64x64xf32>
    %74 = vector.extract_strided_slice %21 {offsets = [4, 0, 0], sizes = [8, 8, 48], strides = [1, 1, 1]} : vector<12x12x48xf32> to vector<8x8x48xf32>
    %75 = vector.extract_strided_slice %21 {offsets = [4, 1, 0], sizes = [8, 8, 48], strides = [1, 1, 1]} : vector<12x12x48xf32> to vector<8x8x48xf32>
    %76 = vector.extract_strided_slice %21 {offsets = [4, 2, 0], sizes = [8, 8, 48], strides = [1, 1, 1]} : vector<12x12x48xf32> to vector<8x8x48xf32>
    %77 = vector.extract_strided_slice %21 {offsets = [4, 3, 0], sizes = [8, 8, 48], strides = [1, 1, 1]} : vector<12x12x48xf32> to vector<8x8x48xf32>
    %78 = vector.extract_strided_slice %21 {offsets = [4, 4, 0], sizes = [8, 8, 48], strides = [1, 1, 1]} : vector<12x12x48xf32> to vector<8x8x48xf32>
    %79 = tpu.concatenate %74, %75, %76, %77, %78 in 2 : vector<8x8x48xf32>, vector<8x8x48xf32>, vector<8x8x48xf32>, vector<8x8x48xf32>, vector<8x8x48xf32> -> vector<8x8x240xf32>
    %80 = vector.shape_cast %79 : vector<8x8x240xf32> to vector<64x240xf32>
    %81 = arith.truncf %80 : vector<64x240xf32> to vector<64x240xbf16>
    %82 = vector.extract_strided_slice %22 {offsets = [4, 0, 0], sizes = [1, 240, 64], strides = [1, 1, 1]} : vector<5x240x64xbf16> to vector<1x240x64xbf16>
    %83 = vector.shape_cast %82 : vector<1x240x64xbf16> to vector<240x64xbf16>
    %cst_31 = arith.constant dense<0.000000e+00> : vector<64x64xf32>
    %84 = tpu.matmul %81, %83, %cst_31 {dimension_numbers = #tpu.dot_dimension_numbers<[1], [0], [0], [1], [0, 0, 1, 1], [], []>} : vector<64x240xbf16>, vector<240x64xbf16>, vector<64x64xf32> -> vector<64x64xf32>
    %85 = arith.addf %73, %84 : vector<64x64xf32>
    %86 = vector.broadcast %23 : vector<1x64xf32> to vector<64x64xf32>
    %87 = arith.mulf %85, %86 : vector<64x64xf32>
    %88 = vector.broadcast %24 : vector<1x64xf32> to vector<64x64xf32>
    %89 = arith.addf %87, %88 : vector<64x64xf32>
    %cst_32 = arith.constant 0.000000e+00 : f32
    %90 = vector.broadcast %cst_32 : f32 to vector<64x64xf32>
    %91 = arith.maximumf %89, %90 : vector<64x64xf32>
    %cst_33 = arith.constant 0.000000e+00 : f32
    %92 = vector.broadcast %cst_33 : f32 to vector<10x10x64xf32>
    %c0_34 = arith.constant 0 : index
    %c0_35 = arith.constant 0 : index
    %c0_36 = arith.constant 0 : index
    %93 = vector.load %arg20[%c0_34, %c0_35, %c0_36] : memref<10x10x64xf32, #tpu.memory_space<vmem>>, vector<10x10x64xf32>
    tpu.vector_store %arg20[%c0_34, %c0_35, %c0_36], %92 {strides = array<i32>} : memref<10x10x64xf32, #tpu.memory_space<vmem>>, vector<10x10x64xf32>,
    %94 = vector.shape_cast %16 : vector<64x64xf32> to vector<8x8x64xf32>
    %c1 = arith.constant 1 : index
    %c1_37 = arith.constant 1 : index
    %c0_38 = arith.constant 0 : index
    %95 = vector.load %arg20[%c1, %c1_37, %c0_38] : memref<10x10x64xf32, #tpu.memory_space<vmem>>, vector<8x8x64xf32>
    tpu.vector_store %arg20[%c1, %c1_37, %c0_38], %94 {strides = array<i32>} : memref<10x10x64xf32, #tpu.memory_space<vmem>>, vector<8x8x64xf32>,
    %c0_39 = arith.constant 0 : index
    %c0_40 = arith.constant 0 : index
    %c0_41 = arith.constant 0 : index
    %96 = vector.load %arg20[%c0_39, %c0_40, %c0_41] : memref<10x10x64xf32, #tpu.memory_space<vmem>>, vector<10x10x64xf32>
    %c0_42 = arith.constant 0 : index
    %c0_43 = arith.constant 0 : index
    %c0_44 = arith.constant 0 : index
    %97 = vector.load %arg8[%c0_42, %c0_43, %c0_44] : memref<3x192x96xbf16, #tpu.memory_space<vmem>>, vector<3x192x96xbf16>
    %c0_45 = arith.constant 0 : index
    %c0_46 = arith.constant 0 : index
    %98 = vector.load %arg9[%c0_45, %c0_46] : memref<1x96xf32, #tpu.memory_space<vmem>>, vector<1x96xf32>
    %c0_47 = arith.constant 0 : index
    %c0_48 = arith.constant 0 : index
    %99 = vector.load %arg10[%c0_47, %c0_48] : memref<1x96xf32, #tpu.memory_space<vmem>>, vector<1x96xf32>
    %cst_49 = arith.constant 0.000000e+00 : f32
    %100 = vector.broadcast %cst_49 : f32 to vector<64x96xf32>
    %101 = vector.extract_strided_slice %96 {offsets = [0, 0, 0], sizes = [8, 8, 64], strides = [1, 1, 1]} : vector<10x10x64xf32> to vector<8x8x64xf32>
    %102 = vector.extract_strided_slice %96 {offsets = [0, 1, 0], sizes = [8, 8, 64], strides = [1, 1, 1]} : vector<10x10x64xf32> to vector<8x8x64xf32>
    %103 = vector.extract_strided_slice %96 {offsets = [0, 2, 0], sizes = [8, 8, 64], strides = [1, 1, 1]} : vector<10x10x64xf32> to vector<8x8x64xf32>
    %104 = tpu.concatenate %101, %102, %103 in 2 : vector<8x8x64xf32>, vector<8x8x64xf32>, vector<8x8x64xf32> -> vector<8x8x192xf32>
    %105 = vector.shape_cast %104 : vector<8x8x192xf32> to vector<64x192xf32>
    %106 = arith.truncf %105 : vector<64x192xf32> to vector<64x192xbf16>
    %107 = vector.extract_strided_slice %97 {offsets = [0, 0, 0], sizes = [1, 192, 96], strides = [1, 1, 1]} : vector<3x192x96xbf16> to vector<1x192x96xbf16>
    %108 = vector.shape_cast %107 : vector<1x192x96xbf16> to vector<192x96xbf16>
    %cst_50 = arith.constant dense<0.000000e+00> : vector<64x96xf32>
    %109 = tpu.matmul %106, %108, %cst_50 {dimension_numbers = #tpu.dot_dimension_numbers<[1], [0], [0], [1], [0, 0, 1, 1], [], []>} : vector<64x192xbf16>, vector<192x96xbf16>, vector<64x96xf32> -> vector<64x96xf32>
    %110 = arith.addf %100, %109 : vector<64x96xf32>
    %111 = vector.extract_strided_slice %96 {offsets = [1, 0, 0], sizes = [8, 8, 64], strides = [1, 1, 1]} : vector<10x10x64xf32> to vector<8x8x64xf32>
    %112 = vector.extract_strided_slice %96 {offsets = [1, 1, 0], sizes = [8, 8, 64], strides = [1, 1, 1]} : vector<10x10x64xf32> to vector<8x8x64xf32>
    %113 = vector.extract_strided_slice %96 {offsets = [1, 2, 0], sizes = [8, 8, 64], strides = [1, 1, 1]} : vector<10x10x64xf32> to vector<8x8x64xf32>
    %114 = tpu.concatenate %111, %112, %113 in 2 : vector<8x8x64xf32>, vector<8x8x64xf32>, vector<8x8x64xf32> -> vector<8x8x192xf32>
    %115 = vector.shape_cast %114 : vector<8x8x192xf32> to vector<64x192xf32>
    %116 = arith.truncf %115 : vector<64x192xf32> to vector<64x192xbf16>
    %117 = vector.extract_strided_slice %97 {offsets = [1, 0, 0], sizes = [1, 192, 96], strides = [1, 1, 1]} : vector<3x192x96xbf16> to vector<1x192x96xbf16>
    %118 = vector.shape_cast %117 : vector<1x192x96xbf16> to vector<192x96xbf16>
    %cst_51 = arith.constant dense<0.000000e+00> : vector<64x96xf32>
    %119 = tpu.matmul %116, %118, %cst_51 {dimension_numbers = #tpu.dot_dimension_numbers<[1], [0], [0], [1], [0, 0, 1, 1], [], []>} : vector<64x192xbf16>, vector<192x96xbf16>, vector<64x96xf32> -> vector<64x96xf32>
    %120 = arith.addf %110, %119 : vector<64x96xf32>
    %121 = vector.extract_strided_slice %96 {offsets = [2, 0, 0], sizes = [8, 8, 64], strides = [1, 1, 1]} : vector<10x10x64xf32> to vector<8x8x64xf32>
    %122 = vector.extract_strided_slice %96 {offsets = [2, 1, 0], sizes = [8, 8, 64], strides = [1, 1, 1]} : vector<10x10x64xf32> to vector<8x8x64xf32>
    %123 = vector.extract_strided_slice %96 {offsets = [2, 2, 0], sizes = [8, 8, 64], strides = [1, 1, 1]} : vector<10x10x64xf32> to vector<8x8x64xf32>
    %124 = tpu.concatenate %121, %122, %123 in 2 : vector<8x8x64xf32>, vector<8x8x64xf32>, vector<8x8x64xf32> -> vector<8x8x192xf32>
    %125 = vector.shape_cast %124 : vector<8x8x192xf32> to vector<64x192xf32>
    %126 = arith.truncf %125 : vector<64x192xf32> to vector<64x192xbf16>
    %127 = vector.extract_strided_slice %97 {offsets = [2, 0, 0], sizes = [1, 192, 96], strides = [1, 1, 1]} : vector<3x192x96xbf16> to vector<1x192x96xbf16>
    %128 = vector.shape_cast %127 : vector<1x192x96xbf16> to vector<192x96xbf16>
    %cst_52 = arith.constant dense<0.000000e+00> : vector<64x96xf32>
    %129 = tpu.matmul %126, %128, %cst_52 {dimension_numbers = #tpu.dot_dimension_numbers<[1], [0], [0], [1], [0, 0, 1, 1], [], []>} : vector<64x192xbf16>, vector<192x96xbf16>, vector<64x96xf32> -> vector<64x96xf32>
    %130 = arith.addf %120, %129 : vector<64x96xf32>
    %131 = vector.broadcast %98 : vector<1x96xf32> to vector<64x96xf32>
    %132 = arith.mulf %130, %131 : vector<64x96xf32>
    %133 = vector.broadcast %99 : vector<1x96xf32> to vector<64x96xf32>
    %134 = arith.addf %132, %133 : vector<64x96xf32>
    %cst_53 = arith.constant 0.000000e+00 : f32
    %135 = vector.broadcast %cst_53 : f32 to vector<64x96xf32>
    %136 = arith.maximumf %134, %135 : vector<64x96xf32>
    %cst_54 = arith.constant 0.000000e+00 : f32
    %137 = vector.broadcast %cst_54 : f32 to vector<10x10x96xf32>
    %c0_55 = arith.constant 0 : index
    %c0_56 = arith.constant 0 : index
    %c0_57 = arith.constant 0 : index
    %138 = vector.load %arg21[%c0_55, %c0_56, %c0_57] : memref<10x10x96xf32, #tpu.memory_space<vmem>>, vector<10x10x96xf32>
    tpu.vector_store %arg21[%c0_55, %c0_56, %c0_57], %137 {strides = array<i32>} : memref<10x10x96xf32, #tpu.memory_space<vmem>>, vector<10x10x96xf32>,
    %139 = vector.shape_cast %136 : vector<64x96xf32> to vector<8x8x96xf32>
    %c1_58 = arith.constant 1 : index
    %c1_59 = arith.constant 1 : index
    %c0_60 = arith.constant 0 : index
    %140 = vector.load %arg21[%c1_58, %c1_59, %c0_60] : memref<10x10x96xf32, #tpu.memory_space<vmem>>, vector<8x8x96xf32>
    tpu.vector_store %arg21[%c1_58, %c1_59, %c0_60], %139 {strides = array<i32>} : memref<10x10x96xf32, #tpu.memory_space<vmem>>, vector<8x8x96xf32>,
    %c0_61 = arith.constant 0 : index
    %c0_62 = arith.constant 0 : index
    %c0_63 = arith.constant 0 : index
    %141 = vector.load %arg21[%c0_61, %c0_62, %c0_63] : memref<10x10x96xf32, #tpu.memory_space<vmem>>, vector<10x10x96xf32>
    %c0_64 = arith.constant 0 : index
    %c0_65 = arith.constant 0 : index
    %c0_66 = arith.constant 0 : index
    %142 = vector.load %arg11[%c0_64, %c0_65, %c0_66] : memref<3x288x96xbf16, #tpu.memory_space<vmem>>, vector<3x288x96xbf16>
    %c0_67 = arith.constant 0 : index
    %c0_68 = arith.constant 0 : index
    %143 = vector.load %arg12[%c0_67, %c0_68] : memref<1x96xf32, #tpu.memory_space<vmem>>, vector<1x96xf32>
    %c0_69 = arith.constant 0 : index
    %c0_70 = arith.constant 0 : index
    %144 = vector.load %arg13[%c0_69, %c0_70] : memref<1x96xf32, #tpu.memory_space<vmem>>, vector<1x96xf32>
    %cst_71 = arith.constant 0.000000e+00 : f32
    %145 = vector.broadcast %cst_71 : f32 to vector<64x96xf32>
    %146 = vector.extract_strided_slice %141 {offsets = [0, 0, 0], sizes = [8, 8, 96], strides = [1, 1, 1]} : vector<10x10x96xf32> to vector<8x8x96xf32>
    %147 = vector.extract_strided_slice %141 {offsets = [0, 1, 0], sizes = [8, 8, 96], strides = [1, 1, 1]} : vector<10x10x96xf32> to vector<8x8x96xf32>
    %148 = vector.extract_strided_slice %141 {offsets = [0, 2, 0], sizes = [8, 8, 96], strides = [1, 1, 1]} : vector<10x10x96xf32> to vector<8x8x96xf32>
    %149 = tpu.concatenate %146, %147, %148 in 2 : vector<8x8x96xf32>, vector<8x8x96xf32>, vector<8x8x96xf32> -> vector<8x8x288xf32>
    %150 = vector.shape_cast %149 : vector<8x8x288xf32> to vector<64x288xf32>
    %151 = arith.truncf %150 : vector<64x288xf32> to vector<64x288xbf16>
    %152 = vector.extract_strided_slice %142 {offsets = [0, 0, 0], sizes = [1, 288, 96], strides = [1, 1, 1]} : vector<3x288x96xbf16> to vector<1x288x96xbf16>
    %153 = vector.shape_cast %152 : vector<1x288x96xbf16> to vector<288x96xbf16>
    %cst_72 = arith.constant dense<0.000000e+00> : vector<64x96xf32>
    %154 = tpu.matmul %151, %153, %cst_72 {dimension_numbers = #tpu.dot_dimension_numbers<[1], [0], [0], [1], [0, 0, 1, 1], [], []>} : vector<64x288xbf16>, vector<288x96xbf16>, vector<64x96xf32> -> vector<64x96xf32>
    %155 = arith.addf %145, %154 : vector<64x96xf32>
    %156 = vector.extract_strided_slice %141 {offsets = [1, 0, 0], sizes = [8, 8, 96], strides = [1, 1, 1]} : vector<10x10x96xf32> to vector<8x8x96xf32>
    %157 = vector.extract_strided_slice %141 {offsets = [1, 1, 0], sizes = [8, 8, 96], strides = [1, 1, 1]} : vector<10x10x96xf32> to vector<8x8x96xf32>
    %158 = vector.extract_strided_slice %141 {offsets = [1, 2, 0], sizes = [8, 8, 96], strides = [1, 1, 1]} : vector<10x10x96xf32> to vector<8x8x96xf32>
    %159 = tpu.concatenate %156, %157, %158 in 2 : vector<8x8x96xf32>, vector<8x8x96xf32>, vector<8x8x96xf32> -> vector<8x8x288xf32>
    %160 = vector.shape_cast %159 : vector<8x8x288xf32> to vector<64x288xf32>
    %161 = arith.truncf %160 : vector<64x288xf32> to vector<64x288xbf16>
    %162 = vector.extract_strided_slice %142 {offsets = [1, 0, 0], sizes = [1, 288, 96], strides = [1, 1, 1]} : vector<3x288x96xbf16> to vector<1x288x96xbf16>
    %163 = vector.shape_cast %162 : vector<1x288x96xbf16> to vector<288x96xbf16>
    %cst_73 = arith.constant dense<0.000000e+00> : vector<64x96xf32>
    %164 = tpu.matmul %161, %163, %cst_73 {dimension_numbers = #tpu.dot_dimension_numbers<[1], [0], [0], [1], [0, 0, 1, 1], [], []>} : vector<64x288xbf16>, vector<288x96xbf16>, vector<64x96xf32> -> vector<64x96xf32>
    %165 = arith.addf %155, %164 : vector<64x96xf32>
    %166 = vector.extract_strided_slice %141 {offsets = [2, 0, 0], sizes = [8, 8, 96], strides = [1, 1, 1]} : vector<10x10x96xf32> to vector<8x8x96xf32>
    %167 = vector.extract_strided_slice %141 {offsets = [2, 1, 0], sizes = [8, 8, 96], strides = [1, 1, 1]} : vector<10x10x96xf32> to vector<8x8x96xf32>
    %168 = vector.extract_strided_slice %141 {offsets = [2, 2, 0], sizes = [8, 8, 96], strides = [1, 1, 1]} : vector<10x10x96xf32> to vector<8x8x96xf32>
    %169 = tpu.concatenate %166, %167, %168 in 2 : vector<8x8x96xf32>, vector<8x8x96xf32>, vector<8x8x96xf32> -> vector<8x8x288xf32>
    %170 = vector.shape_cast %169 : vector<8x8x288xf32> to vector<64x288xf32>
    %171 = arith.truncf %170 : vector<64x288xf32> to vector<64x288xbf16>
    %172 = vector.extract_strided_slice %142 {offsets = [2, 0, 0], sizes = [1, 288, 96], strides = [1, 1, 1]} : vector<3x288x96xbf16> to vector<1x288x96xbf16>
    %173 = vector.shape_cast %172 : vector<1x288x96xbf16> to vector<288x96xbf16>
    %cst_74 = arith.constant dense<0.000000e+00> : vector<64x96xf32>
    %174 = tpu.matmul %171, %173, %cst_74 {dimension_numbers = #tpu.dot_dimension_numbers<[1], [0], [0], [1], [0, 0, 1, 1], [], []>} : vector<64x288xbf16>, vector<288x96xbf16>, vector<64x96xf32> -> vector<64x96xf32>
    %175 = arith.addf %165, %174 : vector<64x96xf32>
    %176 = vector.broadcast %143 : vector<1x96xf32> to vector<64x96xf32>
    %177 = arith.mulf %175, %176 : vector<64x96xf32>
    %178 = vector.broadcast %144 : vector<1x96xf32> to vector<64x96xf32>
    %179 = arith.addf %177, %178 : vector<64x96xf32>
    %cst_75 = arith.constant 0.000000e+00 : f32
    %180 = vector.broadcast %cst_75 : f32 to vector<64x96xf32>
    %181 = arith.maximumf %179, %180 : vector<64x96xf32>
    %cst_76 = arith.constant 0.000000e+00 : f32
    %182 = vector.broadcast %cst_76 : f32 to vector<10x10x32xf32>
    %c0_77 = arith.constant 0 : index
    %c0_78 = arith.constant 0 : index
    %c0_79 = arith.constant 0 : index
    %183 = vector.load %arg18[%c0_77, %c0_78, %c0_79] : memref<10x10x32xf32, #tpu.memory_space<vmem>>, vector<10x10x32xf32>
    tpu.vector_store %arg18[%c0_77, %c0_78, %c0_79], %182 {strides = array<i32>} : memref<10x10x32xf32, #tpu.memory_space<vmem>>, vector<10x10x32xf32>,
    %c1_80 = arith.constant 1 : index
    %c1_81 = arith.constant 1 : index
    %c0_82 = arith.constant 0 : index
    %184 = vector.load %arg18[%c1_80, %c1_81, %c0_82] : memref<10x10x32xf32, #tpu.memory_space<vmem>>, vector<8x8x32xf32>
    tpu.vector_store %arg18[%c1_80, %c1_81, %c0_82], %1 {strides = array<i32>} : memref<10x10x32xf32, #tpu.memory_space<vmem>>, vector<8x8x32xf32>,
    %c0_83 = arith.constant 0 : index
    %c0_84 = arith.constant 0 : index
    %c0_85 = arith.constant 0 : index
    %185 = vector.load %arg18[%c0_83, %c0_84, %c0_85] : memref<10x10x32xf32, #tpu.memory_space<vmem>>, vector<10x10x32xf32>
    %186 = vector.extract_strided_slice %185 {offsets = [0, 0, 0], sizes = [10, 8, 32], strides = [1, 1, 1]} : vector<10x10x32xf32> to vector<10x8x32xf32>
    %187 = vector.extract_strided_slice %185 {offsets = [0, 1, 0], sizes = [10, 8, 32], strides = [1, 1, 1]} : vector<10x10x32xf32> to vector<10x8x32xf32>
    %188 = arith.addf %186, %187 : vector<10x8x32xf32>
    %189 = vector.extract_strided_slice %185 {offsets = [0, 2, 0], sizes = [10, 8, 32], strides = [1, 1, 1]} : vector<10x10x32xf32> to vector<10x8x32xf32>
    %190 = arith.addf %188, %189 : vector<10x8x32xf32>
    %191 = vector.extract_strided_slice %190 {offsets = [0, 0, 0], sizes = [8, 8, 32], strides = [1, 1, 1]} : vector<10x8x32xf32> to vector<8x8x32xf32>
    %192 = vector.extract_strided_slice %190 {offsets = [1, 0, 0], sizes = [8, 8, 32], strides = [1, 1, 1]} : vector<10x8x32xf32> to vector<8x8x32xf32>
    %193 = arith.addf %191, %192 : vector<8x8x32xf32>
    %194 = vector.extract_strided_slice %190 {offsets = [2, 0, 0], sizes = [8, 8, 32], strides = [1, 1, 1]} : vector<10x8x32xf32> to vector<8x8x32xf32>
    %195 = arith.addf %193, %194 : vector<8x8x32xf32>
    %cst_86 = arith.constant 0.111111112 : f32
    %196 = vector.broadcast %cst_86 : f32 to vector<8x8x32xf32>
    %197 = arith.mulf %195, %196 : vector<8x8x32xf32>
    %198 = vector.shape_cast %197 : vector<8x8x32xf32> to vector<64x32xf32>
    %199 = arith.truncf %198 : vector<64x32xf32> to vector<64x32xbf16>
    %c0_87 = arith.constant 0 : index
    %c0_88 = arith.constant 0 : index
    %200 = vector.load %arg14[%c0_87, %c0_88] : memref<32x32xbf16, #tpu.memory_space<vmem>>, vector<32x32xbf16>
    %cst_89 = arith.constant dense<0.000000e+00> : vector<64x32xf32>
    %201 = tpu.matmul %199, %200, %cst_89 {dimension_numbers = #tpu.dot_dimension_numbers<[1], [0], [0], [1], [0, 0, 1, 1], [], []>} : vector<64x32xbf16>, vector<32x32xbf16>, vector<64x32xf32> -> vector<64x32xf32>
    %c0_90 = arith.constant 0 : index
    %c0_91 = arith.constant 0 : index
    %202 = vector.load %arg15[%c0_90, %c0_91] : memref<1x32xf32, #tpu.memory_space<vmem>>, vector<1x32xf32>
    %203 = vector.broadcast %202 : vector<1x32xf32> to vector<64x32xf32>
    %204 = arith.mulf %201, %203 : vector<64x32xf32>
    %c0_92 = arith.constant 0 : index
    %c0_93 = arith.constant 0 : index
    %205 = vector.load %arg16[%c0_92, %c0_93] : memref<1x32xf32, #tpu.memory_space<vmem>>, vector<1x32xf32>
    %206 = vector.broadcast %205 : vector<1x32xf32> to vector<64x32xf32>
    %207 = arith.addf %204, %206 : vector<64x32xf32>
    %cst_94 = arith.constant 0.000000e+00 : f32
    %208 = vector.broadcast %cst_94 : f32 to vector<64x32xf32>
    %209 = arith.maximumf %207, %208 : vector<64x32xf32>
    %210 = tpu.concatenate %14, %91, %181, %209 in 1 : vector<64x64xf32>, vector<64x64xf32>, vector<64x96xf32>, vector<64x32xf32> -> vector<64x256xf32>
    %211 = vector.shape_cast %210 : vector<64x256xf32> to vector<8x8x256xf32>
    %c0_95 = arith.constant 0 : index
    %c0_96 = arith.constant 0 : index
    %c0_97 = arith.constant 0 : index
    %c0_98 = arith.constant 0 : index
    %212 = vector.load %arg17[%c0_95, %c0_96, %c0_97, %c0_98] : memref<1x8x8x256xf32, #tpu.memory_space<vmem>>, vector<1x8x8x256xf32>
    %213 = vector.shape_cast %212 : vector<1x8x8x256xf32> to vector<8x8x256xf32>
    %214 = vector.shape_cast %211 : vector<8x8x256xf32> to vector<1x8x8x256xf32>
    tpu.vector_store %arg17[%c0_95, %c0_96, %c0_97, %c0_98], %214 {strides = array<i32>} : memref<1x8x8x256xf32, #tpu.memory_space<vmem>>, vector<1x8x8x256xf32>,
    return
  }
  func.func @transform_0(%arg0: i32) -> (i32, i32, i32, i32) {
    %c0_i32 = arith.constant 0 : i32
    %c0_i32_0 = arith.constant 0 : i32
    %c0_i32_1 = arith.constant 0 : i32
    %c0_i32_2 = arith.constant 0 : i32
    return %arg0, %c0_i32, %c0_i32_0, %c0_i32_1 : i32, i32, i32, i32
  }
  func.func @transform_1(%arg0: i32) -> (i32, i32) {
    %c0_i32 = arith.constant 0 : i32
    %c0_i32_0 = arith.constant 0 : i32
    %c0_i32_1 = arith.constant 0 : i32
    return %c0_i32, %c0_i32_0 : i32, i32
  }
  func.func @transform_2(%arg0: i32) -> (i32, i32) {
    %c0_i32 = arith.constant 0 : i32
    %c0_i32_0 = arith.constant 0 : i32
    %c0_i32_1 = arith.constant 0 : i32
    return %c0_i32, %c0_i32_0 : i32, i32
  }
  func.func @transform_3(%arg0: i32) -> (i32, i32) {
    %c0_i32 = arith.constant 0 : i32
    %c0_i32_0 = arith.constant 0 : i32
    %c0_i32_1 = arith.constant 0 : i32
    return %c0_i32, %c0_i32_0 : i32, i32
  }
  func.func @transform_4(%arg0: i32) -> (i32, i32, i32) {
    %c0_i32 = arith.constant 0 : i32
    %c0_i32_0 = arith.constant 0 : i32
    %c0_i32_1 = arith.constant 0 : i32
    %c0_i32_2 = arith.constant 0 : i32
    return %c0_i32, %c0_i32_0, %c0_i32_1 : i32, i32, i32
  }
  func.func @transform_5(%arg0: i32) -> (i32, i32) {
    %c0_i32 = arith.constant 0 : i32
    %c0_i32_0 = arith.constant 0 : i32
    %c0_i32_1 = arith.constant 0 : i32
    return %c0_i32, %c0_i32_0 : i32, i32
  }
  func.func @transform_6(%arg0: i32) -> (i32, i32) {
    %c0_i32 = arith.constant 0 : i32
    %c0_i32_0 = arith.constant 0 : i32
    %c0_i32_1 = arith.constant 0 : i32
    return %c0_i32, %c0_i32_0 : i32, i32
  }
  func.func @transform_7(%arg0: i32) -> (i32, i32, i32) {
    %c0_i32 = arith.constant 0 : i32
    %c0_i32_0 = arith.constant 0 : i32
    %c0_i32_1 = arith.constant 0 : i32
    %c0_i32_2 = arith.constant 0 : i32
    return %c0_i32, %c0_i32_0, %c0_i32_1 : i32, i32, i32
  }
  func.func @transform_8(%arg0: i32) -> (i32, i32) {
    %c0_i32 = arith.constant 0 : i32
    %c0_i32_0 = arith.constant 0 : i32
    %c0_i32_1 = arith.constant 0 : i32
    return %c0_i32, %c0_i32_0 : i32, i32
  }
  func.func @transform_9(%arg0: i32) -> (i32, i32) {
    %c0_i32 = arith.constant 0 : i32
    %c0_i32_0 = arith.constant 0 : i32
    %c0_i32_1 = arith.constant 0 : i32
    return %c0_i32, %c0_i32_0 : i32, i32
  }
  func.func @transform_10(%arg0: i32) -> (i32, i32, i32) {
    %c0_i32 = arith.constant 0 : i32
    %c0_i32_0 = arith.constant 0 : i32
    %c0_i32_1 = arith.constant 0 : i32
    %c0_i32_2 = arith.constant 0 : i32
    return %c0_i32, %c0_i32_0, %c0_i32_1 : i32, i32, i32
  }
  func.func @transform_11(%arg0: i32) -> (i32, i32) {
    %c0_i32 = arith.constant 0 : i32
    %c0_i32_0 = arith.constant 0 : i32
    %c0_i32_1 = arith.constant 0 : i32
    return %c0_i32, %c0_i32_0 : i32, i32
  }
  func.func @transform_12(%arg0: i32) -> (i32, i32) {
    %c0_i32 = arith.constant 0 : i32
    %c0_i32_0 = arith.constant 0 : i32
    %c0_i32_1 = arith.constant 0 : i32
    return %c0_i32, %c0_i32_0 : i32, i32
  }
  func.func @transform_13(%arg0: i32) -> (i32, i32) {
    %c0_i32 = arith.constant 0 : i32
    %c0_i32_0 = arith.constant 0 : i32
    %c0_i32_1 = arith.constant 0 : i32
    return %c0_i32, %c0_i32_0 : i32, i32
  }
  func.func @transform_14(%arg0: i32) -> (i32, i32) {
    %c0_i32 = arith.constant 0 : i32
    %c0_i32_0 = arith.constant 0 : i32
    %c0_i32_1 = arith.constant 0 : i32
    return %c0_i32, %c0_i32_0 : i32, i32
  }
  func.func @transform_15(%arg0: i32) -> (i32, i32) {
    %c0_i32 = arith.constant 0 : i32
    %c0_i32_0 = arith.constant 0 : i32
    %c0_i32_1 = arith.constant 0 : i32
    return %c0_i32, %c0_i32_0 : i32, i32
  }
  func.func @transform_16(%arg0: i32) -> (i32, i32, i32, i32) {
    %c0_i32 = arith.constant 0 : i32
    %c0_i32_0 = arith.constant 0 : i32
    %c0_i32_1 = arith.constant 0 : i32
    %c0_i32_2 = arith.constant 0 : i32
    return %arg0, %c0_i32, %c0_i32_0, %c0_i32_1 : i32, i32, i32, i32
  }
}

</mosaic_0001>

<bundles_post_ra>
// kernel: inception_a_forward.1
= control target key start
LH: loop header
LB: loop body
LE: loop exit
PB: predicated region body
PF: predicated region fallthrough
CT: control target
= control target key end

     0   :  { %s7847_s0 = inlined_call_operand.vmem [shape: f32[2,8,8,32], index: 0, kind: input, shape index: {}]   ;;  %s7848_s1 = inlined_call_operand.vmem [shape: bf16[32,176], index: 1, kind: input, shape index: {}]   ;;  %s7849_s2 = inlined_call_operand.vmem [shape: f32[1,176], index: 2, kind: input, shape index: {}]   ;;  %s7850_s3 = inlined_call_operand.vmem [shape: f32[1,176], index: 3, kind: input, shape index: {}]   ;;  %s7851_s4 = inlined_call_operand.vmem [shape: bf16[5,240,64], index: 4, kind: input, shape index: {}]   ;;  %s7852_s5 = inlined_call_operand.vmem [shape: f32[1,64], index: 5, kind: input, shape index: {}]   ;;  %s7853_s6 = inlined_call_operand.vmem [shape: f32[1,64], index: 6, kind: input, shape index: {}]   ;;  %s7854_s7 = inlined_call_operand.vmem [shape: bf16[3,192,96], index: 7, kind: input, shape index: {}]   ;;  %s7855_s8 = inlined_call_operand.vmem [shape: f32[1,96], index: 8, kind: input, shape index: {}]   ;;  %s7856_s9 = inlined_call_operand.vmem [shape: f32[1,96], index: 9, kind: input, shape index: {}]   ;;  %s7857_s10 = inlined_call_operand.vmem [shape: bf16[3,288,96], index: 10, kind: input, shape index: {}]   ;;  %s7858_s11 = inlined_call_operand.vmem [shape: f32[1,96], index: 11, kind: input, shape index: {}]   ;;  %s7859_s12 = inlined_call_operand.vmem [shape: f32[1,96], index: 12, kind: input, shape index: {}]   ;;  %s7860_s13 = inlined_call_operand.vmem [shape: bf16[32,32], index: 13, kind: input, shape index: {}]   ;;  %s7861_s14 = inlined_call_operand.vmem [shape: f32[1,32], index: 14, kind: input, shape index: {}]   ;;  %s7862_s15 = inlined_call_operand.vmem [shape: f32[1,32], index: 15, kind: input, shape index: {}]   ;;  %s7863_s16 = inlined_call_operand.hbm [shape: f32[2,8,8,256], index: 16, kind: output, shape index: {}]  }
   0x1   :  { %7878 = sst [smem:[#allocation15_spill]] %s7847_s0 }
   0x2   :  { %7879 = sst [smem:[#allocation16_spill]] %s7848_s1 }
   0x3   :  { %7880 = sst [smem:[#allocation17_spill]] %s7849_s2 }
   0x4   :  { %7881 = sst [smem:[#allocation18_spill]] %s7850_s3 }
   0x5   :  { %7882 = sst [smem:[#allocation19_spill]] %s7851_s4 }
   0x6   :  { %7883 = sst [smem:[#allocation20_spill]] %s7854_s7 }
   0x7   :  { %21 = vsyncpa [#allocation7], 0 }
   0x8   :  { %23 = vsyncpa [#allocation7 + $0x1], 0  ;;  %s5758_s21 = smov 0   ;;  %s5760_s22 = smov 0  }
   0x9   :  { %s5762_s23 = smov 0   ;;  %s5764_s24 = smov 0  }
   0xa LB: > { %7884 = sst [smem:[#allocation9_spill]] %s5659_s23  ;;  %s5779_s25 = sadd.s32 4294967295, %s5663_s24   ;;  %s5663_s24 = sphi %s5764_s24, %s7911_s24   ;;  %s5659_s23 = sphi %s5762_s23, %s7908_s23   ;;  %s5655_s22 = sphi %s5760_s22, %s7910_s22   ;;  %s5651_s21 = sphi %s5758_s21, %s7909_s21  }
   0xb   : > { %s4659_s26 = sadd.s32 4294967294, %s5663_s24   ;;  %s5783_s27 = sadd.s32 1, %s5663_s24  }
   0xc   : > { %s377_s28 = sadd.s32 1, %s5659_s23  ;;  %s374_s29 = ssub.s32 %s5663_s24, %s5783_s27 }
   0xd   : > { %p387_p0 = scmp.ne.s32.totalorder %s5659_s23, %s5655_s22  ;;  %p375_p1 = scmp.eq.s32.totalorder %s374_s29, 0 }
   0xe   : > { %p388_p2 = scmp.eq.s32.totalorder %s5779_s25, 1  ;;  %p393_p3 = scmp.ne.s32.totalorder %s5655_s22, %s5651_s21 }
   0xf   : > { %p394_p4 = scmp.eq.s32.totalorder %s4659_s26, 1  ;;  %p4662_p7 = scmp.ge.s32.totalorder %s5663_s24, 1 }
  0x10   : > { %s5794_s30 = scalar_select %p375_p1, %s5659_s23, %s377_s28  }
  0x11   : > { %p5796_p5 = por %p388_p2, %p387_p0  ;;  %p5800_p6 = por %p394_p4, %p393_p3 }
  0x12   : > { %7885 = sst [smem:[#allocation10_spill]] %s5794_s30  ;;  %p465_p8 = scmp.lt.s32.totalorder %s5663_s24, 3 }
  0x14   : > { %p466_p9 = pnand %p4662_p7, %p465_p8 }
  0x16   : > { %469 = sbr.rel (%p466_p9) target bundleno = 1440 (0x5a0), region = 84 }
  0x1d   : > { %s7888_s1 = sld [smem:[#allocation16_spill]]  ;;  %p515_p10 = scmp.lt.s32.totalorder %s5779_s25, 1  ;;  %v5665_v2 = vmov 0   ;;  %vm557_vm0 = vcmask 261120   ;;  %vm4159_vm1 = vcmask 254976   ;;  %v5666_v5 = vmov 0.0  }
  0x1e   : > { %602 = vmatprep.mubr.bf16.mxu1 %v5665_v2  ;;  %2613 = vmatprep.subr.bf16.mxu0 %v5665_v2  ;;  %4161 = vst.msk [vmem:[#allocation2 + $0x10] sm:$0xff] %vm557_vm0, %v5666_v5  ;;  %4163 = vst.msk [vmem:[#allocation2 + $0x20] sm:$0xff] %vm557_vm0, %v5666_v5  ;;  %s7889_s29 = sld [smem:[#allocation15_spill]]  ;;  %v645_v18 = vlaneseq  ;;  %s7890_s2 = sld [smem:[#allocation17_spill]]  ;;  %vm1196_vm2 = vcmask 523264   ;;  %vm2217_vm3 = vcmask 517120  }
  0x1f   : > { %s516_s30 = scalar_select %p515_p10, %s5779_s25, 1  ;;  %4158 = vst.msk [vmem:[#allocation2] sm:$0xff] %vm557_vm0, %v5666_v5  ;;  %4165 = vst.msk [vmem:[#allocation2 + $0x30] sm:$0xff] %vm557_vm0, %v5666_v5  ;;  %vm1187_vm4 = vcmask 130048   ;;  %vm1023_vm5 = vcmask 1045504   ;;  %vm974_vm6 = vcmask 1046528  }
  0x20   : > { %4167 = vst.msk [vmem:[#allocation2 + $0x40] sm:$0xff] %vm557_vm0, %v5666_v5  ;;  %4169 = vst.msk [vmem:[#allocation2 + $0x50] sm:$0xff] %vm557_vm0, %v5666_v5  ;;  %v646_v19 = vshrl.u32 %v645_v18, 7  ;;  %s7891_s3 = sld [smem:[#allocation18_spill]]  ;;  %s7864_s28 = smov 16   ;;  %vm715_vm7 = vcmask 392192  }
  0x21   : > { %4171 = vst.msk [vmem:[#allocation2 + $0x60] sm:$0xff] %vm557_vm0, %v5666_v5  ;;  %4173 = vst.msk [vmem:[#allocation2 + $0x70] sm:$0xff] %vm557_vm0, %v5666_v5  ;;  %s4902_s20 = sshll.u32 %s516_s30, 6  ;;  %s7896_s7 = sld [smem:[#allocation20_spill]]  ;;  %vm717_vm8 = vcmask 388096   ;;  %vm1072_vm9 = vcmask 1044480  }
  0x22   : > { %4175 = vst.msk [vmem:[#allocation2 + $0x80] sm:$0xff] %vm557_vm0, %v5666_v5  ;;  %4177 = vst.msk [vmem:[#allocation2 + $0x90] sm:$0xff] %vm557_vm0, %v5666_v5  ;;  %v647_v20 = vsub.s32 0, %v646_v19  ;;  %v651_v22 = vsub.s32 1, %v646_v19  ;;  %s7897_s4 = sld [smem:[#allocation19_spill]]  ;;  %vm1121_vm10 = vcmask 1043456  }
  0x23   : > { %v5428_v0 = vld [vmem:[%s7888_s1 + $0x4] ss:$8 sps:$4 sm:$0xff]   ;;  %v5430_v1 = vld [vmem:[%s7888_s1] ss:$8 sps:$4 sm:$0xff]   ;;  %v5431_v3 = vld [vmem:[%s7888_s1 + $0x14] ss:$8 sps:$4 sm:$0xff]  }
  0x24   : > { %570 = vmatprep.subr.bf16.mxu1 %v5428_v0  ;;  %v5433_v4 = vld [vmem:[%s7888_s1 + $0x10] ss:$8 sps:$4 sm:$0xff]   ;;  %4162 = vst.msk [vmem:[#allocation2 + $0x18] sm:$0x3] %vm4159_vm1, %v5666_v5  ;;  %4164 = vst.msk [vmem:[#allocation2 + $0x28] sm:$0x3] %vm4159_vm1, %v5666_v5  ;;  %s519_s18 = scalar_lea.vmem %s7889_s29, %s4902_s20 }
  0x25   : > { %571 = vmatpush1.bf16.msra.mxu1 %v5430_v1  ;;  %4160 = vst.msk [vmem:[#allocation2 + $0x8] sm:$0x3] %vm4159_vm1, %v5666_v5  ;;  %4166 = vst.msk [vmem:[#allocation2 + $0x38] sm:$0x3] %vm4159_vm1, %v5666_v5  ;;  %v521_v6 = vld [vmem:[%s519_s18] sm:$0xff]  ;;  %v522_v7 = vld [vmem:[%s519_s18 + $0x8] sm:$0xff] }
  0x26   : > { %4168 = vst.msk [vmem:[#allocation2 + $0x48] sm:$0x3] %vm4159_vm1, %v5666_v5  ;;  %4170 = vst.msk [vmem:[#allocation2 + $0x58] sm:$0x3] %vm4159_vm1, %v5666_v5  ;;  %572 = vmatprep.subr.bf16.mxu1 %v5431_v3  ;;  %v523_v8 = vld [vmem:[%s519_s18 + $0x10] sm:$0xff]  ;;  %v529_v9 = vpack.c.bf16 %v522_v7, %v521_v6  ;;  %v524_v10 = vld [vmem:[%s519_s18 + $0x18] sm:$0xff] }
  0x27   : > { %4172 = vst.msk [vmem:[#allocation2 + $0x68] sm:$0x3] %vm4159_vm1, %v5666_v5  ;;  %4174 = vst.msk [vmem:[#allocation2 + $0x78] sm:$0x3] %vm4159_vm1, %v5666_v5  ;;  %v525_v11 = vld [vmem:[%s519_s18 + $0x20] sm:$0xff]  ;;  %v526_v12 = vld [vmem:[%s519_s18 + $0x28] sm:$0xff]  ;;  %v530_v15 = vpack.c.bf16 %v524_v10, %v523_v8 }
  0x28   : > { %4176 = vst.msk [vmem:[#allocation2 + $0x88] sm:$0x3] %vm4159_vm1, %v5666_v5  ;;  %4178 = vst.msk [vmem:[#allocation2 + $0x98] sm:$0x3] %vm4159_vm1, %v5666_v5  ;;  %v527_v13 = vld [vmem:[%s519_s18 + $0x30] sm:$0xff]  ;;  %v528_v14 = vld [vmem:[%s519_s18 + $0x38] sm:$0xff]  ;;  %v531_v16 = vpack.c.bf16 %v526_v12, %v525_v11 }
  0x29   : > { %573 = vmatpush1.bf16.msra.mxu1 %v5433_v4  ;;  %4180 = vst.msk [vmem:[#allocation2 + $0x11] sm:$0xff] %vm557_vm0, %v521_v6  ;;  %4181 = vst.msk [vmem:[#allocation2 + $0x21] sm:$0xff] %vm557_vm0, %v522_v7  ;;  %v532_v17 = vpack.c.bf16 %v528_v14, %v527_v13  ;;  %v643_v21 = vld [vmem:[%s7890_s2] sm:$0x3]  ;;  %s7866_s29 = smov 64   ;;  %vm1178_vm11 = vcmask 785408  }
  0x2a   : > { %4182 = vst.msk [vmem:[#allocation2 + $0x31] sm:$0xff] %vm557_vm0, %v523_v8  ;;  %4183 = vst.msk [vmem:[#allocation2 + $0x41] sm:$0xff] %vm557_vm0, %v524_v10  ;;  %1354 = vmatprep.subr.bf16.mxu1 %v5665_v2  ;;  %v671_v23 = vld [vmem:[%s7891_s3] sm:$0x3]  ;;  %v5927_v24 = vrot.slane %v643_v21, %v647_v20  ;;  %v5929_v25 = vrot.slane %v643_v21, %v651_v22  ;;  %s7898_s18 = smov 16   ;;  %s7870_s30 = smov 96  }
  0x2b   : > { %4184 = vst.msk [vmem:[#allocation2 + $0x51] sm:$0xff] %vm557_vm0, %v525_v11  ;;  %4185 = vst.msk [vmem:[#allocation2 + $0x61] sm:$0xff] %vm557_vm0, %v526_v12  ;;  %v5931_v26 = vrot.slane %v671_v23, %v647_v20  ;;  %v5934_v30 = vrot.slane %v671_v23, %v651_v22  ;;  %s7868_s1 = smov 48   ;;  %vm1341_vm12 = vcmask 916480   ;;  %vm3027_vm13 = vcmask 779264   ;;  %s7900_s23 = smov 96  }
  0x2c   : > { %4186 = vst.msk [vmem:[#allocation2 + $0x71] sm:$0xff] %vm557_vm0, %v527_v13  ;;  %4187 = vst.msk [vmem:[#allocation2 + $0x81] sm:$0xff] %vm557_vm0, %v528_v14  ;;  %4670 = vmatmul.mubr.msk.bf16.vlgmr.msra.gmra.mrb[0].mxu1 %vm557_vm0, %v529_v9  ;;  %s7901_s20 = smov 48   ;;  %s4903_s2 = sshll.u32 %s5779_s25, 11 }
  0x2d   : > { %612 = vmatprep.mubr.bf16.mxu1 %v5665_v2  ;;  %2219 = vst.msk [vmem:[#allocation4 + $0x10] sm:$0xff] %vm1196_vm2, %v5666_v5  ;;  %2216 = vst.msk [vmem:[#allocation4] sm:$0xff] %vm1196_vm2, %v5666_v5  ;;  %s7796_s19 = scalar_lea.hbm %s7863_s16, %s4903_s2  ;;  %s5671_s3 = smov [#allocation6]  }
  0x2e   : > { %2220 = vst.msk [vmem:[#allocation4 + $0x18] sm:$0x3] %vm2217_vm3, %v5666_v5  ;;  %2218 = vst.msk [vmem:[#allocation4 + $0x8] sm:$0x3] %vm2217_vm3, %v5666_v5 }
  0x2f   : > { %2221 = vst.msk [vmem:[#allocation4 + $0x20] sm:$0xff] %vm1196_vm2, %v5666_v5  ;;  %2223 = vst.msk [vmem:[#allocation4 + $0x30] sm:$0xff] %vm1196_vm2, %v5666_v5 }
  0x30   : > { %2222 = vst.msk [vmem:[#allocation4 + $0x28] sm:$0x3] %vm2217_vm3, %v5666_v5  ;;  %2224 = vst.msk [vmem:[#allocation4 + $0x38] sm:$0x3] %vm2217_vm3, %v5666_v5 }
  0x31   : > { %2225 = vst.msk [vmem:[#allocation4 + $0x40] sm:$0xff] %vm1196_vm2, %v5666_v5  ;;  %2227 = vst.msk [vmem:[#allocation4 + $0x50] sm:$0xff] %vm1196_vm2, %v5666_v5 }
  0x32   : > { %2226 = vst.msk [vmem:[#allocation4 + $0x48] sm:$0x3] %vm2217_vm3, %v5666_v5  ;;  %2228 = vst.msk [vmem:[#allocation4 + $0x58] sm:$0x3] %vm2217_vm3, %v5666_v5 }
  0x33   : > { %2229 = vst.msk [vmem:[#allocation4 + $0x60] sm:$0xff] %vm1196_vm2, %v5666_v5  ;;  %2231 = vst.msk [vmem:[#allocation4 + $0x70] sm:$0xff] %vm1196_vm2, %v5666_v5 }
  0x34   : > { %4671 = vmatmul.mubr.msk.bf16.gmra.mrb[4].mxu1 %vm557_vm0, %v530_v15  ;;  %2230 = vst.msk [vmem:[#allocation4 + $0x68] sm:$0x3] %vm2217_vm3, %v5666_v5  ;;  %2232 = vst.msk [vmem:[#allocation4 + $0x78] sm:$0x3] %vm2217_vm3, %v5666_v5 }
  0x35   : > { %622 = vmatprep.mubr.bf16.mxu1 %v5665_v2  ;;  %2233 = vst.msk [vmem:[#allocation4 + $0x80] sm:$0xff] %vm1196_vm2, %v5666_v5  ;;  %2235 = vst.msk [vmem:[#allocation4 + $0x90] sm:$0xff] %vm1196_vm2, %v5666_v5 }
  0x36   : > { %2234 = vst.msk [vmem:[#allocation4 + $0x88] sm:$0x3] %vm2217_vm3, %v5666_v5  ;;  %2236 = vst.msk [vmem:[#allocation4 + $0x98] sm:$0x3] %vm2217_vm3, %v5666_v5 }
  0x37   : > { %721 = vst.msk [vmem:[#allocation3 + $0x20] sm:$0xff] %vm715_vm7, %v5666_v5  ;;  %716 = vst.msk [vmem:[#allocation3] sm:$0xff] %vm715_vm7, %v5666_v5 }
  0x38   : > { %722 = vst.msk [vmem:[#allocation3 + $0x28] sm:$0xf] %vm717_vm8, %v5666_v5  ;;  %718 = vst.msk [vmem:[#allocation3 + $0x8] sm:$0xf] %vm717_vm8, %v5666_v5 }
  0x39   : > { %719 = vst.msk [vmem:[#allocation3 + $0x10] sm:$0xff] %vm715_vm7, %v5666_v5  ;;  %723 = vst.msk [vmem:[#allocation3 + $0x30] sm:$0xff] %vm715_vm7, %v5666_v5 }
  0x3a   : > { %720 = vst.msk [vmem:[#allocation3 + $0x18] sm:$0xf] %vm717_vm8, %v5666_v5  ;;  %724 = vst.msk [vmem:[#allocation3 + $0x38] sm:$0xf] %vm717_vm8, %v5666_v5 }
  0x3b   : > { %725 = vst.msk [vmem:[#allocation3 + $0x40] sm:$0xff] %vm715_vm7, %v5666_v5  ;;  %727 = vst.msk [vmem:[#allocation3 + $0x50] sm:$0xff] %vm715_vm7, %v5666_v5 }
  0x3c   : > { %4672 = vmatmul.mubr.msk.bf16.gmra.mrb[8].mxu1 %vm557_vm0, %v531_v16  ;;  %726 = vst.msk [vmem:[#allocation3 + $0x48] sm:$0xf] %vm717_vm8, %v5666_v5  ;;  %728 = vst.msk [vmem:[#allocation3 + $0x58] sm:$0xf] %vm717_vm8, %v5666_v5 }
  0x3d   : > { %632 = vmatprep.mubr.bf16.mxu1 %v5665_v2  ;;  %729 = vst.msk [vmem:[#allocation3 + $0x60] sm:$0xff] %vm715_vm7, %v5666_v5  ;;  %731 = vst.msk [vmem:[#allocation3 + $0x70] sm:$0xff] %vm715_vm7, %v5666_v5 }
  0x3e   : > { %730 = vst.msk [vmem:[#allocation3 + $0x68] sm:$0xf] %vm717_vm8, %v5666_v5  ;;  %732 = vst.msk [vmem:[#allocation3 + $0x78] sm:$0xf] %vm717_vm8, %v5666_v5 }
  0x3f   : > { %733 = vst.msk [vmem:[#allocation3 + $0x80] sm:$0xff] %vm715_vm7, %v5666_v5  ;;  %735 = vst.msk [vmem:[#allocation3 + $0x90] sm:$0xff] %vm715_vm7, %v5666_v5 }
  0x40   : > { %734 = vst.msk [vmem:[#allocation3 + $0x88] sm:$0xf] %vm717_vm8, %v5666_v5  ;;  %736 = vst.msk [vmem:[#allocation3 + $0x98] sm:$0xf] %vm717_vm8, %v5666_v5 }
  0x41   : > { %737 = vst.msk [vmem:[#allocation3 + $0xa0] sm:$0xff] %vm715_vm7, %v5666_v5  ;;  %739 = vst.msk [vmem:[#allocation3 + $0xb0] sm:$0xff] %vm715_vm7, %v5666_v5 }
  0x42   : > { %738 = vst.msk [vmem:[#allocation3 + $0xa8] sm:$0xf] %vm717_vm8, %v5666_v5  ;;  %740 = vst.msk [vmem:[#allocation3 + $0xb8] sm:$0xf] %vm717_vm8, %v5666_v5 }
  0x43   : > { %3026 = vst.msk [vmem:[#allocation5] sm:$0xff] %vm1178_vm11, %v5666_v5  ;;  %3029 = vst.msk [vmem:[#allocation5 + $0x10] sm:$0xff] %vm1178_vm11, %v5666_v5 }
  0x44   : > { %4673 = vmatmul.mubr.msk.bf16.gmra.mrb[12].mxu1 %vm557_vm0, %v532_v17  ;;  %3031 = vst.msk [vmem:[#allocation5 + $0x20] sm:$0xff] %vm1178_vm11, %v5666_v5  ;;  %3033 = vst.msk [vmem:[#allocation5 + $0x30] sm:$0xff] %vm1178_vm11, %v5666_v5 }
  0x45   : > { %3035 = vst.msk [vmem:[#allocation5 + $0x40] sm:$0xff] %vm1178_vm11, %v5666_v5  ;;  %3037 = vst.msk [vmem:[#allocation5 + $0x50] sm:$0xff] %vm1178_vm11, %v5666_v5 }
  0x46   : > { %3039 = vst.msk [vmem:[#allocation5 + $0x60] sm:$0xff] %vm1178_vm11, %v5666_v5  ;;  %3041 = vst.msk [vmem:[#allocation5 + $0x70] sm:$0xff] %vm1178_vm11, %v5666_v5 }
  0x47   : > { %3043 = vst.msk [vmem:[#allocation5 + $0x80] sm:$0xff] %vm1178_vm11, %v5666_v5  ;;  %3045 = vst.msk [vmem:[#allocation5 + $0x90] sm:$0xff] %vm1178_vm11, %v5666_v5 }
  0x48   : > { %3030 = vst.msk [vmem:[#allocation5 + $0x18] sm:$0x3] %vm3027_vm13, %v5666_v5  ;;  %3028 = vst.msk [vmem:[#allocation5 + $0x8] sm:$0x3] %vm3027_vm13, %v5666_v5 }
  0x49   : > { %3032 = vst.msk [vmem:[#allocation5 + $0x28] sm:$0x3] %vm3027_vm13, %v5666_v5  ;;  %3034 = vst.msk [vmem:[#allocation5 + $0x38] sm:$0x3] %vm3027_vm13, %v5666_v5 }
  0x4a   : > { %3036 = vst.msk [vmem:[#allocation5 + $0x48] sm:$0x3] %vm3027_vm13, %v5666_v5  ;;  %3038 = vst.msk [vmem:[#allocation5 + $0x58] sm:$0x3] %vm3027_vm13, %v5666_v5 }
  0x4b   : > { %3040 = vst.msk [vmem:[#allocation5 + $0x68] sm:$0x3] %vm3027_vm13, %v5666_v5  ;;  %3042 = vst.msk [vmem:[#allocation5 + $0x78] sm:$0x3] %vm3027_vm13, %v5666_v5 }
  0x4c   : > { %3044 = vst.msk [vmem:[#allocation5 + $0x88] sm:$0x3] %vm3027_vm13, %v5666_v5  ;;  %3046 = vst.msk [vmem:[#allocation5 + $0x98] sm:$0x3] %vm3027_vm13, %v5666_v5  ;;  %v5495_v5 = vld [vmem:[%s7897_s4 + $0x50] sm:$0xff]  }
  0xff   : > { %v604_v27 = vpop.f32.mrb[0].mxu1 }
 0x100   : > { %v655_v28 = vmul.f32 %v5927_v24, %v604_v27  ;;  %v606_v29 = vpop.f32.mrb[1].mxu1 }
 0x101   : > { %v656_v31 = vmul.f32 %v5929_v25, %v606_v29  ;;  %v608_v32 = vpop.f32.mrb[2].mxu1 }
 0x102   : > { %v683_v33 = vadd.f32 %v5931_v26, %v655_v28  ;;  %v657_v34 = vmul.f32 %v5927_v24, %v608_v32  ;;  %v610_v35 = vpop.f32.mrb[3].mxu1 }
 0x103   : > { %v658_v36 = vmul.f32 %v5929_v25, %v610_v35  ;;  %v684_v38 = vadd.f32 %v5934_v30, %v656_v31  ;;  %v5439_v35 = vld [vmem:[%s7896_s7 + $0x88] sm:$0xff]  }
 0x104   : > { %v5940_v37 = vmax.f32 %v683_v33, 0.0  ;;  %v685_v39 = vadd.f32 %v5931_v26, %v657_v34  ;;  %v5437_v33 = vld [vmem:[%s7896_s7 + $0x78] sm:$0xff]   ;;  %v5438_v34 = vld [vmem:[%s7896_s7 + $0x80] sm:$0xff]  }
 0x105   : > { %v686_v41 = vadd.f32 %v5934_v30, %v658_v36  ;;  %v700_v43 = vmax.f32 %v684_v38, 0.0  ;;  %v5440_v36 = vld [vmem:[%s7896_s7 + $0x90] sm:$0xff]   ;;  %v5441_v38 = vld [vmem:[%s7896_s7 + $0x98] sm:$0xff]  }
 0x106   : > { %v5944_v40 = vmax.f32 %v685_v39, 0.0  ;;  %2245 = vrot.lane.b32.xlu0 %v5940_v37, %s7864_s28  ;;  %v5442_v39 = vld [vmem:[%s7896_s7 + $0xa0] sm:$0xff]  }
 0x107   : > { %v614_v42 = vpop.f32.mrb[4].mxu1  ;;  %v702_v48 = vmax.f32 %v686_v41, 0.0  ;;  %v5443_v41 = vld [vmem:[%s7896_s7 + $0xa8] sm:$0xff]  }
 0x108   : > { %2249 = vrot.lane.b32.xlu1 %v5944_v40, %s7864_s28  ;;  %v659_v44 = vmul.f32 %v5927_v24, %v614_v42  ;;  %v616_v45 = vpop.f32.mrb[5].mxu1  ;;  %v5444_v42 = vld [vmem:[%s7896_s7 + $0xb0] sm:$0xff]  }
 0x109   : > { %v660_v46 = vmul.f32 %v5929_v25, %v616_v45  ;;  %v618_v47 = vpop.f32.mrb[6].mxu1 }
 0x10a   : > { %v687_v49 = vadd.f32 %v5931_v26, %v659_v44  ;;  %2247 = vrot.lane.b32.xlu0 %v700_v43, %s7864_s28  ;;  %v661_v50 = vmul.f32 %v5927_v24, %v618_v47  ;;  %v620_v51 = vpop.f32.mrb[7].mxu1 }
 0x10b   : > { %v688_v52 = vadd.f32 %v5934_v30, %v660_v46  ;;  %v662_v53 = vmul.f32 %v5929_v25, %v620_v51 }
 0x10c   : > { %v5958_v54 = vmax.f32 %v687_v49, 0.0  ;;  %2251 = vrot.lane.b32.xlu1 %v702_v48, %s7864_s28  ;;  %v689_v55 = vadd.f32 %v5931_v26, %v661_v50  ;;  %v6054_v49 = vld [vmem:[#allocation4] sm:$0xff]  ;;  %v6056_v50 = vld [vmem:[#allocation4 + $0x8] sm:$0x3] }
 0x10d   : > { %v704_v56 = vmax.f32 %v688_v52, 0.0  ;;  %v690_v57 = vadd.f32 %v5934_v30, %v662_v53  ;;  %v5445_v52 = vld [vmem:[%s7896_s7 + $0xb8] sm:$0xff]  }
 0x10e   : > { %v5963_v58 = vmax.f32 %v689_v55, 0.0  ;;  %2253 = vrot.lane.b32.xlu0 %v5958_v54, %s7864_s28  ;;  %v2460_v55 = vrot.slane %v6054_v49, 2 }
 0x10f   : > { %v624_v59 = vpop.f32.mrb[8].mxu1  ;;  %v706_v60 = vmax.f32 %v690_v57, 0.0 }
 0x110   : > { %2255 = vrot.lane.b32.xlu1 %v704_v56, %s7864_s28  ;;  %v663_v61 = vmul.f32 %v5927_v24, %v624_v59  ;;  %v626_v62 = vpop.f32.mrb[9].mxu1  ;;  %v2461_v56 = vrot.slane %v6056_v50, 2 }
 0x111   : > { %v664_v63 = vmul.f32 %v5929_v25, %v626_v62  ;;  %v628_v0 = vpop.f32.mrb[10].mxu1 }
 0x112   : > { %v691_v1 = vadd.f32 %v5931_v26, %v663_v61  ;;  %2257 = vrot.lane.b32.xlu0 %v5963_v58, %s7864_s28  ;;  %v665_v3 = vmul.f32 %v5927_v24, %v628_v0  ;;  %v630_v4 = vpop.f32.mrb[11].mxu1 }
 0x113   : > { %v692_v6 = vadd.f32 %v5934_v30, %v664_v63  ;;  %v666_v7 = vmul.f32 %v5929_v25, %v630_v4  ;;  %v6070_v63 = vsel %vm1023_vm5, %v2460_v55, %v2461_v56 }
 0x114   : > { %v5976_v8 = vmax.f32 %v691_v1, 0.0  ;;  %2259 = vrot.lane.b32.xlu1 %v706_v60, %s7864_s28  ;;  %v693_v9 = vadd.f32 %v5931_v26, %v665_v3 }
 0x115   : > { %v708_v10 = vmax.f32 %v692_v6, 0.0  ;;  %v694_v11 = vadd.f32 %v5934_v30, %v666_v7 }
 0x116   : > { %7892 = vst [vmem:[#allocation11_spill] sm:$0xff] %v5976_v8  ;;  %v5981_v12 = vmax.f32 %v693_v9, 0.0  ;;  %2261 = vrot.lane.b32.xlu0 %v5976_v8, %s7864_s28 }
 0x117   : > { %v634_v13 = vpop.f32.mrb[12].mxu1  ;;  %v710_v14 = vmax.f32 %v694_v11, 0.0 }
 0x118   : > { %7893 = vst [vmem:[#allocation12_spill] sm:$0xff] %v5981_v12  ;;  %2263 = vrot.lane.b32.xlu1 %v708_v10, %s7864_s28  ;;  %v667_v15 = vmul.f32 %v5927_v24, %v634_v13  ;;  %v636_v16 = vpop.f32.mrb[13].mxu1 }
 0x119   : > { %v668_v17 = vmul.f32 %v5929_v25, %v636_v16  ;;  %v638_v18 = vpop.f32.mrb[14].mxu1 }
 0x11a   : > { %v695_v19 = vadd.f32 %v5931_v26, %v667_v15  ;;  %2265 = vrot.lane.b32.xlu0 %v5981_v12, %s7864_s28  ;;  %v669_v20 = vmul.f32 %v5927_v24, %v638_v18  ;;  %v640_v21 = vpop.f32.mrb[15].mxu1 }
 0x11b   : > { %v696_v22 = vadd.f32 %v5934_v30, %v668_v17  ;;  %v670_v23 = vmul.f32 %v5929_v25, %v640_v21  ;;  %v5434_v25 = vld [vmem:[%s7896_s7 + $0x60] sm:$0xff]  }
 0x11c   : > { %v5994_v27 = vmax.f32 %v695_v19, 0.0  ;;  %2267 = vrot.lane.b32.xlu1 %v710_v14, %s7864_s28  ;;  %v697_v28 = vadd.f32 %v5931_v26, %v669_v20  ;;  %2614 = vmatpush1.bf16.msra.mxu0 %v5434_v25  ;;  %v5435_v26 = vld [vmem:[%s7896_s7 + $0x68] sm:$0xff]  }
 0x11d   : > { %v712_v29 = vmax.f32 %v696_v22, 0.0  ;;  %v698_v31 = vadd.f32 %v5934_v30, %v670_v23  ;;  %2615 = vmatprep.subr.bf16.mxu0 %v5665_v2  ;;  %v5436_v30 = vld [vmem:[%s7896_s7 + $0x70] sm:$0xff]  }
 0x11e   : > { %7894 = vst [vmem:[#allocation13_spill] sm:$0xff] %v5994_v27  ;;  %v5999_v32 = vmax.f32 %v697_v28, 0.0  ;;  %2269 = vrot.lane.b32.xlu0 %v5994_v27, %s7864_s28 }
 0x11f   : > { %v714_v24 = vmax.f32 %v698_v31, 0.0 }
 0x120   : > { %7895 = vst [vmem:[#allocation14_spill] sm:$0xff] %v5999_v32  ;;  %2271 = vrot.lane.b32.xlu1 %v712_v29, %s7864_s28  ;;  %2616 = vmatpush1.bf16.msra.mxu0 %v5435_v26 }
 0x121   : > { %2617 = vmatprep.subr.bf16.mxu0 %v5665_v2 }
 0x122   : > { %2273 = vrot.lane.b32.xlu0 %v5999_v32, %s7864_s28 }
 0x124   : > { %2275 = vrot.lane.b32.xlu1 %v714_v24, %s7864_s28  ;;  %2618 = vmatpush1.bf16.msra.mxu0 %v5436_v30 }
 0x125   : > { %2619 = vmatprep.subr.bf16.mxu0 %v5665_v2 }
 0x128   : > { %2620 = vmatpush1.bf16.msra.mxu0 %v5437_v33 }
 0x129   : > { %2621 = vmatprep.subr.bf16.mxu0 %v5665_v2 }
 0x12c   : > { %2622 = vmatpush1.bf16.msra.mxu0 %v5438_v34 }
 0x12d   : > { %2623 = vmatprep.subr.bf16.mxu0 %v5665_v2 }
 0x130   : > { %2624 = vmatpush1.bf16.msra.mxu0 %v5439_v35 }
 0x131   : > { %2625 = vmatprep.subr.bf16.mxu0 %v5665_v2 }
 0x134   : > { %2626 = vmatpush1.bf16.msra.mxu0 %v5440_v36 }
 0x135   : > { %2627 = vmatprep.subr.bf16.mxu0 %v5665_v2 }
 0x138   : > { %2628 = vmatpush1.bf16.msra.mxu0 %v5441_v38 }
 0x139   : > { %2629 = vmatprep.subr.bf16.mxu0 %v5665_v2 }
 0x13c   : > { %2630 = vmatpush1.bf16.msra.mxu0 %v5442_v39 }
 0x13d   : > { %2631 = vmatprep.subr.bf16.mxu0 %v5665_v2 }
 0x140   : > { %2632 = vmatpush1.bf16.msra.mxu0 %v5443_v41 }
 0x141   : > { %2633 = vmatprep.subr.bf16.mxu0 %v5665_v2 }
 0x144   : > { %2634 = vmatpush1.bf16.msra.mxu0 %v5444_v42 }
 0x145   : > { %2635 = vmatprep.subr.bf16.mxu0 %v5665_v2 }
 0x148   : > { %2636 = vmatpush1.bf16.msra.mxu0 %v5445_v52 }
 0x149   : > { %2762 = vmatprep.subr.bf16.mxu0 %v5665_v2 }
 0x178   : > { %v2246_v43 = vpop.permute.xlu0 %2245 }
 0x17a   : > { %v2250_v44 = vpop.permute.xlu1 %2249 }
 0x17c   : > { %v2248_v45 = vpop.permute.xlu0 %2247 }
 0x17d   : > { %v2277_v46 = vsel %vm1187_vm4, %v2246_v43, %v2248_v45 }
 0x17e   : > { %2294 = vst.msk [vmem:[#allocation4 + $0x11] sm:$0xff] %vm1196_vm2, %v2277_v46  ;;  %v2252_v47 = vpop.permute.xlu1 %2251 }
 0x17f   : > { %v2278_v48 = vsel %vm1187_vm4, %v2250_v44, %v2252_v47 }
 0x180   : > { %2295 = vst.msk [vmem:[#allocation4 + $0x21] sm:$0xff] %vm1196_vm2, %v2278_v48  ;;  %v2254_v51 = vpop.permute.xlu0 %2253 }
 0x182   : > { %v2256_v53 = vpop.permute.xlu1 %2255 }
 0x183   : > { %v2279_v57 = vsel %vm1187_vm4, %v2254_v51, %v2256_v53 }
 0x184   : > { %2296 = vst.msk [vmem:[#allocation4 + $0x31] sm:$0xff] %vm1196_vm2, %v2279_v57  ;;  %v2258_v59 = vpop.permute.xlu0 %2257 }
 0x185   : > { %v6067_v60 = vld [vmem:[#allocation4 + $0x10] sm:$0xff]  ;;  %v2305_v61 = vld [vmem:[#allocation4 + $0x18] sm:$0x3] }
 0x186   : > { %v2260_v62 = vpop.permute.xlu1 %2259  ;;  %v2463_v0 = vrot.slane %v6067_v60, 2  ;;  %v2464_v1 = vrot.slane %v2305_v61, 2  ;;  %v2416_v7 = vrot.slane %v2305_v61, 1  ;;  %v2415_v9 = vrot.slane %v6067_v60, 1 }
 0x187   : > { %v2280_v3 = vsel %vm1187_vm4, %v2258_v59, %v2260_v62  ;;  %v6074_v4 = vld [vmem:[#allocation4 + $0x20] sm:$0xff]  ;;  %v2307_v6 = vld [vmem:[#allocation4 + $0x28] sm:$0x3] }
 0x188   : > { %2297 = vst.msk [vmem:[#allocation4 + $0x41] sm:$0xff] %vm1196_vm2, %v2280_v3  ;;  %v2262_v10 = vpop.permute.xlu0 %2261  ;;  %v2419_v11 = vrot.slane %v2307_v6, 1  ;;  %v6079_v13 = vsel %vm1023_vm5, %v2463_v0, %v2464_v1  ;;  %v2466_v14 = vrot.slane %v6074_v4, 2  ;;  %v2467_v15 = vrot.slane %v2307_v6, 2 }
 0x189   : > { %v2501_v16 = vpack.c.bf16 %v6079_v13, %v6070_v63  ;;  %v2418_v17 = vrot.slane %v6074_v4, 1  ;;  %v2417_v28 = vsel %vm974_vm6, %v2415_v9, %v2416_v7 }
 0x18a   : > { %v2264_v18 = vpop.permute.xlu1 %2263  ;;  %v2468_v19 = vsel %vm1023_vm5, %v2466_v14, %v2467_v15 }
 0x18b   : > { %v2281_v20 = vsel %vm1187_vm4, %v2262_v10, %v2264_v18  ;;  %v6087_v21 = vld [vmem:[#allocation4 + $0x30] sm:$0xff]  ;;  %v2309_v22 = vld [vmem:[#allocation4 + $0x38] sm:$0x3]  ;;  %v2522_v23 = vpack.c.bf16 %v2468_v19, %v6079_v13  ;;  %v2420_v29 = vsel %vm974_vm6, %v2418_v17, %v2419_v11 }
 0x18c   : > { %2298 = vst.msk [vmem:[#allocation4 + $0x51] sm:$0xff] %vm1196_vm2, %v2281_v20  ;;  %v2469_v31 = vrot.slane %v6087_v21, 2  ;;  %v2470_v24 = vrot.slane %v2309_v22, 2  ;;  %v5278_v25 = vpack.i.bf16 %v2420_v29, %v2417_v28  ;;  %v2266_v26 = vpop.permute.xlu0 %2265  ;;  %v2421_v30 = vrot.slane %v6087_v21, 1 }
 0x18d   : > { %4783 = vmatprep.mubr.msk.bf16.mxu0 %vm1196_vm2, %v2522_v23  ;;  %v2422_v33 = vrot.slane %v2309_v22, 1  ;;  %v2412_v23 = vrot.slane %v6054_v49, 1  ;;  %v2413_v28 = vrot.slane %v6056_v50, 1  ;;  %v2321_v50 = vld [vmem:[#allocation4 + $0x98] sm:$0x3] }
 0x18e   : > { %v6097_v34 = vsel %vm1023_vm5, %v2469_v31, %v2470_v24  ;;  %5279 = vrot.lane.b32.xlu0 %v5278_v25, %s7866_s29  ;;  %v2268_v35 = vpop.permute.xlu1 %2267 }
 0x18f   : > { %v6100_v36 = vld [vmem:[#allocation4 + $0x40] sm:$0xff]  ;;  %v2311_v38 = vld [vmem:[#allocation4 + $0x48] sm:$0x3]  ;;  %v6103_v39 = vpack.c.bf16 %v6097_v34, %v2468_v19  ;;  %v2282_v41 = vsel %vm1187_vm4, %v2266_v26, %v2268_v35  ;;  %v2423_v42 = vsel %vm974_vm6, %v2421_v30, %v2422_v33 }
 0x190   : > { %v2472_v43 = vrot.slane %v6100_v36, 2  ;;  %v2473_v44 = vrot.slane %v2311_v38, 2  ;;  %2299 = vst.msk [vmem:[#allocation4 + $0x61] sm:$0xff] %vm1196_vm2, %v2282_v41  ;;  %v2270_v45 = vpop.permute.xlu0 %2269  ;;  %v2424_v46 = vrot.slane %v6100_v36, 1  ;;  %v2425_v47 = vrot.slane %v2311_v38, 1  ;;  %v6198_v41 = vld [vmem:[#allocation4 + $0x90] sm:$0xff] }
 0x192   : > { %v6111_v48 = vsel %vm1023_vm5, %v2472_v43, %v2473_v44  ;;  %v2272_v51 = vpop.permute.xlu1 %2271  ;;  %v2426_v52 = vsel %vm974_vm6, %v2424_v46, %v2425_v47  ;;  %v2835_v43 = vrot.slane %v6198_v41, 2  ;;  %v2836_v44 = vrot.slane %v2321_v50, 2 }
 0x193   : > { %v2524_v53 = vpack.c.bf16 %v6111_v48, %v6097_v34  ;;  %v2283_v55 = vsel %vm1187_vm4, %v2270_v45, %v2272_v51  ;;  %v5283_v56 = vpack.i.bf16 %v2426_v52, %v2423_v42  ;;  %v6117_v57 = vld [vmem:[#allocation4 + $0x50] sm:$0xff]  ;;  %v2313_v59 = vld [vmem:[#allocation4 + $0x58] sm:$0x3]  ;;  %v2414_v42 = vsel %vm974_vm6, %v2412_v23, %v2413_v28  ;;  %v5475_v28 = vld [vmem:[%s7897_s4 + $0xa0] sm:$0xff]  }
 0x194   : > { %2300 = vst.msk [vmem:[#allocation4 + $0x71] sm:$0xff] %vm1196_vm2, %v2283_v55  ;;  %v2274_v61 = vpop.permute.xlu0 %2273  ;;  %v2427_v62 = vrot.slane %v6117_v57, 1  ;;  %v2428_v0 = vrot.slane %v2313_v59, 1  ;;  %v2476_v1 = vrot.slane %v2313_v59, 2  ;;  %v2475_v3 = vrot.slane %v6117_v57, 2  ;;  %v5474_v23 = vld [vmem:[%s7897_s4 + $0x98] sm:$0xff]  }
 0x195   : > { %5284 = vrot.lane.b32.xlu1 %v5283_v56, %s7866_s29 }
 0x196   : > { %v2276_v6 = vpop.permute.xlu1 %2275  ;;  %v2429_v7 = vsel %vm974_vm6, %v2427_v62, %v2428_v0  ;;  %v6125_v9 = vsel %vm1023_vm5, %v2475_v3, %v2476_v1  ;;  %v2829_v62 = vrot.slane %v6198_v41, 1  ;;  %v2830_v1 = vrot.slane %v2321_v50, 1 }
 0x197   : > { %v2284_v10 = vsel %vm1187_vm4, %v2274_v61, %v2276_v6  ;;  %v6128_v11 = vld [vmem:[#allocation4 + $0x60] sm:$0xff]  ;;  %v2315_v14 = vld [vmem:[#allocation4 + $0x68] sm:$0x3]  ;;  %v6132_v15 = vpack.c.bf16 %v6125_v9, %v6111_v48  ;;  %v6221_v6 = vsel %vm1023_vm5, %v2835_v43, %v2836_v44  ;;  %v5478_v44 = vld [vmem:[%s7897_s4 + $0xb8] sm:$0xff]  }
 0x198   : > { %2301 = vst.msk [vmem:[#allocation4 + $0x81] sm:$0xff] %vm1196_vm2, %v2284_v10  ;;  %v2430_v17 = vrot.slane %v6128_v11, 1  ;;  %v2431_v18 = vrot.slane %v2315_v14, 1  ;;  %v2479_v19 = vrot.slane %v2315_v14, 2  ;;  %v2478_v20 = vrot.slane %v6128_v11, 2 }
 0x19a   : > { %v2432_v22 = vsel %vm974_vm6, %v2430_v17, %v2431_v18  ;;  %v6189_v29 = vsel %vm1023_vm5, %v2478_v20, %v2479_v19  ;;  %v2831_v17 = vsel %vm974_vm6, %v2829_v62, %v2830_v1  ;;  %v5470_v18 = vld [vmem:[%s7897_s4 + $0x78] sm:$0xff]   ;;  %v5471_v19 = vld [vmem:[%s7897_s4 + $0x80] sm:$0xff]   ;;  %v5472_v20 = vld [vmem:[%s7897_s4 + $0x88] sm:$0xff]  }
 0x19b   : > { %v5288_v31 = vpack.i.bf16 %v2432_v22, %v2429_v7  ;;  %v6191_v24 = vld [vmem:[#allocation4 + $0x70] sm:$0xff]  ;;  %v2317_v25 = vld [vmem:[#allocation4 + $0x78] sm:$0x3]  ;;  %v2526_v26 = vpack.c.bf16 %v6189_v29, %v6125_v9  ;;  %1355 = vmatpush1.bf16.msra.mxu1 %v5470_v18  ;;  %v5451_v18 = vld [vmem:[%s7896_s7 + $0x28] sm:$0xff]  }
 0x19c   : > { %v2433_v30 = vrot.slane %v6191_v24, 1  ;;  %v2434_v33 = vrot.slane %v2317_v25, 1  ;;  %v2482_v35 = vrot.slane %v2317_v25, 2  ;;  %v2481_v38 = vrot.slane %v6191_v24, 2  ;;  %1356 = vmatprep.subr.bf16.mxu1 %v5665_v2  ;;  %v5473_v22 = vld [vmem:[%s7897_s4 + $0x90] sm:$0xff]  }
 0x19d   : > { %5289 = vrot.lane.b32.xlu0 %v5288_v31, %s7866_s29  ;;  %v5476_v31 = vld [vmem:[%s7897_s4 + $0xa8] sm:$0xff]  }
 0x19e   : > { %v6203_v45 = vsel %vm1023_vm5, %v2481_v38, %v2482_v35  ;;  %v2435_v51 = vsel %vm974_vm6, %v2433_v30, %v2434_v33  ;;  %v5477_v35 = vld [vmem:[%s7897_s4 + $0xb0] sm:$0xff]  }
 0x19f   : > { %v6205_v46 = vld [vmem:[#allocation4 + $0x80] sm:$0xff]  ;;  %v2319_v47 = vld [vmem:[#allocation4 + $0x88] sm:$0x3]  ;;  %v6210_v52 = vpack.c.bf16 %v6203_v45, %v6189_v29  ;;  %1357 = vmatpush1.bf16.msra.mxu1 %v5471_v19  ;;  %v6361_v19 = vld [vmem:[#allocation3 + $0x10] sm:$0xff] }
 0x1a0   : > { %v2510_v55 = vrot.slane %v6205_v46, 1  ;;  %v2511_v56 = vrot.slane %v2319_v47, 1  ;;  %v2517_v59 = vrot.slane %v2319_v47, 2  ;;  %v2516_v61 = vrot.slane %v6205_v46, 2  ;;  %1358 = vmatprep.subr.bf16.mxu1 %v5665_v2 }
 0x1a1   : > { %2436 = vrot.lane.b32.xlu0 %v2414_v42, %s7866_s29  ;;  %v5446_v42 = vld [vmem:[%s7896_s7] sm:$0xff]  }
 0x1a2   : > { %v2512_v0 = vsel %vm974_vm6, %v2510_v55, %v2511_v56  ;;  %v6218_v3 = vsel %vm1023_vm5, %v2516_v61, %v2517_v59  ;;  %v5479_v55 = vld [vmem:[%s7897_s4 + $0xc0] sm:$0xff]   ;;  %v5449_v59 = vld [vmem:[%s7896_s7 + $0x18] sm:$0xff]  }
 0x1a3   : > { %v5293_v7 = vpack.i.bf16 %v2512_v0, %v2435_v51  ;;  %v2528_v10 = vpack.c.bf16 %v6218_v3, %v6203_v45  ;;  %v2841_v14 = vpack.c.bf16 %v6221_v6, %v6218_v3  ;;  %1359 = vmatpush1.bf16.msra.mxu1 %v5472_v20  ;;  %v5481_v0 = vld [vmem:[%s7897_s4 + $0xd0] sm:$0xff]  }
 0x1a4   : > { %1360 = vmatprep.subr.bf16.mxu1 %v5665_v2 }
 0x1a5   : > { %749 = vrot.lane.b32.xlu0 %v5940_v37, %s7866_s29  ;;  %5294 = vrot.lane.b32.xlu1 %v5293_v7, %s7866_s29  ;;  %v5450_v7 = vld [vmem:[%s7896_s7 + $0x20] sm:$0xff]  }
 0x1a7   : > { %1361 = vmatpush1.bf16.msra.mxu1 %v5473_v22 }
 0x1a8   : > { %1362 = vmatprep.subr.bf16.mxu1 %v5665_v2 }
 0x1a9   : > { %753 = vrot.lane.b32.xlu0 %v5958_v54, %s7866_s29  ;;  %2832 = vrot.lane.b32.xlu1 %v2831_v17, %s7866_s29 }
 0x1ab   : > { %1363 = vmatpush1.bf16.msra.mxu1 %v5474_v23  ;;  %v6365_v23 = vld [vmem:[#allocation3 + $0x18] sm:$0xf] }
 0x1ac   : > { %1364 = vmatprep.subr.bf16.mxu1 %v5665_v2 }
 0x1ad   : > { %757 = vrot.lane.b32.xlu0 %v5976_v8, %s7866_s29  ;;  %751 = vrot.lane.b32.xlu1 %v5944_v40, %s7866_s29 }
 0x1af   : > { %1365 = vmatpush1.bf16.msra.mxu1 %v5475_v28  ;;  %v1076_v28 = vrot.slane %v6361_v19, 3 }
 0x1b0   : > { %1366 = vmatprep.subr.bf16.mxu1 %v5665_v2 }
 0x1b1   : > { %761 = vrot.lane.b32.xlu0 %v5994_v27, %s7866_s29  ;;  %755 = vrot.lane.b32.xlu1 %v5963_v58, %s7866_s29 }
 0x1b3   : > { %1367 = vmatpush1.bf16.msra.mxu1 %v5476_v31  ;;  %v5483_v31 = vld [vmem:[%s7897_s4 + $0xe0] sm:$0xff]  }
 0x1b4   : > { %1368 = vmatprep.subr.bf16.mxu1 %v5665_v2 }
 0x1b5   : > { %759 = vrot.lane.b32.xlu1 %v5981_v12, %s7866_s29  ;;  %s7899_s29 = smov 64  }
 0x1b7   : > { %1369 = vmatpush1.bf16.msra.mxu1 %v5477_v35  ;;  %v1027_v35 = vrot.slane %v6361_v19, 2 }
 0x1b8   : > { %1370 = vmatprep.subr.bf16.mxu1 %v5665_v2 }
 0x1bb   : > { %1371 = vmatpush1.bf16.msra.mxu1 %v5478_v44 }
 0x1bc   : > { %1372 = vmatprep.subr.bf16.mxu1 %v5665_v2 }
 0x1bf   : > { %1373 = vmatpush1.bf16.msra.mxu1 %v5479_v55 }
 0x1c0   : > { %1374 = vmatprep.subr.bf16.mxu1 %v5665_v2 }
 0x200   : > { %v5280_v25 = vpop.permute.xlu0 %5279 }
 0x201   : > { %v5282_v30 = vunpack.i.h.bf16 %v5280_v25  ;;  %v5281_v33 = vunpack.i.l.bf16 %v5280_v25 }
 0x203   : > { %v6277_v38 = vsel %vm1196_vm2, %v6067_v60, %v5281_v33  ;;  %v6281_v50 = vsel %vm1196_vm2, %v6074_v4, %v5282_v30  ;;  %v5447_v4 = vld [vmem:[%s7896_s7 + $0x8] sm:$0xff]  }
 0x204   : > { %v2521_v43 = vpack.c.bf16 %v6281_v50, %v6277_v38 }
 0x206   : > { %2646 = vmatmul.mubr.bf16.vlgmr.msra.gmra.mrb[0].mxu0 %v2521_v43 }
 0x207   : > { %2763 = vmatpush1.bf16.msra.mxu0 %v5446_v42  ;;  %4784 = vmatprep.mubr.msk.bf16.mxu0 %vm1196_vm2, %v2524_v53  ;;  %v5285_v60 = vpop.permute.xlu1 %5284  ;;  %v5448_v53 = vld [vmem:[%s7896_s7 + $0x10] sm:$0xff]   ;;  %v1028_v42 = vrot.slane %v6365_v23, 2 }
 0x208   : > { %v5287_v47 = vunpack.i.h.bf16 %v5285_v60  ;;  %v5286_v51 = vunpack.i.l.bf16 %v5285_v60  ;;  %2764 = vmatprep.subr.bf16.mxu0 %v5665_v2  ;;  %v1125_v60 = vrot.slane %v6361_v19, 4 }
 0x20a   : > { %v6305_v56 = vsel %vm1196_vm2, %v6087_v21, %v5286_v51  ;;  %v6309_v34 = vsel %vm1196_vm2, %v6100_v36, %v5287_v47  ;;  %v5480_v21 = vld [vmem:[%s7897_s4 + $0xc8] sm:$0xff]   ;;  %v978_v47 = vrot.slane %v6361_v19, 1  ;;  %v979_v51 = vrot.slane %v6365_v23, 1 }
 0x20b   : > { %2765 = vmatpush1.bf16.msra.mxu0 %v5447_v4  ;;  %v2523_v48 = vpack.c.bf16 %v6309_v34, %v6305_v56  ;;  %1375 = vmatpush1.bf16.msra.mxu1 %v5480_v21  ;;  %v1126_v4 = vrot.slane %v6365_v23, 4 }
 0x20c   : > { %2766 = vmatprep.subr.bf16.mxu0 %v5665_v2  ;;  %1376 = vmatprep.subr.bf16.mxu1 %v5665_v2 }
 0x20e   : > { %2654 = vmatmul.mubr.bf16.gmra.mrb[4].mxu0 %v2523_v48  ;;  %v5453_v48 = vld [vmem:[%s7896_s7 + $0x38] sm:$0xff]  }
 0x20f   : > { %2767 = vmatpush1.bf16.msra.mxu0 %v5448_v53  ;;  %4785 = vmatprep.mubr.msk.bf16.mxu0 %vm1196_vm2, %v2526_v26  ;;  %v5290_v36 = vpop.permute.xlu0 %5289 }
 0x210   : > { %v5292_v61 = vunpack.i.h.bf16 %v5290_v36  ;;  %v5291_v62 = vunpack.i.l.bf16 %v5290_v36  ;;  %2768 = vmatprep.subr.bf16.mxu0 %v5665_v2  ;;  %1377 = vmatpush1.bf16.msra.mxu1 %v5481_v0 }
 0x211   : > { %1378 = vmatprep.subr.bf16.mxu1 %v5665_v2 }
 0x212   : > { %v6335_v1 = vsel %vm1196_vm2, %v6117_v57, %v5291_v62  ;;  %v6339_v9 = vsel %vm1196_vm2, %v6128_v11, %v5292_v61  ;;  %v5482_v57 = vld [vmem:[%s7897_s4 + $0xd8] sm:$0xff]   ;;  %v5484_v62 = vld [vmem:[%s7897_s4 + $0xe8] sm:$0xff]  }
 0x213   : > { %2769 = vmatpush1.bf16.msra.mxu0 %v5449_v59  ;;  %v6342_v29 = vpop.permute.xlu0 %2436  ;;  %v2525_v26 = vpack.c.bf16 %v6339_v9, %v6335_v1  ;;  %v1029_v59 = vsel %vm1023_vm5, %v1027_v35, %v1028_v42 }
 0x214   : > { %2770 = vmatprep.subr.bf16.mxu0 %v5665_v2  ;;  %1379 = vmatpush1.bf16.msra.mxu1 %v5482_v57 }
 0x215   : > { %1380 = vmatprep.subr.bf16.mxu1 %v5665_v2 }
 0x216   : > { %2662 = vmatmul.mubr.bf16.gmra.mrb[8].mxu0 %v2525_v26 }
 0x217   : > { %2771 = vmatpush1.bf16.msra.mxu0 %v5450_v7  ;;  %4786 = vmatprep.mubr.msk.bf16.mxu0 %vm1196_vm2, %v2528_v10  ;;  %v750_v11 = vpop.permute.xlu0 %749  ;;  %v5295_v17 = vpop.permute.xlu1 %5294 }
 0x218   : > { %774 = vst.msk [vmem:[#allocation3 + $0x22] sm:$0xff] %vm715_vm7, %v750_v11  ;;  %v5297_v20 = vunpack.i.h.bf16 %v5295_v17  ;;  %v5296_v22 = vunpack.i.l.bf16 %v5295_v17  ;;  %2772 = vmatprep.subr.bf16.mxu0 %v5665_v2  ;;  %1381 = vmatpush1.bf16.msra.mxu1 %v5483_v31  ;;  %v5454_v31 = vld [vmem:[%s7896_s7 + $0x40] sm:$0xff]  }
 0x219   : > { %1382 = vmatprep.subr.bf16.mxu1 %v5665_v2 }
 0x21a   : > { %v6369_v45 = vsel %vm1196_vm2, %v6205_v46, %v5297_v20  ;;  %v6373_v10 = vsel %vm1196_vm2, %v6191_v24, %v5296_v22  ;;  %v5452_v46 = vld [vmem:[%s7896_s7 + $0x30] sm:$0xff]   ;;  %v1077_v24 = vrot.slane %v6365_v23, 3  ;;  %v980_v20 = vsel %vm974_vm6, %v978_v47, %v979_v51 }
 0x21b   : > { %2773 = vmatpush1.bf16.msra.mxu0 %v5451_v18  ;;  %v754_v25 = vpop.permute.xlu0 %753  ;;  %v2833_v30 = vpop.permute.xlu1 %2832  ;;  %v2527_v33 = vpack.c.bf16 %v6369_v45, %v6373_v10  ;;  %v1127_v18 = vsel %vm1121_vm10, %v1125_v60, %v1126_v4  ;;  %v5455_v4 = vld [vmem:[%s7896_s7 + $0x48] sm:$0xff]  }
 0x21c   : > { %776 = vst.msk [vmem:[#allocation3 + $0x42] sm:$0xff] %vm715_vm7, %v754_v25  ;;  %v6391_v43 = vsel %vm1196_vm2, %v6198_v41, %v2833_v30  ;;  %2774 = vmatprep.subr.bf16.mxu0 %v5665_v2  ;;  %v1078_v36 = vsel %vm1072_vm9, %v1076_v28, %v1077_v24  ;;  %1383 = vmatpush1.bf16.msra.mxu1 %v5484_v62 }
 0x21d   : > { %v2840_v44 = vpack.c.bf16 %v6391_v43, %v6369_v45  ;;  %1521 = vmatprep.subr.bf16.mxu1 %v5665_v2 }
 0x21e   : > { %2670 = vmatmul.mubr.bf16.gmra.mrb[12].mxu0 %v2527_v33 }
 0x21f   : > { %2775 = vmatpush1.bf16.msra.mxu0 %v5452_v46  ;;  %4799 = vmatprep.mubr.msk.bf16.mxu0 %vm1196_vm2, %v2501_v16  ;;  %v758_v41 = vpop.permute.xlu0 %757  ;;  %v752_v55 = vpop.permute.xlu1 %751  ;;  %v6408_v53 = vld [vmem:[#allocation3 + $0x20] sm:$0xff]  ;;  %v787_v21 = vld [vmem:[#allocation3 + $0x28] sm:$0xf] }
 0x220   : > { %778 = vst.msk [vmem:[#allocation3 + $0x62] sm:$0xff] %vm715_vm7, %v758_v41  ;;  %775 = vst.msk [vmem:[#allocation3 + $0x32] sm:$0xff] %vm715_vm7, %v752_v55  ;;  %2776 = vmatprep.subr.bf16.mxu0 %v5665_v2  ;;  %v1079_v63 = vrot.slane %v6408_v53, 3  ;;  %v1080_v13 = vrot.slane %v787_v21, 3  ;;  %v1030_v16 = vrot.slane %v6408_v53, 2  ;;  %v1031_v61 = vrot.slane %v787_v21, 2 }
 0x221   : > { %v1128_v0 = vrot.slane %v6408_v53, 4  ;;  %v1129_v26 = vrot.slane %v787_v21, 4  ;;  %v981_v7 = vrot.slane %v6408_v53, 1  ;;  %v982_v57 = vrot.slane %v787_v21, 1 }
 0x222   : > { %v1081_v11 = vsel %vm1072_vm9, %v1079_v63, %v1080_v13  ;;  %v1032_v17 = vsel %vm1023_vm5, %v1030_v16, %v1031_v61 }
 0x223   : > { %2777 = vmatpush1.bf16.msra.mxu0 %v5453_v48  ;;  %v762_v22 = vpop.permute.xlu0 %761  ;;  %v756_v23 = vpop.permute.xlu1 %755  ;;  %v5303_v28 = vpack.i.bf16 %v1081_v11, %v1078_v36  ;;  %v5298_v25 = vpack.i.bf16 %v1032_v17, %v1029_v59  ;;  %v1130_v30 = vsel %vm1121_vm10, %v1128_v0, %v1129_v26  ;;  %v983_v33 = vsel %vm974_vm6, %v981_v7, %v982_v57  ;;  %v6451_v46 = vld [vmem:[#allocation3 + $0x40] sm:$0xff]  ;;  %v6453_v24 = vld [vmem:[#allocation3 + $0x48] sm:$0xf] }
 0x224   : > { %780 = vst.msk [vmem:[#allocation3 + $0x82] sm:$0xff] %vm715_vm7, %v762_v22  ;;  %777 = vst.msk [vmem:[#allocation3 + $0x52] sm:$0xff] %vm715_vm7, %v756_v23  ;;  %2778 = vmatprep.subr.bf16.mxu0 %v5665_v2  ;;  %v1085_v35 = vrot.slane %v6451_v46, 3  ;;  %v1086_v42 = vrot.slane %v6453_v24, 3  ;;  %v5313_v60 = vpack.i.bf16 %v1130_v30, %v1127_v18  ;;  %v5308_v47 = vpack.i.bf16 %v983_v33, %v980_v20 }
 0x225   : > { %5304 = vrot.lane.b32.xlu0 %v5303_v28, %s7898_s18  ;;  %5299 = vrot.lane.b32.xlu1 %v5298_v25, %s7870_s30  ;;  %v1036_v51 = vrot.slane %v6451_v46, 2  ;;  %v1037_v41 = vrot.slane %v6453_v24, 2  ;;  %v1134_v59 = vrot.slane %v6451_v46, 4  ;;  %v1135_v63 = vrot.slane %v6453_v24, 4  ;;  %v5456_v25 = vld [vmem:[%s7896_s7 + $0x50] sm:$0xff]  }
 0x226   : > { %v1087_v36 = vsel %vm1072_vm9, %v1085_v35, %v1086_v42  ;;  %v987_v13 = vrot.slane %v6451_v46, 1  ;;  %v988_v22 = vrot.slane %v6453_v24, 1 }
 0x227   : > { %2779 = vmatpush1.bf16.msra.mxu0 %v5454_v31  ;;  %v760_v55 = vpop.permute.xlu1 %759  ;;  %v6468_v48 = vld [vmem:[#allocation3 + $0x30] sm:$0xff]  ;;  %v789_v21 = vld [vmem:[#allocation3 + $0x38] sm:$0xf]  ;;  %v1038_v20 = vsel %vm1023_vm5, %v1036_v51, %v1037_v41  ;;  %v6486_v23 = vld [vmem:[#allocation3 + $0x60] sm:$0xff]  ;;  %v2492_v31 = vsel %vm1196_vm2, %v6054_v49, %v6342_v29 }
 0x228   : > { %779 = vst.msk [vmem:[#allocation3 + $0x72] sm:$0xff] %vm715_vm7, %v760_v55  ;;  %2780 = vmatprep.subr.bf16.mxu0 %v5665_v2  ;;  %v1082_v16 = vrot.slane %v6468_v48, 3  ;;  %v1083_v61 = vrot.slane %v789_v21, 3  ;;  %v1033_v62 = vrot.slane %v6468_v48, 2  ;;  %v1034_v0 = vrot.slane %v789_v21, 2 }
 0x229   : > { %5314 = vrot.lane.b32.xlu0 %v5313_v60, %s7899_s29  ;;  %5309 = vrot.lane.b32.xlu1 %v5308_v47, %s7868_s1  ;;  %v1131_v26 = vrot.slane %v6468_v48, 4  ;;  %v1132_v7 = vrot.slane %v789_v21, 4  ;;  %v984_v57 = vrot.slane %v6468_v48, 1  ;;  %v985_v11 = vrot.slane %v789_v21, 1  ;;  %v6488_v28 = vld [vmem:[#allocation3 + $0x68] sm:$0xf] }
 0x22a   : > { %v1084_v17 = vsel %vm1072_vm9, %v1082_v16, %v1083_v61  ;;  %v1035_v18 = vsel %vm1023_vm5, %v1033_v62, %v1034_v0  ;;  %v1091_v49 = vrot.slane %v6486_v23, 3  ;;  %v1092_v29 = vrot.slane %v6488_v28, 3  ;;  %v5457_v61 = vld [vmem:[%s7896_s7 + $0x58] sm:$0xff]  }
 0x22b   : > { %2781 = vmatpush1.bf16.msra.mxu0 %v5455_v4  ;;  %v5323_v30 = vpack.i.bf16 %v1087_v36, %v1084_v17  ;;  %v5318_v33 = vpack.i.bf16 %v1038_v20, %v1035_v18  ;;  %v6496_v35 = vld [vmem:[#allocation3 + $0x50] sm:$0xff]  ;;  %v793_v42 = vld [vmem:[#allocation3 + $0x58] sm:$0xf]  ;;  %v1133_v24 = vsel %vm1121_vm10, %v1131_v26, %v1132_v7  ;;  %v986_v60 = vsel %vm974_vm6, %v984_v57, %v985_v11 }
 0x22c   : > { %2782 = vmatprep.subr.bf16.mxu0 %v5665_v2  ;;  %v1088_v47 = vrot.slane %v6496_v35, 3  ;;  %v1089_v51 = vrot.slane %v793_v42, 3  ;;  %v1039_v4 = vrot.slane %v6496_v35, 2  ;;  %v1040_v41 = vrot.slane %v793_v42, 2 }
 0x22d   : > { %5324 = vrot.lane.b32.xlu0 %v5323_v30, %s7898_s18  ;;  %5319 = vrot.lane.b32.xlu1 %v5318_v33, %s7870_s30  ;;  %v1136_v55 = vsel %vm1121_vm10, %v1134_v59, %v1135_v63  ;;  %v989_v21 = vsel %vm974_vm6, %v987_v13, %v988_v22  ;;  %v1042_v36 = vrot.slane %v6486_v23, 2  ;;  %v1043_v16 = vrot.slane %v6488_v28, 2 }
 0x22e   : > { %v5333_v62 = vpack.i.bf16 %v1136_v55, %v1133_v24  ;;  %v5328_v0 = vpack.i.bf16 %v989_v21, %v986_v60  ;;  %v1090_v26 = vsel %vm1072_vm9, %v1088_v47, %v1089_v51  ;;  %v1041_v7 = vsel %vm1023_vm5, %v1039_v4, %v1040_v41  ;;  %v6532_v60 = vld [vmem:[#allocation3 + $0x80] sm:$0xff] }
 0x22f   : > { %2783 = vmatpush1.bf16.msra.mxu0 %v5456_v25  ;;  %v1137_v59 = vrot.slane %v6496_v35, 4  ;;  %v1138_v63 = vrot.slane %v793_v42, 4  ;;  %v990_v13 = vrot.slane %v6496_v35, 1  ;;  %v6519_v57 = vld [vmem:[#allocation3 + $0x70] sm:$0xff]  ;;  %v6521_v11 = vld [vmem:[#allocation3 + $0x78] sm:$0xf]  ;;  %v2500_v17 = vpack.c.bf16 %v6277_v38, %v2492_v31 }
 0x230   : > { %2784 = vmatprep.subr.bf16.mxu0 %v5665_v2  ;;  %v1093_v18 = vsel %vm1072_vm9, %v1091_v49, %v1092_v29  ;;  %v1140_v20 = vrot.slane %v6486_v23, 4  ;;  %v991_v22 = vrot.slane %v793_v42, 1  ;;  %v1044_v25 = vsel %vm1023_vm5, %v1042_v36, %v1043_v16  ;;  %v799_v38 = vld [vmem:[#allocation3 + $0x88] sm:$0xf]  ;;  %v5458_v51 = vld [vmem:[%s7896_s7 + $0xc0] sm:$0xff]  }
 0x231   : > { %5334 = vrot.lane.b32.xlu0 %v5333_v62, %s7899_s29  ;;  %5329 = vrot.lane.b32.xlu1 %v5328_v0, %s7868_s1  ;;  %v1141_v30 = vrot.slane %v6488_v28, 4  ;;  %v993_v33 = vrot.slane %v6486_v23, 1  ;;  %v994_v24 = vrot.slane %v6488_v28, 1  ;;  %v5343_v31 = vpack.i.bf16 %v1093_v18, %v1090_v26 }
 0x232   : > { %v5338_v47 = vpack.i.bf16 %v1044_v25, %v1041_v7  ;;  %v1094_v42 = vrot.slane %v6519_v57, 3  ;;  %v1095_v49 = vrot.slane %v6521_v11, 3  ;;  %v1139_v29 = vsel %vm1121_vm10, %v1137_v59, %v1138_v63  ;;  %v5459_v7 = vld [vmem:[%s7896_s7 + $0xc8] sm:$0xff]  }
 0x233   : > { %2785 = vmatpush1.bf16.msra.mxu0 %v5457_v61  ;;  %v992_v28 = vsel %vm974_vm6, %v990_v13, %v991_v22  ;;  %v1045_v4 = vrot.slane %v6519_v57, 2  ;;  %v1046_v41 = vrot.slane %v6521_v11, 2  ;;  %v1227_v55 = vrot.slane %v6532_v60, 3 }
 0x234   : > { %2917 = vmatprep.subr.bf16.mxu0 %v5665_v2  ;;  %v1228_v21 = vrot.slane %v799_v38, 3  ;;  %v1142_v36 = vsel %vm1121_vm10, %v1140_v20, %v1141_v30  ;;  %v995_v16 = vsel %vm974_vm6, %v993_v33, %v994_v24  ;;  %v1221_v61 = vrot.slane %v6532_v60, 2 }
 0x235   : > { %5344 = vrot.lane.b32.xlu0 %v5343_v31, %s7898_s18  ;;  %5339 = vrot.lane.b32.xlu1 %v5338_v47, %s7870_s30  ;;  %v1222_v62 = vrot.slane %v799_v38, 2  ;;  %v5353_v0 = vpack.i.bf16 %v1142_v36, %v1139_v29  ;;  %v5348_v26 = vpack.i.bf16 %v995_v16, %v992_v28  ;;  %v1096_v59 = vsel %vm1072_vm9, %v1094_v42, %v1095_v49  ;;  %v6568_v47 = vld [vmem:[#allocation3] sm:$0xff]  ;;  %v5460_v49 = vld [vmem:[%s7896_s7 + $0xd0] sm:$0xff]  }
 0x236   : > { %2795 = vmatmul.mubr.bf16.vlgmr.msra.gmra.mrb[0].mxu0 %v2500_v17  ;;  %v1143_v63 = vrot.slane %v6519_v57, 4  ;;  %v1047_v13 = vsel %vm1023_vm5, %v1045_v4, %v1046_v41  ;;  %v1144_v17 = vrot.slane %v6521_v11, 4  ;;  %v996_v18 = vrot.slane %v6519_v57, 1 }
 0x237   : > { %4800 = vmatprep.mubr.msk.bf16.mxu0 %vm1196_vm2, %v6103_v39  ;;  %2918 = vmatpush1.bf16.msra.mxu0 %v5458_v51  ;;  %v997_v20 = vrot.slane %v6521_v11, 1  ;;  %v1229_v22 = vsel %vm1072_vm9, %v1227_v55, %v1228_v21  ;;  %v1233_v25 = vrot.slane %v6532_v60, 4  ;;  %v1223_v30 = vsel %vm1023_vm5, %v1221_v61, %v1222_v62  ;;  %v783_v51 = vld [vmem:[#allocation3 + $0x8] sm:$0xf]  ;;  %v5461_v61 = vld [vmem:[%s7896_s7 + $0xd8] sm:$0xff]  }
 0x238   : > { %2919 = vmatprep.subr.bf16.mxu0 %v5665_v2  ;;  %v1234_v33 = vrot.slane %v799_v38, 4  ;;  %v1215_v24 = vrot.slane %v6532_v60, 1  ;;  %v1216_v31 = vrot.slane %v799_v38, 1  ;;  %v5363_v42 = vpack.i.bf16 %v1229_v22, %v1096_v59  ;;  %v5463_v22 = vld [vmem:[%s7896_s7 + $0xe8] sm:$0xff]  }
 0x239   : > { %5354 = vrot.lane.b32.xlu0 %v5353_v0, %s7899_s29  ;;  %5349 = vrot.lane.b32.xlu1 %v5348_v26, %s7868_s1  ;;  %v5358_v11 = vpack.i.bf16 %v1223_v30, %v1047_v13  ;;  %v6575_v29 = vpack.c.bf16 %v6305_v56, %v6281_v50  ;;  %v1145_v28 = vsel %vm1121_vm10, %v1143_v63, %v1144_v17  ;;  %v1073_v4 = vrot.slane %v6568_v47, 3  ;;  %v5462_v13 = vld [vmem:[%s7896_s7 + $0xe0] sm:$0xff]   ;;  %v5469_v30 = vld [vmem:[%s7896_s7 + $0x118] sm:$0xff]  }
 0x23a   : > { %v998_v38 = vsel %vm974_vm6, %v996_v18, %v997_v20  ;;  %v1074_v41 = vrot.slane %v783_v51, 3  ;;  %v1235_v55 = vsel %vm1121_vm10, %v1233_v25, %v1234_v33  ;;  %v1217_v50 = vsel %vm974_vm6, %v1215_v24, %v1216_v31  ;;  %v5465_v25 = vld [vmem:[%s7896_s7 + $0xf8] sm:$0xff]  }
 0x23b   : > { %2920 = vmatpush1.bf16.msra.mxu0 %v5459_v7  ;;  %v1024_v56 = vrot.slane %v6568_v47, 2  ;;  %v1025_v21 = vrot.slane %v783_v51, 2  ;;  %v5373_v36 = vpack.i.bf16 %v1235_v55, %v1145_v28  ;;  %v5368_v16 = vpack.i.bf16 %v1217_v50, %v998_v38 }
 0x23c   : > { %2921 = vmatprep.subr.bf16.mxu0 %v5665_v2  ;;  %v1122_v62 = vrot.slane %v6568_v47, 4  ;;  %v1123_v0 = vrot.slane %v783_v51, 4  ;;  %v1075_v26 = vsel %vm1072_vm9, %v1073_v4, %v1074_v41  ;;  %v975_v59 = vrot.slane %v6568_v47, 1 }
 0x23d   : > { %5364 = vrot.lane.b32.xlu0 %v5363_v42, %s7898_s18  ;;  %5359 = vrot.lane.b32.xlu1 %v5358_v11, %s7870_s30  ;;  %v1026_v7 = vsel %vm1023_vm5, %v1024_v56, %v1025_v21  ;;  %v976_v63 = vrot.slane %v783_v51, 1  ;;  %v2504_v17 = vpack.c.bf16 %v6335_v1, %v6309_v34  ;;  %v5464_v34 = vld [vmem:[%s7896_s7 + $0xf0] sm:$0xff]   ;;  %v2506_v1 = vpack.c.bf16 %v6373_v10, %v6339_v9  ;;  %v5466_v9 = vld [vmem:[%s7896_s7 + $0x100] sm:$0xff]  }
 0x23e   : > { %2803 = vmatmul.mubr.bf16.gmra.mrb[4].mxu0 %v6575_v29  ;;  %v1124_v18 = vsel %vm1121_vm10, %v1122_v62, %v1123_v0  ;;  %v5467_v10 = vld [vmem:[%s7896_s7 + $0x108] sm:$0xff]   ;;  %v5485_v21 = vld [vmem:[%s7897_s4] sm:$0xff]  }
 0x23f   : > { %4801 = vmatprep.mubr.msk.bf16.mxu0 %vm1196_vm2, %v6132_v15  ;;  %2922 = vmatpush1.bf16.msra.mxu0 %v5460_v49  ;;  %v977_v20 = vsel %vm974_vm6, %v975_v59, %v976_v63 }
 0x240   : > { %2923 = vmatprep.subr.bf16.mxu0 %v5665_v2 }
 0x241   : > { %5374 = vrot.lane.b32.xlu0 %v5373_v36, %s7899_s29  ;;  %5369 = vrot.lane.b32.xlu1 %v5368_v16, %s7868_s1 }
 0x243   : > { %2924 = vmatpush1.bf16.msra.mxu0 %v5461_v61 }
 0x244   : > { %2925 = vmatprep.subr.bf16.mxu0 %v5665_v2 }
 0x245   : > { %1097 = vrot.lane.b32.xlu0 %v1075_v26, %s7898_s18  ;;  %1048 = vrot.lane.b32.xlu1 %v1026_v7, %s7870_s30  ;;  %v5486_v26 = vld [vmem:[%s7897_s4 + $0x8] sm:$0xff]  }
 0x246   : > { %2811 = vmatmul.mubr.bf16.gmra.mrb[8].mxu0 %v2504_v17 }
 0x247   : > { %4802 = vmatprep.mubr.msk.bf16.mxu0 %vm1196_vm2, %v6210_v52  ;;  %2926 = vmatpush1.bf16.msra.mxu0 %v5462_v13 }
 0x248   : > { %2927 = vmatprep.subr.bf16.mxu0 %v5665_v2 }
 0x249   : > { %1146 = vrot.lane.b32.xlu0 %v1124_v18, %s7899_s29  ;;  %999 = vrot.lane.b32.xlu1 %v977_v20, %s7868_s1 }
 0x24b   : > { %2928 = vmatpush1.bf16.msra.mxu0 %v5463_v22 }
 0x24c   : > { %2929 = vmatprep.subr.bf16.mxu0 %v5665_v2 }
 0x24d   : > { %763 = vrot.lane.b32.xlu1 %v5999_v32, %s7899_s29 }
 0x24e   : > { %2819 = vmatmul.mubr.bf16.gmra.mrb[12].mxu0 %v2506_v1 }
 0x24f   : > { %2930 = vmatpush1.bf16.msra.mxu0 %v5464_v34  ;;  %4815 = vmatprep.mubr.msk.bf16.mxu0 %vm1196_vm2, %v6103_v39  ;;  %v5468_v39 = vld [vmem:[%s7896_s7 + $0x110] sm:$0xff]  }
 0x250   : > { %2931 = vmatprep.subr.bf16.mxu0 %v5665_v2 }
 0x253   : > { %2932 = vmatpush1.bf16.msra.mxu0 %v5465_v25 }
 0x254   : > { %2933 = vmatprep.subr.bf16.mxu0 %v5665_v2 }
 0x257   : > { %2934 = vmatpush1.bf16.msra.mxu0 %v5466_v9 }
 0x258   : > { %2935 = vmatprep.subr.bf16.mxu0 %v5665_v2 }
 0x25b   : > { %2936 = vmatpush1.bf16.msra.mxu0 %v5467_v10 }
 0x25c   : > { %2937 = vmatprep.subr.bf16.mxu0 %v5665_v2 }
 0x25f   : > { %2938 = vmatpush1.bf16.msra.mxu0 %v5468_v39 }
 0x260   : > { %2939 = vmatprep.subr.bf16.mxu0 %v5665_v2 }
 0x263   : > { %2940 = vmatpush1.bf16.msra.mxu0 %v5469_v30 }
 0x266   : > { %2950 = vmatmul.mubr.bf16.vlgmr.msra.gmra.mrb[0].mxu0 %v6575_v29 }
 0x267   : > { %4816 = vmatprep.mubr.msk.bf16.mxu0 %vm1196_vm2, %v6132_v15 }
 0x26e   : > { %2958 = vmatmul.mubr.bf16.gmra.mrb[4].mxu0 %v2504_v17 }
 0x26f   : > { %4817 = vmatprep.mubr.msk.bf16.mxu0 %vm1196_vm2, %v6210_v52 }
 0x276   : > { %2966 = vmatmul.mubr.bf16.gmra.mrb[8].mxu0 %v2506_v1 }
 0x277   : > { %4818 = vmatprep.mubr.msk.bf16.mxu0 %vm1196_vm2, %v2841_v14 }
 0x27e   : > { %2974 = vmatmul.mubr.bf16.gmra.mrb[12].mxu0 %v2840_v44 }
 0x297   : > { %v5305_v33 = vpop.permute.xlu0 %5304  ;;  %v5300_v24 = vpop.permute.xlu1 %5299 }
 0x298   : > { %v5307_v31 = vunpack.i.h.bf16 %v5305_v33  ;;  %v5306_v51 = vunpack.i.l.bf16 %v5305_v33  ;;  %v5302_v42 = vunpack.i.h.bf16 %v5300_v24  ;;  %v5301_v15 = vunpack.i.l.bf16 %v5300_v24 }
 0x29a   : > { %v1190_v3 = vsel %vm1187_vm4, %v5302_v42, %v5307_v31  ;;  %v1189_v6 = vsel %vm1187_vm4, %v5301_v15, %v5306_v51 }
 0x29b   : > { %v5315_v11 = vpop.permute.xlu0 %5314  ;;  %v5310_v49 = vpop.permute.xlu1 %5309 }
 0x29c   : > { %v5317_v29 = vunpack.i.h.bf16 %v5315_v11  ;;  %v5316_v52 = vunpack.i.l.bf16 %v5315_v11  ;;  %v5312_v28 = vunpack.i.h.bf16 %v5310_v49  ;;  %v5311_v38 = vunpack.i.l.bf16 %v5310_v49 }
 0x29e   : > { %v6662_v14 = vsel %vm1196_vm2, %v1189_v6, %v5316_v52  ;;  %v6665_v45 = vsel %vm1196_vm2, %v1190_v3, %v5317_v29  ;;  %v1172_v43 = vsel %vm715_vm7, %v6408_v53, %v5312_v28  ;;  %v1171_v44 = vsel %vm715_vm7, %v6361_v19, %v5311_v38  ;;  %v5488_v28 = vld [vmem:[%s7897_s4 + $0x18] sm:$0xff]  }
 0x29f   : > { %v1244_v4 = vpack.c.bf16 %v6665_v45, %v6662_v14  ;;  %v6674_v41 = vsel %vm1178_vm11, %v1171_v44, %v5301_v15  ;;  %v6677_v55 = vsel %vm1178_vm11, %v1172_v43, %v5302_v42  ;;  %v5325_v50 = vpop.permute.xlu0 %5324  ;;  %v5320_v56 = vpop.permute.xlu1 %5319 }
 0x2a0   : > { %v1243_v53 = vpack.c.bf16 %v6677_v55, %v6674_v41  ;;  %v5327_v36 = vunpack.i.h.bf16 %v5325_v50  ;;  %v5326_v19 = vunpack.i.l.bf16 %v5325_v50  ;;  %v5322_v16 = vunpack.i.h.bf16 %v5320_v56 }
 0x2a1   : > { %v5321_v61 = vunpack.i.l.bf16 %v5320_v56  ;;  %4689 = vmatprep.mubr.msk.bf16.mxu1 %vm1341_vm12, %v1244_v4 }
 0x2a2   : > { %1387 = vmatmul.mubr.bf16.vlgmr.msra.gmra.mrb[16].mxu1 %v1243_v53  ;;  %v1192_v17 = vsel %vm1187_vm4, %v5322_v16, %v5327_v36 }
 0x2a3   : > { %1522 = vmatpush1.bf16.msra.mxu1 %v5485_v21  ;;  %v5335_v62 = vpop.permute.xlu0 %5334  ;;  %v5330_v0 = vpop.permute.xlu1 %5329  ;;  %v1191_v18 = vsel %vm1187_vm4, %v5321_v61, %v5326_v19 }
 0x2a4   : > { %v5337_v7 = vunpack.i.h.bf16 %v5335_v62  ;;  %v5336_v59 = vunpack.i.l.bf16 %v5335_v62  ;;  %v5332_v63 = vunpack.i.h.bf16 %v5330_v0  ;;  %v5331_v13 = vunpack.i.l.bf16 %v5330_v0  ;;  %1523 = vmatprep.subr.bf16.mxu1 %v5665_v2 }
 0x2a6   : > { %v6692_v20 = vsel %vm1196_vm2, %v1191_v18, %v5336_v59  ;;  %v6695_v22 = vsel %vm1196_vm2, %v1192_v17, %v5337_v7  ;;  %v1174_v34 = vsel %vm715_vm7, %v6451_v46, %v5332_v63  ;;  %v1173_v1 = vsel %vm715_vm7, %v6468_v48, %v5331_v13  ;;  %v5487_v46 = vld [vmem:[%s7897_s4 + $0x10] sm:$0xff]   ;;  %v5490_v17 = vld [vmem:[%s7897_s4 + $0x28] sm:$0xff]  }
 0x2a7   : > { %v6703_v25 = vpack.c.bf16 %v6695_v22, %v6692_v20  ;;  %1524 = vmatpush1.bf16.msra.mxu1 %v5486_v26  ;;  %v5345_v9 = vpop.permute.xlu0 %5344  ;;  %v5340_v10 = vpop.permute.xlu1 %5339  ;;  %v6706_v39 = vsel %vm1178_vm11, %v1173_v1, %v5321_v61  ;;  %v6709_v30 = vsel %vm1178_vm11, %v1174_v34, %v5322_v16 }
 0x2a8   : > { %v5347_v33 = vunpack.i.h.bf16 %v5345_v9  ;;  %1525 = vmatprep.subr.bf16.mxu1 %v5665_v2  ;;  %v5346_v48 = vunpack.i.l.bf16 %v5345_v9  ;;  %v5342_v24 = vunpack.i.h.bf16 %v5340_v10  ;;  %v5341_v31 = vunpack.i.l.bf16 %v5340_v10 }
 0x2a9   : > { %4690 = vmatprep.mubr.msk.bf16.mxu1 %vm1341_vm12, %v6703_v25  ;;  %v6719_v51 = vpack.c.bf16 %v6709_v30, %v6706_v39 }
 0x2aa   : > { %v1194_v38 = vsel %vm1187_vm4, %v5342_v24, %v5347_v33  ;;  %v1193_v3 = vsel %vm1187_vm4, %v5341_v31, %v5346_v48 }
 0x2ab   : > { %1395 = vmatmul.mubr.bf16.gmra.mrb[20].mxu1 %v6719_v51  ;;  %v5355_v42 = vpop.permute.xlu0 %5354  ;;  %v5350_v15 = vpop.permute.xlu1 %5349 }
 0x2ac   : > { %1526 = vmatpush1.bf16.msra.mxu1 %v5487_v46  ;;  %v5357_v11 = vunpack.i.h.bf16 %v5355_v42  ;;  %v5356_v49 = vunpack.i.l.bf16 %v5355_v42  ;;  %v5352_v29 = vunpack.i.h.bf16 %v5350_v15  ;;  %v5351_v52 = vunpack.i.l.bf16 %v5350_v15 }
 0x2ad   : > { %1527 = vmatprep.subr.bf16.mxu1 %v5665_v2 }
 0x2ae   : > { %v6729_v6 = vsel %vm1196_vm2, %v1193_v3, %v5356_v49  ;;  %v6732_v43 = vsel %vm1196_vm2, %v1194_v38, %v5357_v11  ;;  %v1176_v44 = vsel %vm715_vm7, %v6486_v23, %v5352_v29  ;;  %v1175_v4 = vsel %vm715_vm7, %v6496_v35, %v5351_v52  ;;  %v5489_v23 = vld [vmem:[%s7897_s4 + $0x20] sm:$0xff]   ;;  %v5492_v52 = vld [vmem:[%s7897_s4 + $0x38] sm:$0xff]   ;;  %v5494_v3 = vld [vmem:[%s7897_s4 + $0x48] sm:$0xff]  }
 0x2af   : > { %v6740_v50 = vpack.c.bf16 %v6732_v43, %v6729_v6  ;;  %v5365_v56 = vpop.permute.xlu0 %5364  ;;  %v5360_v21 = vpop.permute.xlu1 %5359  ;;  %v6743_v53 = vsel %vm1178_vm11, %v1175_v4, %v5341_v31  ;;  %v6746_v36 = vsel %vm1178_vm11, %v1176_v44, %v5342_v24 }
 0x2b0   : > { %1528 = vmatpush1.bf16.msra.mxu1 %v5488_v28  ;;  %v5367_v19 = vunpack.i.h.bf16 %v5365_v56  ;;  %v5366_v16 = vunpack.i.l.bf16 %v5365_v56  ;;  %v5362_v35 = vunpack.i.h.bf16 %v5360_v21  ;;  %v5361_v61 = vunpack.i.l.bf16 %v5360_v21 }
 0x2b1   : > { %4691 = vmatprep.mubr.msk.bf16.mxu1 %vm1341_vm12, %v6740_v50  ;;  %1529 = vmatprep.subr.bf16.mxu1 %v5665_v2  ;;  %v6756_v62 = vpack.c.bf16 %v6746_v36, %v6743_v53 }
 0x2b2   : > { %v1241_v18 = vsel %vm1187_vm4, %v5362_v35, %v5367_v19  ;;  %v1195_v34 = vsel %vm1187_vm4, %v5361_v61, %v5366_v16  ;;  %v5497_v16 = vld [vmem:[%s7897_s4 + $0x60] sm:$0xff]  }
 0x2b3   : > { %1403 = vmatmul.mubr.bf16.gmra.mrb[24].mxu1 %v6756_v62  ;;  %v5375_v0 = vpop.permute.xlu0 %5374  ;;  %v5370_v26 = vpop.permute.xlu1 %5369 }
 0x2b4   : > { %1530 = vmatpush1.bf16.msra.mxu1 %v5489_v23  ;;  %v5377_v7 = vunpack.i.h.bf16 %v5375_v0  ;;  %v5376_v59 = vunpack.i.l.bf16 %v5375_v0  ;;  %v5372_v63 = vunpack.i.h.bf16 %v5370_v26  ;;  %v5371_v13 = vunpack.i.l.bf16 %v5370_v26  ;;  %v5496_v23 = vld [vmem:[%s7897_s4 + $0x58] sm:$0xff]   ;;  %v5499_v0 = vld [vmem:[%s7897_s4 + $0x70] sm:$0xff]  }
 0x2b5   : > { %1531 = vmatprep.subr.bf16.mxu1 %v5665_v2 }
 0x2b6   : > { %v6766_v1 = vsel %vm1196_vm2, %v1195_v34, %v5376_v59  ;;  %v6769_v9 = vsel %vm1196_vm2, %v1241_v18, %v5377_v7  ;;  %v1239_v10 = vsel %vm715_vm7, %v6532_v60, %v5372_v63  ;;  %v1177_v33 = vsel %vm715_vm7, %v6519_v57, %v5371_v13  ;;  %v5491_v57 = vld [vmem:[%s7897_s4 + $0x30] sm:$0xff]   ;;  %v5501_v63 = vld [vmem:[%s7897_s4 + $0xf8] sm:$0xff]  }
 0x2b7   : > { %v6777_v46 = vpack.c.bf16 %v6769_v9, %v6766_v1  ;;  %v1098_v48 = vpop.permute.xlu0 %1097  ;;  %v1049_v24 = vpop.permute.xlu1 %1048  ;;  %v6780_v31 = vsel %vm1178_vm11, %v1177_v33, %v5361_v61  ;;  %v6783_v42 = vsel %vm1178_vm11, %v1239_v10, %v5362_v35  ;;  %v5498_v35 = vld [vmem:[%s7897_s4 + $0x68] sm:$0xff]   ;;  %v5500_v7 = vld [vmem:[%s7897_s4 + $0xf0] sm:$0xff]   ;;  %v6871_v13 = vpack.c.bf16 %v6706_v39, %v6677_v55  ;;  %v5522_v34 = vld [vmem:[%s7857_s10 + $0xd8] sm:$0xff]  }
 0x2b8   : > { %1532 = vmatpush1.bf16.msra.mxu1 %v5490_v17  ;;  %v6787_v15 = vpack.c.bf16 %v6783_v42, %v6780_v31  ;;  %v1188_v60 = vsel %vm1187_vm4, %v1049_v24, %v1098_v48  ;;  %v5504_v55 = vld [vmem:[%s7897_s4 + $0x110] sm:$0xff]   ;;  %v6895_v39 = vpack.c.bf16 %v6766_v1, %v6732_v43  ;;  %v6909_v43 = vpack.c.bf16 %v6780_v31, %v6746_v36  ;;  %v5509_v1 = vld [vmem:[%s7897_s4 + $0x138] sm:$0xff]   ;;  %v5525_v33 = vld [vmem:[%s7857_s10 + $0xe0] sm:$0xff]  }
 0x2b9   : > { %4692 = vmatprep.mubr.msk.bf16.mxu1 %vm1341_vm12, %v6777_v46  ;;  %1533 = vmatprep.subr.bf16.mxu1 %v5665_v2  ;;  %v5508_v17 = vld [vmem:[%s7897_s4 + $0x130] sm:$0xff]   ;;  %v5523_v10 = vld [vmem:[%s7857_s10 + $0x98] sm:$0xff]   ;;  %v5510_v48 = vld [vmem:[%s7897_s4 + $0x140] sm:$0xff]  }
 0x2ba   : > { %v5519_v36 = vld [vmem:[%s7857_s10 + $0xd0] sm:$0xff]   ;;  %v5528_v31 = vld [vmem:[%s7857_s10 + $0xe8] sm:$0xff]  }
 0x2bb   : > { %1411 = vmatmul.mubr.bf16.gmra.mrb[28].mxu1 %v6787_v15  ;;  %v1147_v11 = vpop.permute.xlu0 %1146  ;;  %v1000_v49 = vpop.permute.xlu1 %999  ;;  %v5520_v18 = vld [vmem:[%s7857_s10 + $0x90] sm:$0xff]   ;;  %4904 = vmatprep.subr.bf16.mxu0 %v5519_v36 }
 0x2bc   : > { %1534 = vmatpush1.bf16.msra.mxu1 %v5491_v57  ;;  %v1197_v29 = vsel %vm1196_vm2, %v1188_v60, %v1147_v11  ;;  %v1170_v61 = vsel %vm715_vm7, %v6568_v47, %v1000_v49  ;;  %v1208_v47 = vpack.c.bf16 %v6692_v20, %v6665_v45  ;;  %v6876_v45 = vpack.c.bf16 %v6729_v6, %v6695_v22  ;;  %v5503_v20 = vld [vmem:[%s7897_s4 + $0x108] sm:$0xff]   ;;  %v5505_v6 = vld [vmem:[%s7897_s4 + $0x118] sm:$0xff]   ;;  %v5531_v11 = vld [vmem:[%s7857_s10 + $0xf0] sm:$0xff]  }
 0x2bd   : > { %v1206_v28 = vpack.c.bf16 %v6662_v14, %v1197_v29  ;;  %1535 = vmatprep.subr.bf16.mxu1 %v5665_v2  ;;  %v5493_v14 = vld [vmem:[%s7897_s4 + $0x40] sm:$0xff]   ;;  %v1179_v26 = vsel %vm1178_vm11, %v1170_v61, %v1049_v24  ;;  %v6890_v22 = vpack.c.bf16 %v6743_v53, %v6709_v30  ;;  %v5507_v53 = vld [vmem:[%s7897_s4 + $0x128] sm:$0xff]   ;;  %4905 = vmatpush3.bf16.msra.mxu0 %v5520_v18  ;;  %v5512_v49 = vld [vmem:[%s7897_s4 + $0x150] sm:$0xff]  }
 0x2be   : > { %v1205_v59 = vpack.c.bf16 %v6674_v41, %v1179_v26  ;;  %v5502_v41 = vld [vmem:[%s7897_s4 + $0x100] sm:$0xff]   ;;  %4906 = vmatprep.subr.bf16.mxu0 %v5522_v34  ;;  %v5511_v57 = vld [vmem:[%s7897_s4 + $0x148] sm:$0xff]   ;;  %v5532_v29 = vld [vmem:[%s7857_s10 + $0xb0] sm:$0xff]  }
 0x2bf   : > { %v764_v38 = vpop.permute.xlu1 %763  ;;  %4708 = vmatprep.mubr.msk.bf16.mxu1 %vm1341_vm12, %v1206_v28  ;;  %v5506_v30 = vld [vmem:[%s7897_s4 + $0x120] sm:$0xff]   ;;  %v5529_v60 = vld [vmem:[%s7857_s10 + $0xa8] sm:$0xff]   ;;  %v5513_v28 = vld [vmem:[%s7897_s4 + $0x158] sm:$0xff]  }
 0x2c0   : > { %1536 = vmatpush1.bf16.msra.mxu1 %v5492_v52  ;;  %781 = vst.msk [vmem:[#allocation3 + $0x92] sm:$0xff] %vm715_vm7, %v764_v38  ;;  %v5526_v24 = vld [vmem:[%s7857_s10 + $0xa0] sm:$0xff]   ;;  %v5534_v52 = vld [vmem:[%s7857_s10 + $0xf8] sm:$0xff]  }
 0x2c1   : > { %1537 = vmatprep.subr.bf16.mxu1 %v5665_v2  ;;  %4907 = vmatpush3.bf16.msra.mxu0 %v5523_v10  ;;  %v5535_v38 = vld [vmem:[%s7857_s10 + $0xb8] sm:$0xff]   ;;  %v7030_v26 = vld [vmem:[%s7855_s8] ss:$0 sm:$0xff] }
 0x2c2   : > { %4908 = vmatprep.subr.bf16.mxu0 %v5525_v33  ;;  %v5527_v61 = vld [vmem:[%s7897_s4 + $0x198] sm:$0xff]  }
 0x2c4   : > { %1538 = vmatpush1.bf16.msra.mxu1 %v5493_v14  ;;  %v5537_v14 = vld [vmem:[%s7857_s10 + $0x100] sm:$0xff]  }
 0x2c5   : > { %1539 = vmatprep.subr.bf16.mxu1 %v5665_v2  ;;  %4909 = vmatpush3.bf16.msra.mxu0 %v5526_v24 }
 0x2c6   : > { %4910 = vmatprep.subr.bf16.mxu0 %v5528_v31 }
 0x2c7   : > { %v6823_v44 = vld [vmem:[#allocation3 + $0x90] sm:$0xff]  ;;  %v6825_v4 = vld [vmem:[#allocation3 + $0x98] sm:$0xf] }
 0x2c8   : > { %1540 = vmatpush1.bf16.msra.mxu1 %v5494_v3  ;;  %v1600_v56 = vrot.slane %v6823_v44, 3  ;;  %v1601_v21 = vrot.slane %v6825_v4, 3  ;;  %v5514_v3 = vld [vmem:[%s7897_s4 + $0x160] sm:$0xff]  }
 0x2c9   : > { %1541 = vmatprep.subr.bf16.mxu1 %v5665_v2  ;;  %4911 = vmatpush3.bf16.msra.mxu0 %v5529_v60  ;;  %v5539_v60 = vld [vmem:[%s7897_s4 + $0x1b8] sm:$0xff]  }
 0x2ca   : > { %v1602_v19 = vsel %vm1072_vm9, %v1600_v56, %v1601_v21  ;;  %4912 = vmatprep.subr.bf16.mxu0 %v5531_v11  ;;  %v5515_v56 = vld [vmem:[%s7897_s4 + $0x168] sm:$0xff]   ;;  %v5516_v21 = vld [vmem:[%s7897_s4 + $0x170] sm:$0xff]  }
 0x2cb   : > { %1603 = vrot.lane.b32.xlu1 %v1602_v19, %s7898_s18  ;;  %v5517_v19 = vld [vmem:[%s7897_s4 + $0x178] sm:$0xff]   ;;  %v5540_v11 = vld [vmem:[%s7857_s10 + $0x108] sm:$0xff]  }
 0x2cc   : > { %1542 = vmatpush1.bf16.msra.mxu1 %v5495_v5  ;;  %v5538_v5 = vld [vmem:[%s7857_s10 + $0xc0] sm:$0xff]  }
 0x2cd   : > { %1543 = vmatprep.subr.bf16.mxu1 %v5665_v2  ;;  %4913 = vmatpush3.bf16.msra.mxu0 %v5532_v29 }
 0x2ce   : > { %4914 = vmatprep.subr.bf16.mxu0 %v5534_v52 }
 0x2d0   : > { %1544 = vmatpush1.bf16.msra.mxu1 %v5496_v23  ;;  %v5518_v23 = vld [vmem:[%s7897_s4 + $0x180] sm:$0xff]  }
 0x2d1   : > { %1545 = vmatprep.subr.bf16.mxu1 %v5665_v2  ;;  %4915 = vmatpush3.bf16.msra.mxu0 %v5535_v38 }
 0x2d2   : > { %4916 = vmatprep.subr.bf16.mxu0 %v5537_v14 }
 0x2d4   : > { %1546 = vmatpush1.bf16.msra.mxu1 %v5497_v16  ;;  %v5521_v16 = vld [vmem:[%s7897_s4 + $0x188] sm:$0xff]  }
 0x2d5   : > { %1547 = vmatprep.subr.bf16.mxu1 %v5665_v2  ;;  %4917 = vmatpush3.bf16.msra.mxu0 %v5538_v5 }
 0x2d6   : > { %4918 = vmatprep.subr.bf16.mxu0 %v5540_v11 }
 0x2d8   : > { %1548 = vmatpush1.bf16.msra.mxu1 %v5498_v35  ;;  %v5524_v35 = vld [vmem:[%s7897_s4 + $0x190] sm:$0xff]  }
 0x2d9   : > { %1549 = vmatprep.subr.bf16.mxu1 %v5665_v2 }
 0x2dc   : > { %1550 = vmatpush1.bf16.msra.mxu1 %v5499_v0  ;;  %v5530_v0 = vld [vmem:[%s7897_s4 + $0x1a0] sm:$0xff]  }
 0x2dd   : > { %1711 = vmatprep.subr.bf16.mxu1 %v5665_v2 }
 0x2df   : > { %1554 = vmatmul.mubr.bf16.vlgmr.msra.gmra.mrb[16].mxu1 %v1205_v59  ;;  %v7038_v59 = vld [vmem:[%s7856_s9] ss:$0 sm:$0xff] }
 0x2e0   : > { %4709 = vmatprep.mubr.msk.bf16.mxu1 %vm1341_vm12, %v1208_v47  ;;  %1712 = vmatpush1.bf16.msra.mxu1 %v5500_v7  ;;  %v5533_v7 = vld [vmem:[%s7897_s4 + $0x1a8] sm:$0xff]  }
 0x2e1   : > { %1713 = vmatprep.subr.bf16.mxu1 %v5665_v2 }
 0x2e4   : > { %1714 = vmatpush1.bf16.msra.mxu1 %v5501_v63 }
 0x2e5   : > { %1715 = vmatprep.subr.bf16.mxu1 %v5665_v2 }
 0x2e7   : > { %1562 = vmatmul.mubr.bf16.gmra.mrb[20].mxu1 %v6871_v13 }
 0x2e8   : > { %4710 = vmatprep.mubr.msk.bf16.mxu1 %vm1341_vm12, %v6876_v45  ;;  %1716 = vmatpush1.bf16.msra.mxu1 %v5502_v41 }
 0x2e9   : > { %1717 = vmatprep.subr.bf16.mxu1 %v5665_v2 }
 0x2ec   : > { %1718 = vmatpush1.bf16.msra.mxu1 %v5503_v20 }
 0x2ed   : > { %1719 = vmatprep.subr.bf16.mxu1 %v5665_v2 }
 0x2ef   : > { %1570 = vmatmul.mubr.bf16.gmra.mrb[24].mxu1 %v6890_v22 }
 0x2f0   : > { %4711 = vmatprep.mubr.msk.bf16.mxu1 %vm1341_vm12, %v6895_v39  ;;  %1720 = vmatpush1.bf16.msra.mxu1 %v5504_v55 }
 0x2f1   : > { %1721 = vmatprep.subr.bf16.mxu1 %v5665_v2 }
 0x2f4   : > { %1722 = vmatpush1.bf16.msra.mxu1 %v5505_v6 }
 0x2f5   : > { %1723 = vmatprep.subr.bf16.mxu1 %v5665_v2 }
 0x2f7   : > { %1578 = vmatmul.mubr.bf16.gmra.mrb[28].mxu1 %v6909_v43 }
 0x2f8   : > { %1724 = vmatpush1.bf16.msra.mxu1 %v5506_v30  ;;  %4727 = vmatprep.mubr.msk.bf16.mxu1 %vm1341_vm12, %v1208_v47  ;;  %v5536_v30 = vld [vmem:[%s7897_s4 + $0x1b0] sm:$0xff]  }
 0x2f9   : > { %1725 = vmatprep.subr.bf16.mxu1 %v5665_v2 }
 0x2fc   : > { %1726 = vmatpush1.bf16.msra.mxu1 %v5507_v53 }
 0x2fd   : > { %1727 = vmatprep.subr.bf16.mxu1 %v5665_v2 }
 0x300   : > { %1728 = vmatpush1.bf16.msra.mxu1 %v5508_v17 }
 0x301   : > { %1729 = vmatprep.subr.bf16.mxu1 %v5665_v2 }
 0x304   : > { %1730 = vmatpush1.bf16.msra.mxu1 %v5509_v1 }
 0x305   : > { %1731 = vmatprep.subr.bf16.mxu1 %v5665_v2 }
 0x308   : > { %1732 = vmatpush1.bf16.msra.mxu1 %v5510_v48 }
 0x309   : > { %1733 = vmatprep.subr.bf16.mxu1 %v5665_v2 }
 0x30c   : > { %1734 = vmatpush1.bf16.msra.mxu1 %v5511_v57 }
 0x30d   : > { %1735 = vmatprep.subr.bf16.mxu1 %v5665_v2 }
 0x310   : > { %1736 = vmatpush1.bf16.msra.mxu1 %v5512_v49  ;;  %v5541_v49 = vld [vmem:[%s7857_s10 + $0xc8] sm:$0xff]  }
 0x311   : > { %1737 = vmatprep.subr.bf16.mxu1 %v5665_v2  ;;  %4919 = vmatpush3.bf16.msra.mxu0 %v5541_v49 }
 0x314   : > { %1738 = vmatpush1.bf16.msra.mxu1 %v5513_v28 }
 0x315   : > { %1739 = vmatprep.subr.bf16.mxu1 %v5665_v2 }
 0x318   : > { %1740 = vmatpush1.bf16.msra.mxu1 %v5514_v3 }
 0x319   : > { %1909 = vmatprep.subr.bf16.mxu1 %v5665_v2 }
 0x31b   : > { %1744 = vmatmul.mubr.bf16.vlgmr.msra.gmra.mrb[16].mxu1 %v6871_v13 }
 0x31c   : > { %4728 = vmatprep.mubr.msk.bf16.mxu1 %vm1341_vm12, %v6876_v45  ;;  %1910 = vmatpush1.bf16.msra.mxu1 %v5515_v56 }
 0x31d   : > { %1911 = vmatprep.subr.bf16.mxu1 %v5665_v2 }
 0x320   : > { %1912 = vmatpush1.bf16.msra.mxu1 %v5516_v21 }
 0x321   : > { %1913 = vmatprep.subr.bf16.mxu1 %v5665_v2 }
 0x323   : > { %1752 = vmatmul.mubr.bf16.gmra.mrb[20].mxu1 %v6890_v22 }
 0x324   : > { %4729 = vmatprep.mubr.msk.bf16.mxu1 %vm1341_vm12, %v6895_v39  ;;  %1914 = vmatpush1.bf16.msra.mxu1 %v5517_v19 }
 0x325   : > { %1915 = vmatprep.subr.bf16.mxu1 %v5665_v2 }
 0x328   : > { %1916 = vmatpush1.bf16.msra.mxu1 %v5518_v23 }
 0x329   : > { %1917 = vmatprep.subr.bf16.mxu1 %v5665_v2 }
 0x32b   : > { %1760 = vmatmul.mubr.bf16.gmra.mrb[24].mxu1 %v6909_v43 }
 0x32c   : > { %1918 = vmatpush1.bf16.msra.mxu1 %v5521_v16 }
 0x32d   : > { %1919 = vmatprep.subr.bf16.mxu1 %v5665_v2 }
 0x330   : > { %1920 = vmatpush1.bf16.msra.mxu1 %v5524_v35 }
 0x331   : > { %1921 = vmatprep.subr.bf16.mxu1 %v5665_v2 }
 0x334   : > { %1922 = vmatpush1.bf16.msra.mxu1 %v5527_v61 }
 0x335   : > { %1923 = vmatprep.subr.bf16.mxu1 %v5665_v2 }
 0x338   : > { %1924 = vmatpush1.bf16.msra.mxu1 %v5530_v0  ;;  %v1606_v0 = vrot.slane %v6823_v44, 4 }
 0x339   : > { %v2951_v47 = vpop.f32.mrb[0].mxu0  ;;  %1925 = vmatprep.subr.bf16.mxu1 %v5665_v2 }
 0x33a   : > { %v2996_v63 = vmul.f32 %v7030_v26, %v2951_v47  ;;  %v2953_v41 = vpop.f32.mrb[1].mxu0 }
 0x33b   : > { %v2954_v13 = vpop.f32.mrb[2].mxu0 }
 0x33c   : > { %v3010_v20 = vadd.f32 %v7038_v59, %v2996_v63  ;;  %v2997_v55 = vmul.f32 %v7030_v26, %v2954_v13  ;;  %v2956_v6 = vpop.f32.mrb[3].mxu0  ;;  %1926 = vmatpush1.bf16.msra.mxu1 %v5533_v7  ;;  %v5542_v7 = vld [vmem:[%s7897_s4 + $0x1c0] sm:$0xff]   ;;  %v1607_v13 = vrot.slane %v6825_v4, 4 }
 0x33d   : > { %1927 = vmatprep.subr.bf16.mxu1 %v5665_v2 }
 0x33e   : > { %v3018_v53 = vmax.f32 %v3010_v20, 0.0  ;;  %v3011_v17 = vadd.f32 %v7038_v59, %v2997_v55  ;;  %v1594_v20 = vrot.slane %v6823_v44, 2 }
 0x340   : > { %3048 = vst.msk [vmem:[#allocation5 + $0x11] sm:$0xff] %vm1178_vm11, %v3018_v53  ;;  %v3019_v36 = vmax.f32 %v3011_v17, 0.0  ;;  %1928 = vmatpush1.bf16.msra.mxu1 %v5536_v30 }
 0x341   : > { %v2959_v18 = vpop.f32.mrb[4].mxu0  ;;  %1929 = vmatprep.subr.bf16.mxu1 %v5665_v2 }
 0x342   : > { %3049 = vst.msk [vmem:[#allocation5 + $0x21] sm:$0xff] %vm1178_vm11, %v3019_v36  ;;  %v2998_v34 = vmul.f32 %v7030_v26, %v2959_v18  ;;  %v2961_v1 = vpop.f32.mrb[5].mxu0 }
 0x343   : > { %v2962_v10 = vpop.f32.mrb[6].mxu0  ;;  %v1595_v1 = vrot.slane %v6825_v4, 2 }
 0x344   : > { %v3012_v33 = vadd.f32 %v7038_v59, %v2998_v34  ;;  %v2999_v48 = vmul.f32 %v7030_v26, %v2962_v10  ;;  %v2964_v24 = vpop.f32.mrb[7].mxu0  ;;  %1930 = vmatpush1.bf16.msra.mxu1 %v5539_v60  ;;  %v5543_v10 = vld [vmem:[%s7897_s4 + $0x1c8] sm:$0xff]  }
 0x345   : > { %1931 = vmatprep.subr.bf16.mxu1 %v5665_v2 }
 0x346   : > { %v3020_v31 = vmax.f32 %v3012_v33, 0.0  ;;  %v3013_v57 = vadd.f32 %v7038_v59, %v2999_v48 }
 0x347   : > { %v7065_v29 = vld [vmem:[#allocation5 + $0x10] sm:$0xff]  ;;  %v3059_v52 = vld [vmem:[#allocation5 + $0x18] sm:$0x3] }
 0x348   : > { %3050 = vst.msk [vmem:[#allocation5 + $0x31] sm:$0xff] %vm1178_vm11, %v3020_v31  ;;  %v3021_v28 = vmax.f32 %v3013_v57, 0.0  ;;  %v3253_v38 = vrot.slane %v7065_v29, 2  ;;  %v3254_v14 = vrot.slane %v3059_v52, 2  ;;  %v3205_v21 = vrot.slane %v7065_v29, 1  ;;  %1932 = vmatpush1.bf16.msra.mxu1 %v5542_v7 }
 0x349   : > { %v2967_v3 = vpop.f32.mrb[8].mxu0  ;;  %v7069_v5 = vld [vmem:[#allocation5 + $0x20] sm:$0xff]  ;;  %v3061_v56 = vld [vmem:[#allocation5 + $0x28] sm:$0x3]  ;;  %v3206_v19 = vrot.slane %v3059_v52, 1  ;;  %1933 = vmatprep.subr.bf16.mxu1 %v5665_v2 }
 0x34a   : > { %3051 = vst.msk [vmem:[#allocation5 + $0x41] sm:$0xff] %vm1178_vm11, %v3021_v28  ;;  %v3000_v23 = vmul.f32 %v7030_v26, %v2967_v3  ;;  %v2969_v16 = vpop.f32.mrb[9].mxu0  ;;  %v3256_v35 = vrot.slane %v7069_v5, 2  ;;  %v3257_v61 = vrot.slane %v3061_v56, 2  ;;  %v3208_v63 = vrot.slane %v7069_v5, 1 }
 0x34b   : > { %v2970_v47 = vpop.f32.mrb[10].mxu0  ;;  %v3209_v41 = vrot.slane %v3061_v56, 1  ;;  %v3255_v53 = vsel %vm1023_vm5, %v3253_v38, %v3254_v14  ;;  %v3207_v18 = vsel %vm974_vm6, %v3205_v21, %v3206_v19  ;;  %v1608_v38 = vsel %vm1121_vm10, %v1606_v0, %v1607_v13  ;;  %v5544_v19 = vld [vmem:[%s7897_s4 + $0x1d0] sm:$0xff]  }
 0x34c   : > { %v3014_v55 = vadd.f32 %v7038_v59, %v3000_v23  ;;  %v3001_v6 = vmul.f32 %v7030_v26, %v2970_v47  ;;  %v2972_v30 = vpop.f32.mrb[11].mxu0  ;;  %v3258_v17 = vsel %vm1023_vm5, %v3256_v35, %v3257_v61  ;;  %1934 = vmatpush1.bf16.msra.mxu1 %v5543_v10  ;;  %v1596_v14 = vsel %vm1023_vm5, %v1594_v20, %v1595_v1 }
 0x34d   : > { %v5383_v36 = vpack.i.bf16 %v3258_v17, %v3255_v53  ;;  %v3210_v34 = vsel %vm974_vm6, %v3208_v63, %v3209_v41  ;;  %1935 = vmatprep.subr.bf16.mxu1 %v5665_v2  ;;  %v1588_v63 = vrot.slane %v6823_v44, 1  ;;  %v1589_v41 = vrot.slane %v6825_v4, 1  ;;  %v5545_v53 = vld [vmem:[%s7897_s4 + $0x1d8] sm:$0xff]  }
 0x34e   : > { %v3022_v33 = vmax.f32 %v3014_v55, 0.0  ;;  %v3015_v48 = vadd.f32 %v7038_v59, %v3001_v6  ;;  %v5378_v24 = vpack.i.bf16 %v3210_v34, %v3207_v18 }
 0x34f   : > { %5384 = vrot.lane.b32.xlu1 %v5383_v36, %s7899_s29  ;;  %v7096_v31 = vld [vmem:[#allocation5 + $0x30] sm:$0xff]  ;;  %v3063_v57 = vld [vmem:[#allocation5 + $0x38] sm:$0x3] }
 0x350   : > { %3052 = vst.msk [vmem:[#allocation5 + $0x51] sm:$0xff] %vm1178_vm11, %v3022_v33  ;;  %v3023_v60 = vmax.f32 %v3015_v48, 0.0  ;;  %5379 = vrot.lane.b32.xlu0 %v5378_v24, %s7900_s23  ;;  %v3211_v11 = vrot.slane %v7096_v31, 1  ;;  %v3212_v49 = vrot.slane %v3063_v57, 1  ;;  %v3259_v52 = vrot.slane %v7096_v31, 2  ;;  %1936 = vmatpush1.bf16.msra.mxu1 %v5544_v19  ;;  %v7145_v19 = vld [vmem:[#allocation3 + $0xa0] sm:$0xff] }
 0x351   : > { %v2975_v28 = vpop.f32.mrb[12].mxu0  ;;  %v7104_v3 = vld [vmem:[#allocation5 + $0x40] sm:$0xff]  ;;  %v3065_v56 = vld [vmem:[#allocation5 + $0x48] sm:$0x3]  ;;  %v3260_v21 = vrot.slane %v3063_v57, 2  ;;  %1937 = vmatprep.subr.bf16.mxu1 %v5665_v2 }
 0x352   : > { %3053 = vst.msk [vmem:[#allocation5 + $0x61] sm:$0xff] %vm1178_vm11, %v3023_v60  ;;  %v3002_v23 = vmul.f32 %v7030_v26, %v2975_v28  ;;  %v2977_v16 = vpop.f32.mrb[13].mxu0  ;;  %v3213_v35 = vsel %vm974_vm6, %v3211_v11, %v3212_v49  ;;  %v3262_v61 = vrot.slane %v7104_v3, 2  ;;  %v3263_v0 = vrot.slane %v3065_v56, 2 }
 0x353   : > { %1609 = vrot.lane.b32.xlu1 %v1608_v38, %s7899_s29  ;;  %v2978_v7 = vpop.f32.mrb[14].mxu0  ;;  %v5388_v47 = vpack.i.bf16 %v3213_v35, %v1596_v14  ;;  %v3261_v6 = vsel %vm1023_vm5, %v3259_v52, %v3260_v21  ;;  %v3214_v18 = vrot.slane %v7104_v3, 1  ;;  %v3215_v33 = vrot.slane %v3065_v56, 1 }
 0x354   : > { %v3016_v13 = vadd.f32 %v7038_v59, %v3002_v23  ;;  %v3003_v20 = vmul.f32 %v7030_v26, %v2978_v7  ;;  %v2980_v55 = vpop.f32.mrb[15].mxu0  ;;  %v3264_v30 = vsel %vm1023_vm5, %v3262_v61, %v3263_v0  ;;  %v1590_v26 = vsel %vm974_vm6, %v1588_v63, %v1589_v41  ;;  %1938 = vmatpush1.bf16.msra.mxu1 %v5545_v53  ;;  %v803_v23 = vld [vmem:[#allocation3 + $0xa8] sm:$0xf]  ;;  %v7149_v61 = vld [vmem:[#allocation5] sm:$0xff] }
 0x355   : > { %5389 = vrot.lane.b32.xlu0 %v5388_v47, %s7900_s23  ;;  %v5393_v17 = vpack.i.bf16 %v3264_v30, %v3261_v6  ;;  %2107 = vmatprep.subr.bf16.mxu1 %v5665_v2  ;;  %v3216_v14 = vsel %vm974_vm6, %v3214_v18, %v3215_v33  ;;  %v3057_v7 = vld [vmem:[#allocation5 + $0x8] sm:$0x3]  ;;  %v1798_v30 = vrot.slane %v7145_v19, 3  ;;  %v3202_v53 = vrot.slane %v7149_v61, 1 }
 0x356   : > { %v3024_v4 = vmax.f32 %v3016_v13, 0.0  ;;  %v3017_v36 = vadd.f32 %v7038_v59, %v3003_v20  ;;  %v1792_v13 = vrot.slane %v7145_v19, 2  ;;  %v1793_v20 = vrot.slane %v803_v23, 2 }
 0x357   : > { %5394 = vrot.lane.b32.xlu1 %v5393_v17, %s7899_s29  ;;  %v7130_v34 = vld [vmem:[#allocation5 + $0x50] sm:$0xff]  ;;  %v3067_v1 = vld [vmem:[#allocation5 + $0x58] sm:$0x3]  ;;  %v3203_v18 = vrot.slane %v3057_v7, 1  ;;  %v1799_v33 = vrot.slane %v803_v23, 3 }
 0x358   : > { %3054 = vst.msk [vmem:[#allocation5 + $0x71] sm:$0xff] %vm1178_vm11, %v3024_v4  ;;  %v3025_v10 = vmax.f32 %v3017_v36, 0.0  ;;  %v3265_v48 = vrot.slane %v7130_v34, 2  ;;  %v3266_v24 = vrot.slane %v3067_v1, 2  ;;  %v3217_v60 = vrot.slane %v7130_v34, 1 }
 0x359   : > { %1591 = vrot.lane.b32.xlu0 %v1590_v26, %s7901_s20  ;;  %v7135_v59 = vld [vmem:[#allocation5 + $0x60] sm:$0xff]  ;;  %v3069_v57 = vld [vmem:[#allocation5 + $0x68] sm:$0x3]  ;;  %v3218_v52 = vrot.slane %v3067_v1, 1 }
 0x35a   : > { %3055 = vst.msk [vmem:[#allocation5 + $0x81] sm:$0xff] %vm1178_vm11, %v3025_v10  ;;  %v3268_v11 = vrot.slane %v7135_v59, 2  ;;  %v3269_v49 = vrot.slane %v3069_v57, 2  ;;  %v3220_v28 = vrot.slane %v7135_v59, 1  ;;  %v3221_v38 = vrot.slane %v3069_v57, 1 }
 0x35b   : > { %v3267_v56 = vsel %vm1023_vm5, %v3265_v48, %v3266_v24  ;;  %v3219_v0 = vsel %vm974_vm6, %v3217_v60, %v3218_v52  ;;  %v1804_v48 = vrot.slane %v7145_v19, 4  ;;  %v1794_v60 = vsel %vm1023_vm5, %v1792_v13, %v1793_v20 }
 0x35c   : > { %v3270_v21 = vsel %vm1023_vm5, %v3268_v11, %v3269_v49  ;;  %v3222_v35 = vsel %vm974_vm6, %v3220_v28, %v3221_v38  ;;  %v1805_v11 = vrot.slane %v803_v23, 4  ;;  %v3250_v28 = vrot.slane %v7149_v61, 2 }
 0x35d   : > { %3234 = vrot.lane.b32.xlu0 %v3216_v14, %s7900_s23  ;;  %v5403_v16 = vpack.i.bf16 %v3270_v21, %v3267_v56  ;;  %v5398_v47 = vpack.i.bf16 %v3222_v35, %v3219_v0  ;;  %v3251_v38 = vrot.slane %v3057_v7, 2  ;;  %v7173_v14 = vld [vmem:[%s7857_s10 + $0x110] sm:$0xff]   ;;  %v3204_v35 = vsel %vm974_vm6, %v3202_v53, %v3203_v18  ;;  %v805_v53 = vld [vmem:[#allocation3 + $0xb8] sm:$0xf] }
 0x35e   : > { %5048 = vmatprep.subr.bf16.mxu0 %v7173_v14  ;;  %v1800_v7 = vsel %vm1072_vm9, %v1798_v30, %v1799_v33  ;;  %v1786_v20 = vrot.slane %v7145_v19, 1  ;;  %v2003_v33 = vrot.slane %v805_v53, 4 }
 0x35f   : > { %5404 = vrot.lane.b32.xlu1 %v5403_v16, %s7899_s29  ;;  %v7153_v63 = vld [vmem:[#allocation5 + $0x70] sm:$0xff]  ;;  %v3071_v41 = vld [vmem:[#allocation5 + $0x78] sm:$0x3]  ;;  %v3252_v13 = vsel %vm1023_vm5, %v3250_v28, %v3251_v38 }
 0x360   : > { %v3271_v55 = vrot.slane %v7153_v63, 2  ;;  %v3272_v6 = vrot.slane %v3071_v41, 2  ;;  %v3223_v36 = vrot.slane %v7153_v63, 1  ;;  %v3224_v26 = vrot.slane %v3071_v41, 1 }
 0x361   : > { %5399 = vrot.lane.b32.xlu0 %v5398_v47, %s7900_s23  ;;  %v7160_v17 = vld [vmem:[#allocation5 + $0x80] sm:$0xff]  ;;  %v3073_v4 = vld [vmem:[#allocation5 + $0x88] sm:$0x3]  ;;  %v5418_v47 = vpack.i.bf16 %v3204_v35, %v1794_v60  ;;  %v1806_v41 = vsel %vm1121_vm10, %v1804_v48, %v1805_v11  ;;  %v7198_v60 = vld [vmem:[#allocation5 + $0x90] sm:$0xff] }
 0x362   : > { %v3334_v1 = vrot.slane %v7160_v17, 2  ;;  %v3335_v10 = vrot.slane %v3073_v4, 2  ;;  %v3328_v24 = vrot.slane %v7160_v17, 1  ;;  %v3329_v57 = vrot.slane %v3073_v4, 1  ;;  %v3075_v11 = vld [vmem:[#allocation5 + $0x98] sm:$0x3] }
 0x363   : > { %v3273_v49 = vsel %vm1023_vm5, %v3271_v55, %v3272_v6  ;;  %v3225_v21 = vsel %vm974_vm6, %v3223_v36, %v3224_v26  ;;  %v1787_v55 = vrot.slane %v803_v23, 1  ;;  %v7185_v6 = vld [vmem:[#allocation3 + $0xb0] sm:$0xff]  ;;  %v5423_v4 = vpack.i.bf16 %v3252_v13, %v1806_v41 }
 0x364   : > { %v3336_v52 = vsel %vm1023_vm5, %v3334_v1, %v3335_v10  ;;  %v3330_v16 = vsel %vm974_vm6, %v3328_v24, %v3329_v57  ;;  %v1996_v36 = vrot.slane %v7185_v6, 3  ;;  %v1997_v26 = vrot.slane %v805_v53, 3 }
 0x365   : > { %v5413_v56 = vpack.i.bf16 %v3336_v52, %v3273_v49  ;;  %v5408_v0 = vpack.i.bf16 %v3330_v16, %v3225_v21  ;;  %v1788_v30 = vsel %vm974_vm6, %v1786_v20, %v1787_v55  ;;  %v1990_v18 = vrot.slane %v7185_v6, 2 }
 0x366   : > { %v1991_v1 = vrot.slane %v805_v53, 2  ;;  %v1998_v23 = vsel %vm1072_vm9, %v1996_v36, %v1997_v26  ;;  %v2002_v10 = vrot.slane %v7185_v6, 4  ;;  %v1984_v24 = vrot.slane %v7185_v6, 1 }
 0x367   : > { %5414 = vrot.lane.b32.xlu1 %v5413_v56, %s7899_s29  ;;  %5409 = vrot.lane.b32.xlu0 %v5408_v0, %s7900_s23  ;;  %v1985_v57 = vrot.slane %v805_v53, 1  ;;  %v3862_v52 = vrot.slane %v7198_v60, 2  ;;  %v3863_v28 = vrot.slane %v3075_v11, 2  ;;  %v3856_v56 = vrot.slane %v7198_v60, 1  ;;  %v1604_v0 = vpop.permute.xlu1 %1603 }
 0x368   : > { %v1992_v48 = vsel %vm1023_vm5, %v1990_v18, %v1991_v1  ;;  %v2004_v49 = vsel %vm1121_vm10, %v2002_v10, %v2003_v33  ;;  %v3857_v21 = vrot.slane %v3075_v11, 1 }
 0x369   : > { %v1986_v38 = vsel %vm974_vm6, %v1984_v24, %v1985_v57  ;;  %v3864_v16 = vsel %vm1023_vm5, %v3862_v52, %v3863_v28  ;;  %v5553_v52 = vld [vmem:[%s7857_s10 + $0x40] sm:$0xff]  }
 0x36a   : > { %v3858_v35 = vsel %vm974_vm6, %v3856_v56, %v3857_v21 }
 0x36b   : > { %1801 = vrot.lane.b32.xlu1 %v1800_v7, %s7898_s18  ;;  %5419 = vrot.lane.b32.xlu0 %v5418_v47, %s7900_s23 }
 0x36f   : > { %5424 = vrot.lane.b32.xlu1 %v5423_v4, %s7899_s29  ;;  %1789 = vrot.lane.b32.xlu0 %v1788_v30, %s7901_s20 }
 0x373   : > { %1999 = vrot.lane.b32.xlu1 %v1998_v23, %s7898_s18  ;;  %1993 = vrot.lane.b32.xlu0 %v1992_v48, %s7900_s23 }
 0x377   : > { %2005 = vrot.lane.b32.xlu1 %v2004_v49, %s7899_s29  ;;  %1987 = vrot.lane.b32.xlu0 %v1986_v38, %s7901_s20 }
 0x37b   : > { %3865 = vrot.lane.b32.xlu1 %v3864_v16, %s7899_s29  ;;  %3859 = vrot.lane.b32.xlu0 %v3858_v35, %s7900_s23 }
 0x3c1   : > { %v5385_v7 = vpop.permute.xlu1 %5384 }
 0x3c2   : > { %v7212_v47 = vunpack.i.h.bf16 %v5385_v7  ;;  %v7214_v41 = vunpack.i.l.bf16 %v5385_v7  ;;  %v5380_v13 = vpop.permute.xlu0 %5379 }
 0x3c3   : > { %v5382_v20 = vunpack.i.h.bf16 %v5380_v13  ;;  %v5381_v55 = vunpack.i.l.bf16 %v5380_v13 }
 0x3c5   : > { %v3300_v53 = vsel %vm1178_vm11, %v7069_v5, %v5382_v20  ;;  %v7220_v4 = vsel %vm1178_vm11, %v7065_v29, %v5381_v55  ;;  %v1610_v36 = vpop.permute.xlu1 %1609  ;;  %v7224_v26 = vsel %vm1196_vm2, %v5381_v55, %v7214_v41  ;;  %v7228_v30 = vsel %vm1196_vm2, %v5382_v20, %v7212_v47  ;;  %v5551_v29 = vld [vmem:[%s7857_s10 + $0x118] sm:$0xff]  }
 0x3c6   : > { %v3342_v18 = vpack.c.bf16 %v3300_v53, %v7220_v4  ;;  %v3343_v1 = vpack.c.bf16 %v7228_v30, %v7224_v26 }
 0x3c7   : > { %v5390_v23 = vpop.permute.xlu0 %5389 }
 0x3c8   : > { %3506 = vmatprep.mubr.bf16.mxu0 %v3343_v1  ;;  %v5392_v5 = vunpack.i.h.bf16 %v5390_v23  ;;  %v5391_v10 = vunpack.i.l.bf16 %v5390_v23  ;;  %v5546_v1 = vld [vmem:[%s7897_s4 + $0x1e0] sm:$0xff]  }
 0x3c9   : > { %3507 = vmatmul.mubr.bf16.vlgmr.msra.gmra.mrb[16].mxu0 %v3342_v18  ;;  %v5395_v33 = vpop.permute.xlu1 %5394 }
 0x3ca   : > { %v1614_v48 = vsel %vm1187_vm4, %v5391_v10, %v1604_v0  ;;  %v7237_v24 = vunpack.i.l.bf16 %v5395_v33  ;;  %v3301_v57 = vsel %vm1178_vm11, %v7096_v31, %v5392_v5  ;;  %5049 = vmatpush3.bf16.msra.mxu0 %v7173_v14  ;;  %v7263_v21 = vunpack.i.h.bf16 %v5395_v33 }
 0x3cb   : > { %v1592_v11 = vpop.permute.xlu0 %1591  ;;  %v7243_v49 = vsel %vm1196_vm2, %v1614_v48, %v1610_v36  ;;  %5050 = vmatprep.subr.bf16.mxu0 %v5551_v29  ;;  %v7248_v28 = vpack.c.bf16 %v3301_v57, %v3300_v53 }
 0x3cc   : > { %v7252_v38 = vpack.c.bf16 %v7237_v24, %v7212_v47  ;;  %v1612_v31 = vsel %vm715_vm7, %v6823_v44, %v1592_v11  ;;  %v7258_v14 = vpack.c.bf16 %v7243_v49, %v6769_v9  ;;  %v7273_v44 = vsel %vm1196_vm2, %v5392_v5, %v7237_v24 }
 0x3cd   : > { %v7261_v56 = vsel %vm1178_vm11, %v1612_v31, %v5391_v10 }
 0x3ce   : > { %4730 = vmatprep.mubr.msk.bf16.mxu1 %vm1341_vm12, %v7258_v14  ;;  %v7269_v16 = vpack.c.bf16 %v7261_v56, %v6783_v42  ;;  %5051 = vmatpush3.bf16.msra.mxu0 %v5551_v29 }
 0x3cf   : > { %v3235_v35 = vpop.permute.xlu0 %3234  ;;  %4950 = vmatprep.subr.bf16.mxu0 %v5553_v52 }
 0x3d0   : > { %v3302_v9 = vsel %vm1178_vm11, %v7104_v3, %v3235_v35  ;;  %v7279_v0 = vsel %vm1196_vm2, %v3235_v35, %v7263_v21  ;;  %1768 = vmatmul.mubr.bf16.gmra.mrb[28].mxu1 %v7269_v16 }
 0x3d1   : > { %v3345_v7 = vpack.c.bf16 %v3302_v9, %v3301_v57  ;;  %v3346_v42 = vpack.c.bf16 %v7279_v0, %v7273_v44  ;;  %4746 = vmatprep.mubr.msk.bf16.mxu1 %vm1341_vm12, %v6703_v25  ;;  %v5405_v13 = vpop.permute.xlu1 %5404  ;;  %v5547_v57 = vld [vmem:[%s7897_s4 + $0x1e8] sm:$0xff]  }
 0x3d2   : > { %v7286_v20 = vunpack.i.l.bf16 %v5405_v13  ;;  %v7288_v53 = vunpack.i.h.bf16 %v5405_v13 }
 0x3d3   : > { %3514 = vmatprep.mubr.bf16.mxu0 %v3346_v42  ;;  %v5400_v55 = vpop.permute.xlu0 %5399  ;;  %v5548_v42 = vld [vmem:[%s7897_s4 + $0x1f0] sm:$0xff]  }
 0x3d4   : > { %v7292_v3 = vpack.c.bf16 %v7286_v20, %v7263_v21  ;;  %v5402_v36 = vunpack.i.h.bf16 %v5400_v55  ;;  %v5401_v18 = vunpack.i.l.bf16 %v5400_v55  ;;  %3515 = vmatmul.mubr.bf16.gmra.mrb[20].mxu0 %v3345_v7 }
 0x3d6   : > { %v7299_v25 = vsel %vm1196_vm2, %v5401_v18, %v7286_v20  ;;  %v7303_v23 = vsel %vm1196_vm2, %v5402_v36, %v7288_v53  ;;  %v3303_v29 = vsel %vm1178_vm11, %v7130_v34, %v5401_v18  ;;  %v3304_v10 = vsel %vm1178_vm11, %v7135_v59, %v5402_v36 }
 0x3d7   : > { %v3349_v5 = vpack.c.bf16 %v7303_v23, %v7299_v25  ;;  %v7311_v33 = vpack.c.bf16 %v3303_v29, %v3302_v9  ;;  %v3348_v59 = vpack.c.bf16 %v3304_v10, %v3303_v29 }
 0x3d8   : > { %1942 = vmatmul.mubr.bf16.vlgmr.msra.gmra.mrb[16].mxu1 %v6719_v51 }
 0x3d9   : > { %2108 = vmatpush1.bf16.msra.mxu1 %v5546_v1  ;;  %4747 = vmatprep.mubr.msk.bf16.mxu1 %vm1341_vm12, %v6740_v50  ;;  %v5415_v48 = vpop.permute.xlu1 %5414  ;;  %v5410_v52 = vpop.permute.xlu0 %5409 }
 0x3da   : > { %3522 = vmatprep.mubr.bf16.mxu0 %v3349_v5  ;;  %v7319_v34 = vunpack.i.h.bf16 %v5415_v48  ;;  %v7321_v11 = vunpack.i.l.bf16 %v5415_v48  ;;  %2109 = vmatprep.subr.bf16.mxu1 %v5665_v2  ;;  %v5412_v31 = vunpack.i.h.bf16 %v5410_v52  ;;  %v5411_v51 = vunpack.i.l.bf16 %v5410_v52  ;;  %v5550_v5 = vld [vmem:[%s7897_s4 + $0x1f8] sm:$0xff]   ;;  %v5552_v52 = vld [vmem:[%s7897_s4 + $0x200] sm:$0xff]  }
 0x3dc   : > { %v7326_v35 = vpack.c.bf16 %v7321_v11, %v7288_v53  ;;  %3523 = vmatmul.mubr.bf16.gmra.mrb[24].mxu0 %v3348_v59  ;;  %v7330_v9 = vsel %vm1196_vm2, %v5411_v51, %v7321_v11  ;;  %v7334_v7 = vsel %vm1196_vm2, %v5412_v31, %v7319_v34  ;;  %v3305_v13 = vsel %vm1178_vm11, %v7153_v63, %v5411_v51  ;;  %v5555_v51 = vld [vmem:[%s7857_s10] sm:$0xff]  }
 0x3dd   : > { %2110 = vmatpush1.bf16.msra.mxu1 %v5547_v57  ;;  %v1802_v50 = vpop.permute.xlu1 %1801  ;;  %v7341_v55 = vpop.permute.xlu0 %5419  ;;  %v3352_v36 = vpack.c.bf16 %v7334_v7, %v7330_v9  ;;  %v7346_v18 = vpack.c.bf16 %v3305_v13, %v3304_v10  ;;  %v7351_v29 = vsel %vm1178_vm11, %v7160_v17, %v5412_v31  ;;  %v5554_v31 = vld [vmem:[%s7897_s4 + $0x208] sm:$0xff]  }
 0x3de   : > { %2111 = vmatprep.subr.bf16.mxu1 %v5665_v2  ;;  %v5421_v1 = vunpack.i.l.bf16 %v7341_v55  ;;  %v3351_v17 = vpack.c.bf16 %v7351_v29, %v3305_v13  ;;  %v5559_v13 = vld [vmem:[%s7857_s10 + $0x50] sm:$0xff]  }
 0x3df   : > { %3530 = vmatprep.mubr.bf16.mxu0 %v3352_v36  ;;  %v5560_v36 = vld [vmem:[%s7897_s4 + $0x218] sm:$0xff]  }
 0x3e0   : > { %1950 = vmatmul.mubr.bf16.gmra.mrb[20].mxu1 %v6756_v62  ;;  %v1812_v10 = vsel %vm1187_vm4, %v5421_v1, %v1802_v50  ;;  %v3344_v62 = vpack.c.bf16 %v7212_v47, %v7214_v41  ;;  %v3347_v50 = vpack.c.bf16 %v7263_v21, %v7237_v24  ;;  %v5557_v24 = vld [vmem:[%s7897_s4 + $0x210] sm:$0xff]   ;;  %v5558_v21 = vld [vmem:[%s7857_s10 + $0x8] sm:$0xff]  }
 0x3e1   : > { %2112 = vmatpush1.bf16.msra.mxu1 %v5548_v42  ;;  %4748 = vmatprep.mubr.msk.bf16.mxu1 %vm1341_vm12, %v6777_v46  ;;  %v7356_v63 = vpop.permute.xlu1 %5424  ;;  %v1790_v57 = vpop.permute.xlu0 %1789 }
 0x3e2   : > { %v5426_v48 = vunpack.i.l.bf16 %v7356_v63  ;;  %2113 = vmatprep.subr.bf16.mxu1 %v5665_v2  ;;  %v1810_v47 = vsel %vm715_vm7, %v7145_v19, %v1790_v57  ;;  %v7873_v42 = vunpack.i.h.bf16 %v7356_v63  ;;  %v5569_v57 = vld [vmem:[%s7897_s4 + $0x230] sm:$0xff]  }
 0x3e3   : > { %v7391_v19 = vsel %vm1178_vm11, %v1810_v47, %v5421_v1  ;;  %v5561_v1 = vld [vmem:[%s7857_s10 + $0x10] sm:$0xff]   ;;  %v5572_v47 = vld [vmem:[%s7897_s4 + $0x238] sm:$0xff]  }
 0x3e4   : > { %3531 = vmatmul.mubr.bf16.gmra.mrb[28].mxu0 %v3351_v17  ;;  %v7368_v46 = vsel %vm1196_vm2, %v1812_v10, %v5426_v48  ;;  %v5565_v48 = vld [vmem:[%s7857_s10 + $0x60] sm:$0xff]  }
 0x3e5   : > { %2114 = vmatpush1.bf16.msra.mxu1 %v5550_v5  ;;  %5052 = vmatprep.mubr.msk.bf16.mxu0 %vm557_vm0, %v3344_v62  ;;  %v1815_v59 = vpack.c.bf16 %v7368_v46, %v7243_v49  ;;  %v3350_v49 = vpack.c.bf16 %v7288_v53, %v7286_v20  ;;  %v1814_v20 = vpack.c.bf16 %v7391_v19, %v7261_v56  ;;  %v5422_v53 = vunpack.i.h.bf16 %v7341_v55  ;;  %v5562_v5 = vld [vmem:[%s7857_s10 + $0x58] sm:$0xff]   ;;  %v5567_v17 = vld [vmem:[%s7857_s10 + $0x20] sm:$0xff]   ;;  %v5568_v62 = vld [vmem:[%s7857_s10 + $0x68] sm:$0xff]  }
 0x3e6   : > { %2115 = vmatprep.subr.bf16.mxu1 %v5665_v2  ;;  %v3353_v55 = vpack.c.bf16 %v7319_v34, %v7321_v11  ;;  %v5563_v11 = vld [vmem:[%s7897_s4 + $0x220] sm:$0xff]  }
 0x3e7   : > { %v3306_v56 = vsel %vm1196_vm2, %v5422_v53, %v7873_v42 }
 0x3e8   : > { %1958 = vmatmul.mubr.bf16.gmra.mrb[24].mxu1 %v6787_v15  ;;  %v5556_v15 = vld [vmem:[%s7857_s10 + $0x48] sm:$0xff]   ;;  %v3315_v10 = vpack.c.bf16 %v7224_v26, %v3306_v56 }
 0x3e9   : > { %2116 = vmatpush1.bf16.msra.mxu1 %v5552_v52  ;;  %4749 = vmatprep.mubr.msk.bf16.mxu1 %vm1341_vm12, %v1815_v59  ;;  %v5566_v26 = vld [vmem:[%s7897_s4 + $0x228] sm:$0xff]   ;;  %v5571_v59 = vld [vmem:[%s7857_s10 + $0x70] sm:$0xff]  }
 0x3ea   : > { %2117 = vmatprep.subr.bf16.mxu1 %v5665_v2  ;;  %v5570_v52 = vld [vmem:[%s7857_s10 + $0x28] sm:$0xff]  }
 0x3ec   : > { %5053 = vmatmul.mubr.msk.bf16.vlgmr.msra.gmra.mrb[32].mxu0 %vm557_vm0, %v3347_v50  ;;  %v5575_v50 = vld [vmem:[%s7897_s4 + $0x240] sm:$0xff]  }
 0x3ed   : > { %2118 = vmatpush1.bf16.msra.mxu1 %v5554_v31  ;;  %4951 = vmatpush3.bf16.msra.mxu0 %v5555_v51  ;;  %v5573_v31 = vld [vmem:[%s7857_s10 + $0x30] sm:$0xff]   ;;  %v5574_v51 = vld [vmem:[%s7857_s10 + $0x78] sm:$0xff]  }
 0x3ee   : > { %5056 = vmatprep.mubr.msk.bf16.mxu0 %vm557_vm0, %v3350_v49  ;;  %2119 = vmatprep.subr.bf16.mxu1 %v5665_v2  ;;  %v5580_v49 = vld [vmem:[%s7857_s10 + $0x80] sm:$0xff]  }
 0x3ef   : > { %4952 = vmatprep.subr.bf16.mxu0 %v5556_v15  ;;  %v5576_v15 = vld [vmem:[%s7857_s10 + $0x38] sm:$0xff]  }
 0x3f0   : > { %1966 = vmatmul.mubr.bf16.gmra.mrb[28].mxu1 %v1814_v20  ;;  %v4189_v20 = vld [vmem:[#allocation2 + $0x8] sm:$0x3] }
 0x3f1   : > { %2120 = vmatpush1.bf16.msra.mxu1 %v5557_v24  ;;  %4953 = vmatpush3.bf16.msra.mxu0 %v5558_v21  ;;  %v4188_v24 = vld [vmem:[#allocation2] sm:$0xff]  ;;  %v3298_v21 = vsel %vm1178_vm11, %v7149_v61, %v5422_v53  ;;  %v7492_v53 = vpack.c.bf16 %v7273_v44, %v7228_v30 }
 0x3f2   : > { %4765 = vmatprep.mubr.msk.bf16.mxu1 %vm1341_vm12, %v6876_v45  ;;  %2121 = vmatprep.subr.bf16.mxu1 %v5665_v2  ;;  %v5564_v45 = vld [vmem:[%s7857_s10 + $0x18] sm:$0xff]   ;;  %v4228_v56 = vrot.slane %v4188_v24, 1 }
 0x3f3   : > { %4954 = vmatprep.subr.bf16.mxu0 %v5559_v13  ;;  %v4190_v13 = vld [vmem:[#allocation2 + $0x10] sm:$0xff] }
 0x3f4   : > { %5057 = vmatmul.mubr.msk.bf16.gmra.mrb[36].mxu0 %vm557_vm0, %v3353_v55  ;;  %v3314_v55 = vpack.c.bf16 %v7220_v4, %v3298_v21  ;;  %v5578_v4 = vld [vmem:[%s7897_s4 + $0x250] sm:$0xff]  }
 0x3f5   : > { %2122 = vmatpush1.bf16.msra.mxu1 %v5560_v36  ;;  %4955 = vmatpush3.bf16.msra.mxu0 %v5561_v1  ;;  %v4191_v36 = vld [vmem:[#allocation2 + $0x18] sm:$0x3]  ;;  %v5577_v1 = vld [vmem:[%s7897_s4 + $0x248] sm:$0xff]   ;;  %s5605_s4 = sshll.u32 %s5671_s3, 4  ;;  %s5606_s4 = int_to_ptr.vmem [resolvable:$false] %s5605_s4 }
 0x3f6   : > { %3756 = vmatprep.mubr.bf16.mxu0 %v3315_v10  ;;  %2123 = vmatprep.subr.bf16.mxu1 %v5665_v2  ;;  %v4193_v10 = vld [vmem:[#allocation2 + $0x28] sm:$0x3]  ;;  %v4232_v61 = vrot.slane %v4191_v36, 1  ;;  %v4282_v21 = vrot.slane %v4191_v36, 2  ;;  %s5607_s28 = scalar_lea.vmem %s5606_s4, 4096 }
 0x3f7   : > { %4956 = vmatprep.subr.bf16.mxu0 %v5562_v5  ;;  %v4192_v5 = vld [vmem:[#allocation2 + $0x20] sm:$0xff]  ;;  %v4235_v44 = vrot.slane %v4193_v10, 1  ;;  %v5581_v36 = vld [vmem:[%s7860_s13 + $0x8] sm:$0xff]  }
 0x3f8   : > { %v4234_v30 = vrot.slane %v4192_v5, 1 }
 0x3f9   : > { %2124 = vmatpush1.bf16.msra.mxu1 %v5563_v11  ;;  %4957 = vmatpush3.bf16.msra.mxu0 %v5564_v45  ;;  %v4229_v11 = vrot.slane %v4189_v20, 1  ;;  %v4231_v45 = vrot.slane %v4190_v13, 1 }
 0x3fa   : > { %2125 = vmatprep.subr.bf16.mxu1 %v5665_v2  ;;  %4958 = vmatprep.subr.bf16.mxu0 %v5565_v48  ;;  %v5582_v48 = vld [vmem:[%s7857_s10 + $0x88] sm:$0xff]  }
 0x3fd   : > { %2126 = vmatpush1.bf16.msra.mxu1 %v5566_v26  ;;  %4959 = vmatpush3.bf16.msra.mxu0 %v5567_v17  ;;  %v7500_v26 = vld [vmem:[#allocation2 + $0x38] sm:$0x3]  ;;  %v4194_v17 = vld [vmem:[#allocation2 + $0x30] sm:$0xff] }
 0x3fe   : > { %2127 = vmatprep.subr.bf16.mxu1 %v5665_v2  ;;  %4960 = vmatprep.subr.bf16.mxu0 %v5568_v62  ;;  %v7503_v62 = vld [vmem:[#allocation2 + $0x40] sm:$0xff] }
 0x401   : > { %2128 = vmatpush1.bf16.msra.mxu1 %v5569_v57  ;;  %4961 = vmatpush3.bf16.msra.mxu0 %v5570_v52  ;;  %v7505_v57 = vld [vmem:[#allocation2 + $0x48] sm:$0x3]  ;;  %v5579_v52 = vld [vmem:[%s7860_s13] sm:$0xff]  }
 0x402   : > { %2129 = vmatprep.subr.bf16.mxu1 %v5665_v2  ;;  %4962 = vmatprep.subr.bf16.mxu0 %v5571_v59  ;;  %v4230_v59 = vsel %vm974_vm6, %v4228_v56, %v4229_v11  ;;  %v4236_v56 = vsel %vm974_vm6, %v4234_v30, %v4235_v44  ;;  %v4284_v11 = vrot.slane %v4192_v5, 2  ;;  %v7529_v30 = vld [vmem:[#allocation2 + $0x60] sm:$0xff]  ;;  %v4288_v44 = vrot.slane %v7500_v26, 2 }
 0x405   : > { %2130 = vmatpush1.bf16.msra.mxu1 %v5572_v47  ;;  %4963 = vmatpush3.bf16.msra.mxu0 %v5573_v31  ;;  %v4233_v47 = vsel %vm974_vm6, %v4231_v45, %v4232_v61  ;;  %v5583_v31 = vld [vmem:[%s7857_s10 + $0x160] sm:$0xff]   ;;  %v4285_v45 = vrot.slane %v4193_v10, 2  ;;  %v4268_v61 = vadd.f32 %v4230_v59, %v4188_v24  ;;  %v7531_v10 = vld [vmem:[#allocation2 + $0x68] sm:$0x3]  ;;  %v4290_v59 = vrot.slane %v7503_v62, 2 }
 0x406   : > { %2131 = vmatprep.subr.bf16.mxu1 %v5665_v2  ;;  %4964 = vmatprep.subr.bf16.mxu0 %v5574_v51  ;;  %v4278_v51 = vrot.slane %v4188_v24, 2  ;;  %v4269_v42 = vadd.f32 %v4233_v47, %v4190_v13  ;;  %v4270_v24 = vadd.f32 %v4236_v56, %v4192_v5  ;;  %v4246_v5 = vrot.slane %v7529_v30, 1 }
 0x409   : > { %2132 = vmatpush1.bf16.msra.mxu1 %v5575_v50  ;;  %4965 = vmatpush3.bf16.msra.mxu0 %v5576_v15  ;;  %v4279_v50 = vrot.slane %v4189_v20, 2  ;;  %v4281_v15 = vrot.slane %v4190_v13, 2  ;;  %v7522_v20 = vpack.c.bf16 %v7299_v25, %v7279_v0  ;;  %v4287_v13 = vrot.slane %v4194_v17, 2 }
 0x40a   : > { %2133 = vmatprep.subr.bf16.mxu1 %v5665_v2  ;;  %5060 = vmatprep.subr.bf16.mxu0 %v5580_v49 }
 0x40b   : > { %v4280_v32 = vsel %vm1023_vm5, %v4278_v51, %v4279_v50  ;;  %v4198_v51 = vld [vmem:[#allocation2 + $0x50] sm:$0xff]  ;;  %v4199_v50 = vld [vmem:[#allocation2 + $0x58] sm:$0x3] }
 0x40c   : > { %3757 = vmatmul.mubr.bf16.vlgmr.msra.gmra.mrb[40].mxu0 %v3314_v55  ;;  %v4240_v55 = vrot.slane %v7503_v62, 1  ;;  %v4318_v47 = vadd.f32 %v4280_v32, %v4268_v61  ;;  %v4204_v32 = vld [vmem:[#allocation2 + $0x80] sm:$0xff] }
 0x40d   : > { %2134 = vmatpush1.bf16.msra.mxu1 %v5577_v1  ;;  %3764 = vmatprep.mubr.bf16.mxu0 %v7492_v53  ;;  %v4237_v1 = vrot.slane %v4194_v17, 1 }
 0x40e   : > { %2135 = vmatprep.subr.bf16.mxu1 %v5665_v2  ;;  %5061 = vmatpush3.bf16.msra.mxu0 %v5580_v49  ;;  %v4238_v2 = vrot.slane %v7500_v26, 1  ;;  %v4241_v49 = vrot.slane %v7505_v57, 1  ;;  %v2000_v26 = vpop.permute.xlu1 %1999 }
 0x40f   : > { %5062 = vmatprep.subr.bf16.mxu0 %v5582_v48 }
 0x410   : > { %v4239_v0 = vsel %vm974_vm6, %v4237_v1, %v4238_v2  ;;  %v4242_v25 = vsel %vm974_vm6, %v4240_v55, %v4241_v49  ;;  %v4203_v2 = vld [vmem:[#allocation2 + $0x78] sm:$0x3]  ;;  %v4289_v55 = vsel %vm1023_vm5, %v4287_v13, %v4288_v44  ;;  %v4252_v13 = vrot.slane %v4204_v32, 1 }
 0x411   : > { %2136 = vmatpush1.bf16.msra.mxu1 %v5578_v4  ;;  %v4283_v4 = vsel %vm1023_vm5, %v4281_v15, %v4282_v21  ;;  %v4247_v15 = vrot.slane %v7531_v10, 1  ;;  %v4271_v21 = vadd.f32 %v4239_v0, %v4194_v17  ;;  %v4272_v1 = vadd.f32 %v4242_v25, %v7503_v62  ;;  %v1994_v25 = vpop.permute.xlu0 %1993 }
 0x412   : > { %5084 = vmatprep.subr.bf16.mxu1 %v5579_v52  ;;  %5063 = vmatpush3.bf16.msra.mxu0 %v5582_v48  ;;  %v4286_v48 = vsel %vm1023_vm5, %v4284_v11, %v4285_v45  ;;  %v7552_v17 = vpack.c.bf16 %v7330_v9, %v7303_v23  ;;  %v4250_v62 = vrot.slane %v4203_v2, 1  ;;  %v4297_v0 = vrot.slane %v7531_v10, 2 }
 0x413   : > { %4996 = vmatprep.subr.bf16.mxu0 %v5583_v31  ;;  %v4319_v31 = vadd.f32 %v4283_v4, %v4269_v42  ;;  %v4320_v49 = vadd.f32 %v4286_v48, %v4270_v24  ;;  %v4205_v42 = vld [vmem:[#allocation2 + $0x88] sm:$0x3]  ;;  %v4248_v45 = vsel %vm974_vm6, %v4246_v5, %v4247_v15  ;;  %v4296_v4 = vrot.slane %v7529_v30, 2  ;;  %v4207_v5 = vld [vmem:[#allocation2 + $0x98] sm:$0x3] }
 0x414   : > { %2140 = vmatmul.mubr.bf16.vlgmr.msra.gmra.mrb[16].mxu1 %v6890_v22  ;;  %3765 = vmatmul.mubr.bf16.gmra.mrb[44].mxu0 %v7248_v28  ;;  %v4291_v22 = vrot.slane %v7505_v57, 2  ;;  %v4243_v57 = vrot.slane %v4198_v51, 1  ;;  %v4294_v24 = vrot.slane %v4199_v50, 2  ;;  %v4253_v48 = vrot.slane %v4205_v42, 1 }
 0x415   : > { %4766 = vmatprep.mubr.msk.bf16.mxu1 %vm1341_vm12, %v6895_v39  ;;  %3772 = vmatprep.mubr.bf16.mxu0 %v7522_v20  ;;  %v4202_v39 = vld [vmem:[#allocation2 + $0x70] sm:$0xff]  ;;  %v4328_v11 = vadd.f32 %v4319_v31, %v4318_v47  ;;  %v2010_v44 = vsel %vm1187_vm4, %v1994_v25, %v2000_v26  ;;  %v4321_v23 = vadd.f32 %v4289_v55, %v4271_v21  ;;  %v4300_v12 = vrot.slane %v4203_v2, 2 }
 0x416   : > { %5085 = vmatpush3.bf16.msra.mxu1 %v5579_v52  ;;  %v4244_v52 = vrot.slane %v4199_v50, 1  ;;  %v4292_v56 = vsel %vm1023_vm5, %v4290_v59, %v4291_v22  ;;  %v4249_v61 = vrot.slane %v4202_v39, 1  ;;  %v4329_v59 = vadd.f32 %v4320_v49, %v4319_v31  ;;  %v4206_v47 = vld [vmem:[#allocation2 + $0x90] sm:$0xff]  ;;  %v2006_v50 = vpop.permute.xlu1 %2005 }
 0x417   : > { %5086 = vmatprep.subr.bf16.mxu1 %v5581_v36  ;;  %v4322_v10 = vadd.f32 %v4292_v56, %v4272_v1  ;;  %v4336_v22 = vadd.f32 %v4328_v11, %v4320_v49  ;;  %v4298_v26 = vsel %vm1023_vm5, %v4296_v4, %v4297_v0  ;;  %v4299_v27 = vrot.slane %v4202_v39, 2  ;;  %v1988_v4 = vpop.permute.xlu0 %1987 }
 0x418   : > { %v4245_v9 = vsel %vm974_vm6, %v4243_v57, %v4244_v52  ;;  %v4251_v15 = vsel %vm974_vm6, %v4249_v61, %v4250_v62  ;;  %v4254_v1 = vsel %vm974_vm6, %v4252_v13, %v4253_v48  ;;  %v4255_v31 = vrot.slane %v4206_v47, 1 }
 0x419   : > { %v4273_v8 = vadd.f32 %v4245_v9, %v4198_v51  ;;  %v4256_v55 = vrot.slane %v4207_v5, 1  ;;  %v4302_v57 = vrot.slane %v4204_v32, 2  ;;  %v4330_v52 = vadd.f32 %v4321_v23, %v4320_v49 }
 0x41a   : > { %5087 = vmatpush3.bf16.msra.mxu1 %v5581_v36  ;;  %v4293_v36 = vrot.slane %v4198_v51, 2  ;;  %v4337_v56 = vadd.f32 %v4329_v59, %v4321_v23  ;;  %v4275_v11 = vadd.f32 %v4251_v15, %v4202_v39  ;;  %v7902_v61 = vunpack.i.h.bf16 %v7356_v63 }
 0x41b   : > { %v4331_v51 = vadd.f32 %v4322_v10, %v4321_v23  ;;  %v4301_v0 = vsel %vm1023_vm5, %v4299_v27, %v4300_v12  ;;  %v4344_v49 = vmul.f32 0.11111111, %v4336_v22  ;;  %v4306_v12 = vrot.slane %v4207_v5, 2  ;;  %v5584_v23 = vld [vmem:[%s7857_s10 + $0x120] sm:$0xff]   ;;  %v5585_v22 = vld [vmem:[%s7857_s10 + $0x168] sm:$0xff]  }
 0x41c   : > { %2148 = vmatmul.mubr.bf16.gmra.mrb[20].mxu1 %v6909_v43  ;;  %3773 = vmatmul.mubr.bf16.gmra.mrb[48].mxu0 %v7311_v33  ;;  %v4274_v43 = vadd.f32 %v4248_v45, %v7529_v30  ;;  %v4295_v21 = vsel %vm1023_vm5, %v4293_v36, %v4294_v24  ;;  %v4303_v30 = vrot.slane %v4205_v42, 2  ;;  %v3316_v62 = vpack.c.bf16 %v7214_v41, %v7902_v61  ;;  %v5590_v61 = vld [vmem:[%s7857_s10 + $0x138] sm:$0xff]  }
 0x41d   : > { %4767 = vmatprep.mubr.msk.bf16.mxu1 %vm1341_vm12, %v7258_v14  ;;  %3780 = vmatprep.mubr.bf16.mxu0 %v7552_v17  ;;  %v2011_v14 = vsel %vm1196_vm2, %v2010_v44, %v2006_v50  ;;  %v2008_v36 = vsel %vm715_vm7, %v7185_v6, %v1988_v4  ;;  %v4323_v39 = vadd.f32 %v4295_v21, %v4273_v8  ;;  %v4345_v27 = vmul.f32 0.11111111, %v4337_v56  ;;  %v5592_v4 = vld [vmem:[%s7857_s10 + $0x140] sm:$0xff]  }
 0x41e   : > { %v4324_v45 = vadd.f32 %v4298_v26, %v4274_v43  ;;  %v2013_v2 = vpack.c.bf16 %v2011_v14, %v7368_v46  ;;  %v4276_v42 = vadd.f32 %v4254_v1, %v4204_v32  ;;  %v4257_v41 = vsel %vm974_vm6, %v4255_v31, %v4256_v55  ;;  %v5587_v14 = vld [vmem:[%s7857_s10 + $0x170] sm:$0xff]  }
 0x41f   : > { %v4304_v63 = vsel %vm1023_vm5, %v4302_v57, %v4303_v30  ;;  %v4305_v46 = vrot.slane %v4206_v47, 2  ;;  %v4325_v24 = vadd.f32 %v4301_v0, %v4275_v11  ;;  %v4332_v6 = vadd.f32 %v4323_v39, %v4322_v10  ;;  %v5588_v30 = vld [vmem:[%s7857_s10 + $0x130] sm:$0xff]  }
 0x420   : > { %v4333_v13 = vadd.f32 %v4324_v45, %v4323_v39  ;;  %v4338_v48 = vadd.f32 %v4330_v52, %v4322_v10  ;;  %v4339_v44 = vadd.f32 %v4331_v51, %v4323_v39  ;;  %v4277_v8 = vadd.f32 %v4257_v41, %v4206_v47  ;;  %v5589_v52 = vld [vmem:[%s7857_s10 + $0x178] sm:$0xff]   ;;  %v5594_v51 = vld [vmem:[%s7857_s10 + $0x148] sm:$0xff]   ;;  %v5595_v0 = vld [vmem:[%s7857_s10 + $0x190] sm:$0xff]  }
 0x421   : > { %v4326_v32 = vadd.f32 %v4304_v63, %v4276_v42  ;;  %v4307_v9 = vsel %vm1023_vm5, %v4305_v46, %v4306_v12  ;;  %v4352_v43 = vpack.c.bf16 %v4345_v27, %v4344_v49  ;;  %v4340_v5 = vadd.f32 %v4332_v6, %v4324_v45  ;;  %v5597_v49 = vld [vmem:[%s7857_s10 + $0x198] sm:$0xff]   ;;  %v5599_v42 = vld [vmem:[%s7857_s10 + $0x1a0] sm:$0xff]   ;;  %v5600_v41 = vld [vmem:[%s7857_s10 + $0x1a8] sm:$0xff]   ;;  %v3866_v63 = vpop.permute.xlu1 %3865  ;;  %v3860_v46 = vpop.permute.xlu0 %3859 }
 0x422   : > { %v4341_v50 = vadd.f32 %v4333_v13, %v4325_v24  ;;  %v4347_v10 = vmul.f32 0.11111111, %v4339_v44  ;;  %v4327_v47 = vadd.f32 %v4307_v9, %v4277_v8  ;;  %v4334_v15 = vadd.f32 %v4325_v24, %v4324_v45  ;;  %v5598_v39 = vld [vmem:[%s7857_s10 + $0x158] sm:$0xff]  }
 0x423   : > { %v4335_v26 = vadd.f32 %v4326_v32, %v4325_v24  ;;  %v4348_v21 = vmul.f32 0.11111111, %v4340_v5  ;;  %v3869_v12 = vsel %vm1196_vm2, %v3860_v46, %v3866_v63 }
 0x424   : > { %2156 = vmatmul.mubr.bf16.gmra.mrb[24].mxu1 %v7269_v16  ;;  %3781 = vmatmul.mubr.bf16.gmra.mrb[52].mxu0 %v7346_v18  ;;  %v2009_v16 = vsel %vm1178_vm11, %v2008_v36, %v1994_v25  ;;  %v4346_v25 = vmul.f32 0.11111111, %v4338_v48  ;;  %v4349_v1 = vmul.f32 0.11111111, %v4341_v50  ;;  %v4342_v55 = vadd.f32 %v4334_v15, %v4326_v32  ;;  %v5596_v36 = vld [vmem:[%s7857_s10 + $0x150] sm:$0xff]  }
 0x425   : > { %4768 = vmatprep.mubr.msk.bf16.mxu1 %vm1341_vm12, %v2013_v2  ;;  %5064 = vmatprep.mubr.msk.bf16.mxu0 %vm557_vm0, %v3316_v62  ;;  %v2012_v59 = vpack.c.bf16 %v2009_v16, %v7391_v19  ;;  %v5586_v19 = vld [vmem:[%s7857_s10 + $0x128] sm:$0xff]   ;;  %v4343_v57 = vadd.f32 %v4335_v26, %v4327_v47  ;;  %v5591_v62 = vld [vmem:[%s7857_s10 + $0x180] sm:$0xff]   ;;  %v3871_v27 = vpack.c.bf16 %v3869_v12, %v7334_v7 }
 0x426   : > { %v4353_v31 = vpack.c.bf16 %v4347_v10, %v4346_v25  ;;  %v4354_v56 = vpack.c.bf16 %v4349_v1, %v4348_v21  ;;  %v4350_v11 = vmul.f32 0.11111111, %v4342_v55  ;;  %v7676_v1 = vld [vmem:[%s7852_s5] ss:$0 sm:$0xff] }
 0x427   : > { %v4351_v45 = vmul.f32 0.11111111, %v4343_v57 }
 0x429   : > { %v4355_v2 = vpack.c.bf16 %v4351_v45, %v4350_v11 }
 0x42c   : > { %2164 = vmatmul.mubr.bf16.gmra.mrb[28].mxu1 %v2012_v59  ;;  %5065 = vmatmul.mubr.msk.bf16.vlgmr.msra.gmra.mrb[32].mxu0 %vm557_vm0, %v7252_v38 }
 0x42d   : > { %4997 = vmatpush3.bf16.msra.mxu0 %v5584_v23  ;;  %5068 = vmatprep.mubr.msk.bf16.mxu0 %vm557_vm0, %v7292_v3 }
 0x42e   : > { %4998 = vmatprep.subr.bf16.mxu0 %v5585_v22  ;;  %5088 = vmatprep.mubr.msk.bf16.mxu1 %vm557_vm0, %v4352_v43 }
 0x431   : > { %4999 = vmatpush3.bf16.msra.mxu0 %v5586_v19 }
 0x432   : > { %5000 = vmatprep.subr.bf16.mxu0 %v5587_v14 }
 0x434   : > { %5069 = vmatmul.mubr.msk.bf16.gmra.mrb[36].mxu0 %vm557_vm0, %v7326_v35  ;;  %5089 = vmatmul.mubr.msk.bf16.vlgmr.msra.gmra.mrb[32].mxu1 %vm557_vm0, %v4353_v31  ;;  %v7681_v31 = vld [vmem:[%s7853_s6] ss:$0 sm:$0xff] }
 0x435   : > { %5001 = vmatpush3.bf16.msra.mxu0 %v5588_v30  ;;  %4016 = vmatprep.mubr.bf16.mxu0 %v7492_v53  ;;  %v5593_v53 = vld [vmem:[%s7857_s10 + $0x188] sm:$0xff]  }
 0x436   : > { %5002 = vmatprep.subr.bf16.mxu0 %v5589_v52  ;;  %5092 = vmatprep.mubr.msk.bf16.mxu1 %vm557_vm0, %v4354_v56 }
 0x439   : > { %5003 = vmatpush3.bf16.msra.mxu0 %v5590_v61 }
 0x43a   : > { %5004 = vmatprep.subr.bf16.mxu0 %v5591_v62 }
 0x43c   : > { %5093 = vmatmul.mubr.msk.bf16.gmra.mrb[36].mxu1 %vm557_vm0, %v4355_v2 }
 0x43d   : > { %5005 = vmatpush3.bf16.msra.mxu0 %v5592_v4 }
 0x43e   : > { %5006 = vmatprep.subr.bf16.mxu0 %v5593_v53 }
 0x441   : > { %5007 = vmatpush3.bf16.msra.mxu0 %v5594_v51 }
 0x442   : > { %5008 = vmatprep.subr.bf16.mxu0 %v5595_v0 }
 0x445   : > { %5009 = vmatpush3.bf16.msra.mxu0 %v5596_v36 }
 0x446   : > { %5010 = vmatprep.subr.bf16.mxu0 %v5597_v49 }
 0x449   : > { %5011 = vmatpush3.bf16.msra.mxu0 %v5598_v39 }
 0x44a   : > { %5072 = vmatprep.subr.bf16.mxu0 %v5599_v42 }
 0x44c   : > { %4017 = vmatmul.mubr.bf16.vlgmr.msra.gmra.mrb[56].mxu0 %v7248_v28  ;;  %v3868_v28 = vsel %vm1178_vm11, %v7198_v60, %v3860_v46 }
 0x44d   : > { %4024 = vmatprep.mubr.bf16.mxu0 %v7522_v20  ;;  %5073 = vmatpush3.bf16.msra.mxu0 %v5599_v42  ;;  %v3870_v20 = vpack.c.bf16 %v3868_v28, %v7351_v29 }
 0x44e   : > { %5074 = vmatprep.subr.bf16.mxu0 %v5600_v41 }
 0x451   : > { %5075 = vmatpush3.bf16.msra.mxu0 %v5600_v41 }
 0x454   : > { %4025 = vmatmul.mubr.bf16.gmra.mrb[60].mxu0 %v7311_v33  ;;  %v3872_v33 = vpack.c.bf16 %v3866_v63, %v7319_v34 }
 0x455   : > { %4032 = vmatprep.mubr.bf16.mxu0 %v7552_v17 }
 0x45c   : > { %4033 = vmatmul.mubr.bf16.gmra.mrb[64].mxu0 %v7346_v18 }
 0x45d   : > { %4040 = vmatprep.mubr.bf16.mxu0 %v3871_v27 }
 0x464   : > { %4041 = vmatmul.mubr.bf16.gmra.mrb[68].mxu0 %v3870_v20 }
 0x465   : > { %5076 = vmatprep.mubr.msk.bf16.mxu0 %vm557_vm0, %v7252_v38 }
 0x46c   : > { %5077 = vmatmul.mubr.msk.bf16.vlgmr.msra.gmra.mrb[32].mxu0 %vm557_vm0, %v7292_v3 }
 0x46d   : > { %5080 = vmatprep.mubr.msk.bf16.mxu0 %vm557_vm0, %v7326_v35 }
 0x474   : > { %5081 = vmatmul.mubr.msk.bf16.gmra.mrb[36].mxu0 %vm557_vm0, %v3872_v33 }
 0x49c   : > { %v4920_v7 = vpop.f32.mrb[16].mxu0 }
 0x49d   : > { %v4921_v18 = vpop.f32.mrb[17].mxu0 }
 0x49e   : > { %v4922_v17 = vadd.f32 %v4921_v18, %v4920_v7  ;;  %v4923_v60 = vpop.f32.mrb[18].mxu0 }
 0x49f   : > { %v4924_v24 = vpop.f32.mrb[19].mxu0 }
 0x4a0   : > { %v4925_v29 = vadd.f32 %v4924_v24, %v4923_v60 }
 0x4a7   : > { %v4926_v6 = vpop.f32.mrb[20].mxu0 }
 0x4a8   : > { %v4927_v13 = vpop.f32.mrb[21].mxu0 }
 0x4a9   : > { %v4928_v16 = vadd.f32 %v4927_v13, %v4926_v6  ;;  %v4929_v38 = vpop.f32.mrb[22].mxu0 }
 0x4aa   : > { %v4930_v48 = vpop.f32.mrb[23].mxu0 }
 0x4ab   : > { %v4931_v44 = vadd.f32 %v4930_v48, %v4929_v38 }
 0x4af   : > { %v4932_v3 = vpop.f32.mrb[24].mxu0 }
 0x4b0   : > { %v4933_v8 = vpop.f32.mrb[25].mxu0 }
 0x4b1   : > { %v4934_v32 = vadd.f32 %v4933_v8, %v4932_v3  ;;  %v4935_v35 = vpop.f32.mrb[26].mxu0 }
 0x4b2   : > { %v4936_v23 = vpop.f32.mrb[27].mxu0 }
 0x4b3   : > { %v4937_v34 = vadd.f32 %v4936_v23, %v4935_v35 }
 0x4b7   : > { %v4938_v9 = vpop.f32.mrb[28].mxu0 }
 0x4b8   : > { %v4939_v59 = vpop.f32.mrb[29].mxu0 }
 0x4b9   : > { %v7665_v22 = vadd.f32 %v4939_v59, %v4938_v9  ;;  %v4941_v43 = vpop.f32.mrb[30].mxu0 }
 0x4ba   : > { %v4942_v5 = vpop.f32.mrb[31].mxu0 }
 0x4bb   : > { %v7667_v50 = vadd.f32 %v4942_v5, %v4941_v43 }
 0x4df   : > { %v4966_v25 = vpop.f32.mrb[40].mxu0 }
 0x4e0   : > { %v4967_v10 = vpop.f32.mrb[41].mxu0 }
 0x4e1   : > { %v4968_v47 = vadd.f32 %v4967_v10, %v4966_v25  ;;  %v4969_v15 = vpop.f32.mrb[42].mxu0 }
 0x4e2   : > { %v4970_v26 = vpop.f32.mrb[43].mxu0 }
 0x4e3   : > { %v7669_v19 = vadd.f32 %v4968_v47, %v4922_v17  ;;  %v4971_v14 = vadd.f32 %v4970_v26, %v4969_v15 }
 0x4e5   : > { %v7671_v21 = vadd.f32 %v4971_v14, %v4925_v29 }
 0x4e7   : > { %v2141_v55 = vpop.f32.mrb[16].mxu1  ;;  %v4972_v57 = vpop.f32.mrb[44].mxu0 }
 0x4e8   : > { %v2186_v30 = vmul.f32 %v7676_v1, %v2141_v55  ;;  %v2143_v52 = vpop.f32.mrb[17].mxu1  ;;  %v4973_v56 = vpop.f32.mrb[45].mxu0 }
 0x4e9   : > { %v4974_v11 = vadd.f32 %v4973_v56, %v4972_v57  ;;  %v2144_v45 = vpop.f32.mrb[18].mxu1  ;;  %v4975_v61 = vpop.f32.mrb[46].mxu0 }
 0x4ea   : > { %v2200_v62 = vadd.f32 %v7681_v31, %v2186_v30  ;;  %v2187_v2 = vmul.f32 %v7676_v1, %v2144_v45  ;;  %v2146_v4 = vpop.f32.mrb[19].mxu1  ;;  %v4976_v53 = vpop.f32.mrb[47].mxu0 }
 0x4eb   : > { %v7686_v51 = vadd.f32 %v4974_v11, %v4928_v16  ;;  %v4977_v0 = vadd.f32 %v4976_v53, %v4975_v61  ;;  %v4896_v4 = vld [vmem:[%s7862_s15] ss:$0 sm:$0xff] }
 0x4ec   : > { %v2208_v36 = vmax.f32 %v2200_v62, 0.0  ;;  %v2201_v49 = vadd.f32 %v7681_v31, %v2187_v2 }
 0x4ed   : > { %v7689_v39 = vadd.f32 %v4977_v0, %v4931_v44 }
 0x4ee   : > { %v2209_v42 = vmax.f32 %v2201_v49, 0.0  ;;  %4495 = vrot.lane.b32.xlu0 %v2208_v36, %s7899_s29 }
 0x4ef   : > { %v2149_v41 = vpop.f32.mrb[20].mxu1  ;;  %v4978_v63 = vpop.f32.mrb[48].mxu0 }
 0x4f0   : > { %v2188_v46 = vmul.f32 %v7676_v1, %v2149_v41  ;;  %4497 = vrot.lane.b32.xlu1 %v2209_v42, %s7899_s29  ;;  %v2151_v12 = vpop.f32.mrb[21].mxu1  ;;  %v4979_v27 = vpop.f32.mrb[49].mxu0 }
 0x4f1   : > { %v4980_v28 = vadd.f32 %v4979_v27, %v4978_v63  ;;  %v2152_v20 = vpop.f32.mrb[22].mxu1  ;;  %v4981_v33 = vpop.f32.mrb[50].mxu0 }
 0x4f2   : > { %v2202_v7 = vadd.f32 %v7681_v31, %v2188_v46  ;;  %v2189_v18 = vmul.f32 %v7676_v1, %v2152_v20  ;;  %v2154_v17 = vpop.f32.mrb[23].mxu1  ;;  %v4982_v60 = vpop.f32.mrb[51].mxu0 }
 0x4f3   : > { %v7696_v24 = vadd.f32 %v4980_v28, %v4934_v32  ;;  %v4983_v29 = vadd.f32 %v4982_v60, %v4981_v33 }
 0x4f4   : > { %v2210_v6 = vmax.f32 %v2202_v7, 0.0  ;;  %v2203_v13 = vadd.f32 %v7681_v31, %v2189_v18 }
 0x4f5   : > { %v7699_v16 = vadd.f32 %v4983_v29, %v4937_v34 }
 0x4f6   : > { %v2211_v38 = vmax.f32 %v2203_v13, 0.0  ;;  %4499 = vrot.lane.b32.xlu0 %v2210_v6, %s7899_s29 }
 0x4f7   : > { %v2157_v48 = vpop.f32.mrb[24].mxu1  ;;  %v4984_v44 = vpop.f32.mrb[52].mxu0 }
 0x4f8   : > { %v2190_v3 = vmul.f32 %v7676_v1, %v2157_v48  ;;  %4501 = vrot.lane.b32.xlu1 %v2211_v38, %s7899_s29  ;;  %v2159_v8 = vpop.f32.mrb[25].mxu1  ;;  %v4985_v35 = vpop.f32.mrb[53].mxu0 }
 0x4f9   : > { %v4986_v23 = vadd.f32 %v4985_v35, %v4984_v44  ;;  %v2160_v32 = vpop.f32.mrb[26].mxu1  ;;  %v4987_v9 = vpop.f32.mrb[54].mxu0 }
 0x4fa   : > { %v2204_v59 = vadd.f32 %v7681_v31, %v2190_v3  ;;  %v2191_v43 = vmul.f32 %v7676_v1, %v2160_v32  ;;  %v2162_v34 = vpop.f32.mrb[27].mxu1  ;;  %v4988_v5 = vpop.f32.mrb[55].mxu0 }
 0x4fb   : > { %v7707_v25 = vadd.f32 %v4986_v23, %v7665_v22  ;;  %v4989_v10 = vadd.f32 %v4988_v5, %v4987_v9 }
 0x4fc   : > { %v2212_v47 = vmax.f32 %v2204_v59, 0.0  ;;  %v2205_v15 = vadd.f32 %v7681_v31, %v2191_v43 }
 0x4fd   : > { %v7711_v26 = vadd.f32 %v4989_v10, %v7667_v50  ;;  %v4895_v50 = vld [vmem:[%s7861_s14] ss:$0 sm:$0xff] }
 0x4fe   : > { %v2213_v14 = vmax.f32 %v2205_v15, 0.0  ;;  %4503 = vrot.lane.b32.xlu0 %v2212_v47, %s7899_s29 }
 0x4ff   : > { %v2165_v55 = vpop.f32.mrb[28].mxu1 }
 0x500   : > { %v2192_v57 = vmul.f32 %v7676_v1, %v2165_v55  ;;  %4505 = vrot.lane.b32.xlu1 %v2213_v14, %s7899_s29  ;;  %v2167_v30 = vpop.f32.mrb[29].mxu1 }
 0x501   : > { %v2168_v52 = vpop.f32.mrb[30].mxu1 }
 0x502   : > { %v2206_v22 = vadd.f32 %v7681_v31, %v2192_v57  ;;  %v2193_v56 = vmul.f32 %v7676_v1, %v2168_v52  ;;  %v2170_v11 = vpop.f32.mrb[31].mxu1 }
 0x504   : > { %v2214_v45 = vmax.f32 %v2206_v22, 0.0  ;;  %v2207_v61 = vadd.f32 %v7681_v31, %v2193_v56 }
 0x506   : > { %v2215_v62 = vmax.f32 %v2207_v61, 0.0  ;;  %4507 = vrot.lane.b32.xlu0 %v2214_v45, %s7899_s29 }
 0x507   : > { %v5090_v2 = vpop.f32.mrb[32].mxu1 }
 0x508   : > { %v4458_v53 = vmul.f32 %v5090_v2, %v4895_v50  ;;  %4509 = vrot.lane.b32.xlu1 %v2215_v62, %s7899_s29  ;;  %v4418_v1 = vpop.f32.mrb[33].mxu1  ;;  %s512_s29 = sand.u32 1, %s5655_s22  }
 0x509   : > { %v4456_v0 = vmul.f32 %v4895_v50, %v4418_v1  ;;  %v5091_v36 = vpop.f32.mrb[34].mxu1  ;;  %s7805_s25 = scalar_lea.sflag [#allocation7], %s512_s29 }
 0x50a   : > { %v4473_v49 = vadd.f32 %v4896_v4, %v4458_v53  ;;  %v4459_v31 = vmul.f32 %v5091_v36, %v4895_v50  ;;  %v4421_v42 = vpop.f32.mrb[35].mxu1 }
 0x50b   : > { %v4457_v41 = vmul.f32 %v4895_v50, %v4421_v42  ;;  %v4471_v46 = vadd.f32 %v4896_v4, %v4456_v0 }
 0x50c   : > { %v4481_v63 = vmax.f32 %v4473_v49, 0.0  ;;  %v4474_v12 = vadd.f32 %v4896_v4, %v4459_v31 }
 0x50d   : > { %v4472_v28 = vadd.f32 %v4896_v4, %v4457_v41  ;;  %v4479_v33 = vmax.f32 %v4471_v46, 0.0 }
 0x50e   : > { %v4482_v27 = vmax.f32 %v4474_v12, 0.0  ;;  %4531 = vrot.lane.b32.xlu0 %v4481_v63, %s7900_s23 }
 0x50f   : > { %v5094_v20 = vpop.f32.mrb[36].mxu1  ;;  %v4480_v29 = vmax.f32 %v4472_v28, 0.0 }
 0x510   : > { %4533 = vrot.lane.b32.xlu1 %v4482_v27, %s7900_s23  ;;  %v4434_v7 = vpop.f32.mrb[37].mxu1  ;;  %v4462_v18 = vmul.f32 %v5094_v20, %v4895_v50 }
 0x511   : > { %v4460_v17 = vmul.f32 %v4895_v50, %v4434_v7  ;;  %v5095_v60 = vpop.f32.mrb[38].mxu1 }
 0x512   : > { %4527 = vrot.lane.b32.xlu0 %v4479_v33, %s7900_s23  ;;  %v4437_v6 = vpop.f32.mrb[39].mxu1  ;;  %v4463_v38 = vmul.f32 %v5095_v60, %v4895_v50  ;;  %v4477_v44 = vadd.f32 %v4896_v4, %v4462_v18 }
 0x513   : > { %v4475_v13 = vadd.f32 %v4896_v4, %v4460_v17  ;;  %v4461_v48 = vmul.f32 %v4895_v50, %v4437_v6 }
 0x514   : > { %4529 = vrot.lane.b32.xlu1 %v4480_v29, %s7900_s23  ;;  %v4478_v35 = vadd.f32 %v4896_v4, %v4463_v38  ;;  %v4485_v32 = vmax.f32 %v4477_v44, 0.0 }
 0x515   : > { %v4483_v3 = vmax.f32 %v4475_v13, 0.0  ;;  %v4476_v8 = vadd.f32 %v4896_v4, %v4461_v48 }
 0x516   : > { %v4486_v9 = vmax.f32 %v4478_v35, 0.0  ;;  %v7903_v35 = vld [vmem:[#allocation11_spill] sm:$0xff] }
 0x517   : > { %v4484_v23 = vmax.f32 %v4476_v8, 0.0  ;;  %4535 = vrot.lane.b32.xlu0 %v4483_v3, %s7900_s23 }
 0x519   : > { %4537 = vrot.lane.b32.xlu1 %v4484_v23, %s7900_s23 }
 0x51b   : > { %4539 = vrot.lane.b32.xlu0 %v4485_v32, %s7900_s23 }
 0x51d   : > { %4541 = vrot.lane.b32.xlu1 %v4486_v9, %s7900_s23  ;;  %s4663_s23 = sshll.u32 %s512_s29, 7 }
 0x51e   : > { %s7748_s20 = scalar_lea.vmem [#allocation6], %s4663_s23 }
 0x51f   : > { %v5012_v59 = vpop.f32.mrb[56].mxu0  ;;  %s4597_s30 = sshll.u32 %s7748_s20, 4  ;;  %s7799_s30 = int_to_ptr.vmem [resolvable:$true] %s4597_s30 }
 0x520   : > { %v5013_v43 = vpop.f32.mrb[57].mxu0  ;;  %s5601_s23 = scalar_lea.vmem %s7799_s30, 2048  ;;  %p5608_p0 = scmp.lt.s32.totalorder %s7799_s30, %s5606_s4 }
 0x521   : > { %v5014_v34 = vadd.f32 %v5013_v43, %v5012_v59  ;;  %v5015_v5 = vpop.f32.mrb[58].mxu0  ;;  %p5602_p11 = scmp.ne.s32.totalorder %s7799_s30, %s5601_s23  ;;  %p5609_p1 = scmp.lt.s32.totalorder %s5607_s28, %s5601_s23 }
 0x522   : > { %v5016_v10 = vpop.f32.mrb[59].mxu0 }
 0x523   : > { %v5017_v47 = vadd.f32 %v5016_v10, %v5015_v5  ;;  %v5100_v15 = vadd.f32 %v7669_v19, %v5014_v34  ;;  %v7905_v5 = vld [vmem:[#allocation13_spill] sm:$0xff]  ;;  %p5603_p12 = pnand %p5602_p11, %p5796_p5  ;;  %p5610_p2 = por %p5609_p1, %p5608_p0 }
 0x525   : > { %v5106_v14 = vadd.f32 %v7671_v21, %v5017_v47  ;;  %p5604_p13 = pneg %p5603_p12 }
 0x527   : > { %v5018_v55 = vpop.f32.mrb[60].mxu0  ;;  %p5611_p3 = pnand %p5610_p2, %p5604_p13 }
 0x528   : > { %v5019_v57 = vpop.f32.mrb[61].mxu0 }
 0x529   : > { %v5020_v30 = vadd.f32 %v5019_v57, %v5018_v55  ;;  %v5021_v52 = vpop.f32.mrb[62].mxu0  ;;  %v7906_v55 = vld [vmem:[#allocation14_spill] sm:$0xff] }
 0x52a   : > { %v5022_v22 = vpop.f32.mrb[63].mxu0 }
 0x52b   : > { %v5023_v56 = vadd.f32 %v5022_v22, %v5021_v52  ;;  %v5097_v11 = vadd.f32 %v7686_v51, %v5020_v30 }
 0x52d   : > { %v5103_v45 = vadd.f32 %v7689_v39, %v5023_v56 }
 0x52f   : > { %v5024_v61 = vpop.f32.mrb[64].mxu0 }
 0x530   : > { %v5025_v50 = vpop.f32.mrb[65].mxu0 }
 0x531   : > { %v5026_v62 = vadd.f32 %v5025_v50, %v5024_v61  ;;  %v5027_v2 = vpop.f32.mrb[66].mxu0 }
 0x532   : > { %v5028_v4 = vpop.f32.mrb[67].mxu0 }
 0x533   : > { %v5029_v53 = vadd.f32 %v5028_v4, %v5027_v2  ;;  %v5112_v19 = vadd.f32 %v7696_v24, %v5026_v62 }
 0x535   : > { %v5118_v21 = vadd.f32 %v7699_v16, %v5029_v53 }
 0x537   : > { %v5030_v1 = vpop.f32.mrb[68].mxu0 }
 0x538   : > { %v5031_v0 = vpop.f32.mrb[69].mxu0 }
 0x539   : > { %v5032_v36 = vadd.f32 %v5031_v0, %v5030_v1  ;;  %v5033_v49 = vpop.f32.mrb[70].mxu0 }
 0x53a   : > { %v5034_v31 = vpop.f32.mrb[71].mxu0 }
 0x53b   : > { %v5035_v42 = vadd.f32 %v5034_v31, %v5033_v49  ;;  %v5109_v51 = vadd.f32 %v7707_v25, %v5032_v36 }
 0x53d   : > { %v5115_v39 = vadd.f32 %v7711_v26, %v5035_v42 }
 0x53f   : > { %v5078_v41 = vpop.f32.mrb[32].mxu0 }
 0x540   : > { %v5098_v63 = vadd.f32 %v5097_v11, %v5078_v41  ;;  %v4083_v46 = vpop.f32.mrb[33].mxu0 }
 0x541   : > { %v5101_v12 = vadd.f32 %v5100_v15, %v4083_v46  ;;  %v5079_v27 = vpop.f32.mrb[34].mxu0 }
 0x542   : > { %v5104_v24 = vadd.f32 %v5103_v45, %v5079_v27  ;;  %v4086_v28 = vpop.f32.mrb[35].mxu0 }
 0x543   : > { %v5107_v16 = vadd.f32 %v5106_v14, %v4086_v28 }
 0x547   : > { %v5082_v20 = vpop.f32.mrb[36].mxu0 }
 0x548   : > { %v5110_v33 = vadd.f32 %v5109_v51, %v5082_v20  ;;  %v4099_v7 = vpop.f32.mrb[37].mxu0 }
 0x549   : > { %v5113_v18 = vadd.f32 %v5112_v19, %v4099_v7  ;;  %v5083_v17 = vpop.f32.mrb[38].mxu0 }
 0x54a   : > { %v5116_v60 = vadd.f32 %v5115_v39, %v5083_v17  ;;  %v4102_v29 = vpop.f32.mrb[39].mxu0 }
 0x54b   : > { %v5119_v25 = vadd.f32 %v5118_v21, %v4102_v29 }
 0x560   : > { %v4496_v26 = vpop.permute.xlu0 %4495 }
 0x561   : > { %v4551_v6 = vsel %vm1196_vm2, %v5940_v37, %v4496_v26 }
 0x562   : > { %4567 = vst [vmem:[%s7748_s20] sm:$0xff] %v4551_v6  ;;  %v4498_v13 = vpop.permute.xlu1 %4497 }
 0x563   : > { %v4552_v38 = vsel %vm1196_vm2, %v5944_v40, %v4498_v13  ;;  %v7904_v40 = vld [vmem:[#allocation12_spill] sm:$0xff] }
 0x564   : > { %4569 = vst [vmem:[%s7748_s20 + $0x10] sm:$0xff] %v4552_v38 }
 0x568   : > { %v4500_v48 = vpop.permute.xlu0 %4499 }
 0x569   : > { %v4553_v44 = vsel %vm1196_vm2, %v5958_v54, %v4500_v48  ;;  %v4887_v54 = vld [vmem:[%s7858_s11] ss:$0 sm:$0xff] }
 0x56a   : > { %4571 = vst [vmem:[%s7748_s20 + $0x20] sm:$0xff] %v4553_v44  ;;  %v4502_v37 = vpop.permute.xlu1 %4501  ;;  %v4130_v59 = vmul.f32 %v5098_v63, %v4887_v54  ;;  %v4131_v34 = vmul.f32 %v5104_v24, %v4887_v54  ;;  %v4128_v14 = vmul.f32 %v5101_v12, %v4887_v54  ;;  %v4129_v52 = vmul.f32 %v5107_v16, %v4887_v54 }
 0x56b   : > { %v4554_v3 = vsel %vm1196_vm2, %v5963_v58, %v4502_v37  ;;  %v4888_v58 = vld [vmem:[%s7859_s12] ss:$0 sm:$0xff]  ;;  %v4132_v11 = vmul.f32 %v5113_v18, %v4887_v54  ;;  %v4133_v2 = vmul.f32 %v5119_v25, %v4887_v54  ;;  %v4134_v21 = vmul.f32 %v5110_v33, %v4887_v54 }
 0x56c   : > { %4573 = vst [vmem:[%s7748_s20 + $0x30] sm:$0xff] %v4554_v3  ;;  %v4144_v15 = vadd.f32 %v4888_v58, %v4130_v59  ;;  %v4145_v30 = vadd.f32 %v4888_v58, %v4131_v34  ;;  %v4142_v56 = vadd.f32 %v4888_v58, %v4128_v14  ;;  %v4143_v50 = vadd.f32 %v4888_v58, %v4129_v52 }
 0x56d   : > { %v4146_v1 = vadd.f32 %v4888_v58, %v4132_v11  ;;  %v4135_v31 = vmul.f32 %v5116_v60, %v4887_v54  ;;  %v4147_v42 = vadd.f32 %v4888_v58, %v4133_v2  ;;  %v4148_v41 = vadd.f32 %v4888_v58, %v4134_v21 }
 0x56e   : > { %v4152_v22 = vmax.f32 %v4144_v15, 0.0  ;;  %v4153_v61 = vmax.f32 %v4145_v30, 0.0  ;;  %v4150_v53 = vmax.f32 %v4142_v56, 0.0  ;;  %v4151_v36 = vmax.f32 %v4143_v50, 0.0 }
 0x56f   : > { %v4154_v63 = vmax.f32 %v4146_v1, 0.0  ;;  %v4149_v12 = vadd.f32 %v4888_v58, %v4135_v31  ;;  %v4155_v27 = vmax.f32 %v4147_v42, 0.0  ;;  %v4156_v16 = vmax.f32 %v4148_v41, 0.0 }
 0x570   : > { %v4504_v8 = vpop.permute.xlu0 %4503 }
 0x571   : > { %v4555_v23 = vsel %vm1196_vm2, %v7903_v35, %v4504_v8  ;;  %v4157_v7 = vmax.f32 %v4149_v12, 0.0 }
 0x572   : > { %4575 = vst [vmem:[%s7748_s20 + $0x40] sm:$0xff] %v4555_v23  ;;  %v4506_v32 = vpop.permute.xlu1 %4505 }
 0x573   : > { %v4556_v9 = vsel %vm1196_vm2, %v7904_v40, %v4506_v32 }
 0x574   : > { %4577 = vst [vmem:[%s7748_s20 + $0x50] sm:$0xff] %v4556_v9 }
 0x578   : > { %v4508_v43 = vpop.permute.xlu0 %4507 }
 0x579   : > { %v4557_v10 = vsel %vm1196_vm2, %v7905_v5, %v4508_v43 }
 0x57a   : > { %4579 = vst [vmem:[%s7748_s20 + $0x60] sm:$0xff] %v4557_v10  ;;  %v4510_v47 = vpop.permute.xlu1 %4509 }
 0x57b   : > { %v4558_v57 = vsel %vm1196_vm2, %v7906_v55, %v4510_v47 }
 0x57c   : > { %4581 = vst [vmem:[%s7748_s20 + $0x70] sm:$0xff] %v4558_v57 }
 0x580   : > { %v4532_v45 = vpop.permute.xlu0 %4531 }
 0x581   : > { %v4561_v62 = vsel %vm1178_vm11, %v4152_v22, %v4532_v45 }
 0x582   : > { %4572 = vst [vmem:[%s7748_s20 + $0x28] sm:$0xff] %v4561_v62  ;;  %v4534_v4 = vpop.permute.xlu1 %4533 }
 0x583   : > { %v4562_v19 = vsel %vm1178_vm11, %v4153_v61, %v4534_v4 }
 0x584   : > { %4574 = vst [vmem:[%s7748_s20 + $0x38] sm:$0xff] %v4562_v19  ;;  %v4528_v0 = vpop.permute.xlu0 %4527 }
 0x585   : > { %v4559_v49 = vsel %vm1178_vm11, %v4150_v53, %v4528_v0 }
 0x586   : > { %4568 = vst [vmem:[%s7748_s20 + $0x8] sm:$0xff] %v4559_v49  ;;  %v4530_v51 = vpop.permute.xlu1 %4529 }
 0x587   : > { %v4560_v39 = vsel %vm1178_vm11, %v4151_v36, %v4530_v51 }
 0x588   : > { %4570 = vst [vmem:[%s7748_s20 + $0x18] sm:$0xff] %v4560_v39 }
 0x589   : > { %v4536_v46 = vpop.permute.xlu0 %4535 }
 0x58a   : > { %v4563_v24 = vsel %vm1178_vm11, %v4154_v63, %v4536_v46 }
 0x58b   : > { %4576 = vst [vmem:[%s7748_s20 + $0x48] sm:$0xff] %v4563_v24  ;;  %v4538_v28 = vpop.permute.xlu1 %4537 }
 0x58c   : > { %v4564_v20 = vsel %vm1178_vm11, %v4155_v27, %v4538_v28 }
 0x58d   : > { %4578 = vst [vmem:[%s7748_s20 + $0x58] sm:$0xff] %v4564_v20  ;;  %v4540_v33 = vpop.permute.xlu0 %4539 }
 0x58e   : > { %v4565_v18 = vsel %vm1178_vm11, %v4156_v16, %v4540_v33 }
 0x58f   : > { %4580 = vst [vmem:[%s7748_s20 + $0x68] sm:$0xff] %v4565_v18  ;;  %v4542_v17 = vpop.permute.xlu1 %4541 }
 0x590   : > { %v4566_v60 = vsel %vm1178_vm11, %v4157_v7, %v4542_v17 }
 0x591   : > { %4582 = vst [vmem:[%s7748_s20 + $0x78] sm:$0xff] %v4566_v60 }
 0x592   : > { %5614 = shalt.err (!%p5611_p3)
}
 0x593   : > { %s5615_s29 = scalar_lea.hbm %s7796_s19, 2048  ;;  %s5619_s2 = scalar_lea.hbm %s7863_s16, 4096 }
 0x594   : > { %p5616_p4 = scmp.ne.s32.totalorder %s7796_s19, %s5615_s29  ;;  %p5620_p9 = scmp.lt.u32.totalorder %s7796_s19, %s7863_s16 }
 0x595   : > { %p5621_p10 = scmp.lt.u32.totalorder %s5619_s2, %s5615_s29  ;;  %p5623_p12 = scmp.lt.u32.totalorder %s5615_s29, %s7796_s19 }
 0x596   : > { %p5617_p7 = pnand %p5616_p4, %p5796_p5 }
 0x597   : > { %p5622_p11 = por %p5621_p10, %p5620_p9 }
 0x598   : > { %p5618_p8 = pneg %p5617_p7 }
 0x599   : > { %p5624_p13 = por %p5623_p12, %p5622_p11 }
 0x59b   : > { %p5625_p0 = pnand %p5624_p13, %p5618_p8 }
 0x59d   : > { %5628 = shalt.err (!%p5625_p0)
}
 0x59e   : > { %s5672_s23 = smov 256  }
 0x59f   : > { %5232 = dma.vmem_to_hbm [thread:$0]  (%p5796_p5), %s7799_s30, 2048, %s7796_s19, %s7805_s25, %s5672_s23, %s5672_s23, %s7898_s18  }
 0x5a0 PF: > { %p5238_p1 = scmp.ge.s32.totalorder %s5663_s24, 2  ;;  %s4612_s3 = sand.u32 1, %s5651_s21  }
 0x5a1   : > { %s4613_s4 = scalar_lea.sflag [#allocation7], %s4612_s3 }
 0x5a2   : > { %p5235_p2 = pnand %p5238_p1, %p5800_p6 }
 0x5a4   : > { %5646 = dma.done.wait (!%p5235_p2), %s4613_s4, 2048  }
 0x5a5   : > { %5648 = vsyncadd (!%p5235_p2), %s4613_s4, 4294965248  ;;  %s7907_s28 = sld [smem:[#allocation9_spill]]  ;;  %s7908_s23 = sld [smem:[#allocation10_spill]] }
 0x5a6   : > { %p26_p3 = scmp.ge.s32.totalorder %s5783_s27, 4   ;;  %s7909_s21 = smov %s5655_s22 }
 0x5a7   : > { %s7911_s24 = smov %s5783_s27 }
 0x5a8   :  { %28 = sbr.rel (!%p26_p3) target bundleno = 10 (0xa), region = 123 }
 0x5ab   : > { %s7910_s22 = smov %s7907_s28 }
 0x5af   :  { %4618 = vsyncpa [#allocation7], 1 }
 0x5b0   :  { %4620 = vsyncpa [#allocation7 + $0x1], 1 }

</bundles_post_ra>
